<compile_context>
chip_gen: v7x
topology: tpu7x:2x2x1
jax: 0.10.0
libtpu: 0.0.40
codegen_flags: <defaults>
</compile_context>

<pallas_src>
import functools

import jax
import jax.numpy as jnp
from jax import lax
from jax.experimental import pallas as pl
from jax.experimental.pallas import tpu as pltpu


def _round_up(x, m):
    return (x + m - 1) // m * m


def _vmem_capacity_bytes():
    """Per-core physical VMEM (v5e/v6e: 128 MiB, v7x: 64 MiB). Conservative fallback."""
    try:
        cap = getattr(pltpu.get_tpu_info(), "vmem_capacity_bytes", None)
        if cap:
            return int(cap)
    except Exception:
        pass
    return 64 << 20


def _probe_pipeline_mode():
    """True if BlockSpec accepts pipeline_mode=pl.Buffered(1) (single-buffer residents)."""
    try:
        pl.BlockSpec((8, 128), lambda h, i: (0, 0), pipeline_mode=pl.Buffered(1))
        return True
    except Exception:
        return False


_PIPELINE_MODE_OK = _probe_pipeline_mode()


def _gcn_kernel(xw1_ref, adj_ref, pool_ref, b1_ref, w2_ref, b2_ref,
                pooled_ref, h_scratch, *, tm):
    """One (hop, row-block) grid step.

    h_scratch: VMEM (2, n_pad, hidden) bf16 ping-pong of hop activations.
    NOTE: padded rows (>= N) only ever hold relu(bias); their adjacency
    rows/columns and pool columns are exactly zero, so they never contaminate
    real nodes or the pooled output.  Keep the padding zero if this changes.
    """
    hop = pl.program_id(0)
    i = pl.program_id(1)
    last_hop = hop == pl.num_programs(0) - 1
    row0 = pl.multiple_of(i * tm, tm)

    adj_blk = adj_ref[...]                                      # [tm, n_pad] bf16

    def hop0():
        # conv1: A_blk @ (X W1) + b1   (X @ W1 pre-computed in the wrapper).
        return (jnp.dot(adj_blk, xw1_ref[...],
                        preferred_element_type=jnp.float32) + b1_ref[...])

    def hop_k():
        # conv2: (A_blk @ H_prev) @ W2 + b2.  Dynamic first-axis read of the
        # ping-pong slot is a direct view load (no full-buffer copy).
        h_prev = h_scratch[(hop + 1) % 2]                       # [n_pad, hidden] bf16
        ah = jnp.dot(adj_blk, h_prev, preferred_element_type=jnp.float32)
        return (jnp.dot(ah.astype(jnp.bfloat16), w2_ref[...],
                        preferred_element_type=jnp.float32) + b2_ref[...])

    h_new = jnp.maximum(lax.cond(hop == 0, hop0, hop_k), 0.0)   # ReLU, f32
    h_new_bf16 = h_new.astype(jnp.bfloat16)

    # this hop's row block -> write slot (hop % 2)
    h_scratch[hop % 2, pl.ds(row0, tm), :] = h_new_bf16

    # last hop: fold global_mean_pool into the finalize; the resident output
    # block accumulates over row blocks (bf16 MXU operands, f32 accumulation).
    @pl.when(last_hop & (i == 0))
    def _():
        pooled_ref[...] = jnp.zeros_like(pooled_ref)

    @pl.when(last_hop)
    def _():
        pooled_ref[...] += jnp.dot(pool_ref[...], h_new_bf16,
                                   preferred_element_type=jnp.float32)


def gcn_forward(x, adj_norm, pool_mat, params, k_hop, *, tm=None):
    """GCN forward (eval mode). x:[N,F_in], adj_norm:[N,N], pool_mat:[G,N]."""
    n, f_in = x.shape
    g = pool_mat.shape[0]
    w1, b1, w2, b2, wl, bl = params
    hidden = w1.shape[1]

    n_pad = _round_up(n, 128)
    g_pad = _round_up(max(g, 8), 8)

    # ---- per-generation VMEM budget ---------------------------------------
    vmem_cap = _vmem_capacity_bytes()
    vmem_budget = int(vmem_cap * 0.9)           # headroom for compiler scratch
    single_buf = _PIPELINE_MODE_OK              # Buffered(1) on constant inputs
    margin = 2 << 20

    # Resident bytes independent of the adjacency tiling choice.
    fixed_bytes = ((1 if single_buf else 2) * n_pad * hidden * 2   # X@W1
                   + 2 * n_pad * hidden * 2                        # H ping-pong
                   + 2 * g_pad * n_pad * 2                         # pool (worst case)
                   + 2 * (hidden * hidden * 2 + 2 * hidden * 4)    # w2/b1/b2
                   + 2 * g_pad * hidden * 4)                       # resident output

    # ---- tiling: keep adj VMEM-resident across hops when it fits (counting
    # the real buffer count), otherwise stream >=512-row blocks. ------------
    if tm is None:
        adj_copies = 1 if single_buf else 2
        if adj_copies * n_pad * n_pad * 2 + fixed_bytes + margin <= vmem_budget:
            tm = n_pad                          # fetched once, resident across hops
        else:
            tm = 512                            # streamed: ~85% of HBM roofline
            while tm > 128 and (2 * tm * n_pad * 2 + fixed_bytes + margin
                                > vmem_budget):
                tm //= 2
    tm = _round_up(max(tm, 128), 128)
    tm = min(tm, n_pad)
    n_pad = _round_up(n_pad, tm)
    n_blocks = n_pad // tm
    resident = tm == n_pad

    # ---- pad + cast inputs (bf16 MXU operands, f32 accumulation) -----------
    # conv1 reassociated: relu(A @ (X W1) + b1); X@W1 hoisted to XLA (f32
    # matmul then bf16 cast), so hop 0 is one matmul per block in the kernel.
    xw1 = (x.astype(jnp.float32) @ w1.astype(jnp.float32)).astype(jnp.bfloat16)
    xw1_p = jnp.zeros((n_pad, hidden), jnp.bfloat16).at[:n, :].set(xw1)
    adj_p = jnp.zeros((n_pad, n_pad), jnp.bfloat16).at[:n, :n].set(
        adj_norm.astype(jnp.bfloat16))
    pool_p = jnp.zeros((g_pad, n_pad), jnp.bfloat16).at[:g, :n].set(
        pool_mat.astype(jnp.bfloat16))
    w2b = w2.astype(jnp.bfloat16)
    b1f = b1.reshape(1, hidden).astype(jnp.float32)
    b2f = b2.reshape(1, hidden).astype(jnp.float32)

    # ---- VMEM limit (sized for the worst case = fully double-buffered) -----
    vmem_bytes = (2 * tm * n_pad * 2            # adj block(s)
                  + 2 * n_pad * hidden * 2      # X@W1
                  + 2 * g_pad * tm * 2          # pool block(s)
                  + 2 * n_pad * hidden * 2      # H ping-pong scratch
                  + 2 * (hidden * hidden * 2 + 2 * hidden * 4)
                  + 2 * g_pad * hidden * 4)
    vmem_limit = int(min(max(vmem_bytes + (4 << 20), 16 << 20), vmem_cap))

    # ---- cost hint ----------------------------------------------------------
    flops = (2 * n_pad * n_pad * hidden * k_hop
             + 2 * n_pad * hidden * hidden * max(k_hop - 1, 0)
             + 2 * g_pad * n_pad * hidden)
    adj_streams = 1 if resident else k_hop
    bytes_accessed = (adj_streams * n_pad * n_pad * 2 + n_pad * hidden * 2
                      + g_pad * n_pad * 2 + g_pad * hidden * 4)
    cost = pl.CostEstimate(flops=int(flops), transcendentals=0,
                           bytes_accessed=int(bytes_accessed))

    last = k_hop - 1

    def build_call(use_buffered):
        def const_spec(shape):
            if use_buffered:
                return pl.BlockSpec(shape, lambda h, i: (0, 0),
                                    pipeline_mode=pl.Buffered(1))
            return pl.BlockSpec(shape, lambda h, i: (0, 0))

        if resident:
            adj_spec = const_spec((tm, n_pad))
            pool_spec = const_spec((g_pad, tm))
        else:
            adj_spec = pl.BlockSpec((tm, n_pad), lambda h, i: (i, 0))
            # Only fetch fresh pool column blocks on the last hop (the only hop
            # that consumes them); earlier hops keep block 0 resident.
            pool_spec = pl.BlockSpec(
                (g_pad, tm), lambda h, i: (0, jnp.where(h == last, i, 0)))

        grid_spec = pltpu.PrefetchScalarGridSpec(
            num_scalar_prefetch=0,
            grid=(k_hop, n_blocks),
            in_specs=[
                const_spec((n_pad, hidden)),      # X@W1 (resident)
                adj_spec,                         # adjacency row block
                pool_spec,                        # pool column block
                const_spec((1, hidden)),          # b1
                const_spec((hidden, hidden)),     # w2
                const_spec((1, hidden)),          # b2
            ],
            out_specs=pl.BlockSpec((g_pad, hidden), lambda h, i: (0, 0)),
            scratch_shapes=[pltpu.VMEM((2, n_pad, hidden), jnp.bfloat16)],
        )
        return pl.pallas_call(
            functools.partial(_gcn_kernel, tm=tm),
            out_shape=jax.ShapeDtypeStruct((g_pad, hidden), jnp.float32),
            grid_spec=grid_spec,
            compiler_params=pltpu.CompilerParams(
                dimension_semantics=("arbitrary", "arbitrary"),
                vmem_limit_bytes=vmem_limit,
            ),
            cost_estimate=cost,
        )

    args = (xw1_p, adj_p, pool_p, b1f, w2b, b2f)
    if single_buf:
        try:
            pooled = build_call(True)(*args)
        except Exception:
            # Fall back to default double-buffering if Buffered(1) is rejected.
            pooled = build_call(False)(*args)
    else:
        pooled = build_call(False)(*args)

    # TODO(synk): F.dropout(p=0.5, training=self.training) is identity in eval
    # mode; a training-mode version would use pltpu.prng_seed/prng_random_bits.
    # Final Linear(hidden, 2): far too small to benefit from being in-kernel.
    return (pooled[:g] @ wl.astype(jnp.float32)
            + bl.reshape(1, -1).astype(jnp.float32))


# ---------------------------------------------------------------------------
# Plain-JAX glue: graph preprocessing + deterministic parameter init.
# ---------------------------------------------------------------------------

def build_normalized_adjacency(edge_index, num_nodes):
    """Dense GCN normalization: D^-1/2 (A + I) D^-1/2 (add_remaining_self_loops)."""
    src, dst = edge_index[0], edge_index[1]
    adj = jnp.zeros((num_nodes, num_nodes), jnp.float32)
    adj = adj.at[src, dst].set(1.0)
    # set (not add) the diagonal to 1 so pre-existing self loops don't become 2.0
    adj = jnp.maximum(adj, jnp.eye(num_nodes, dtype=jnp.float32))
    deg = jnp.sum(adj, axis=1)
    d_inv_sqrt = jnp.where(deg > 0, 1.0 / jnp.sqrt(deg), 0.0)
    return adj * d_inv_sqrt[:, None] * d_inv_sqrt[None, :]


def build_pool_matrix(batch, num_graphs):
    """[G, N] matrix implementing global_mean_pool."""
    onehot = (batch[None, :] == jnp.arange(num_graphs)[:, None]).astype(jnp.float32)
    counts = jnp.maximum(jnp.sum(onehot, axis=1, keepdims=True), 1.0)
    return onehot / counts


def init_params(key, f_in, hidden, n_out):
    """Deterministic synthetic weights (shapes match GCNConv / Linear)."""
    k1, k2, k3 = jax.random.split(key, 3)

    def glorot(k, fan_in, fan_out):
        lim = jnp.sqrt(6.0 / (fan_in + fan_out))
        return jax.random.uniform(k, (fan_in, fan_out), jnp.float32, -lim, lim)

    w1 = glorot(k1, f_in, hidden)                 # GCNConv(20, hidden) weight
    b1 = jnp.zeros((1, hidden), jnp.float32)
    w2 = glorot(k2, hidden, hidden)               # GCNConv(hidden, hidden) weight
    b2 = jnp.zeros((1, hidden), jnp.float32)
    wl = glorot(k3, hidden, n_out)                # Linear(hidden, 2) weight (transposed)
    bl = jnp.zeros((1, n_out), jnp.float32)
    return (w1, b1, w2, b2, wl, bl)


def _gcn_reference(x, adj, pool, params, k_hop):
    """Pure-JAX f32 reference of the same forward pass."""
    w1, b1, w2, b2, wl, bl = params
    h = x
    for hop in range(k_hop):
        w, b = (w1, b1) if hop == 0 else (w2, b2)
        h = jnp.maximum(adj @ (h @ w) + b, 0.0)
    pooled = pool @ h
    return pooled @ wl + bl


if __name__ == "__main__":
    key = jax.random.PRNGKey(0)
    k_x, k_p = jax.random.split(key)

    # 2 graphs x 128 nodes -> N=256 so both the resident and the streamed
    # (2 adjacency row blocks of 128) paths are exercised end-to-end;
    # 20 input features, hidden=32, 2 classes, k_hop=3.
    F_IN, HIDDEN, N_OUT = 20, 32, 2
    K_HOP = 3
    NUM_GRAPHS, NODES_PER_GRAPH = 2, 128
    N = NUM_GRAPHS * NODES_PER_GRAPH

    x = jax.random.normal(k_x, (N, F_IN), jnp.float32)

    # Undirected ring within each graph (both edge directions listed).
    src_list, dst_list = [], []
    for gi in range(NUM_GRAPHS):
        base = gi * NODES_PER_GRAPH
        for i in range(NODES_PER_GRAPH):
            a = base + i
            b = base + (i + 1) % NODES_PER_GRAPH
            src_list += [a, b]
            dst_list += [b, a]
    edge_index = jnp.array([src_list, dst_list], dtype=jnp.int32)   # [2, E]
    batch = jnp.repeat(jnp.arange(NUM_GRAPHS, dtype=jnp.int32), NODES_PER_GRAPH)

    adj_norm = build_normalized_adjacency(edge_index, N)
    pool_mat = build_pool_matrix(batch, NUM_GRAPHS)
    params = init_params(k_p, F_IN, HIDDEN, N_OUT)

    ref = _gcn_reference(x, adj_norm, pool_mat, params, K_HOP)

    # Resident-adjacency path (tm auto -> adj fetched once, constant-index
    # inputs single-buffered when Buffered(1) is available).
    out_resident = jax.block_until_ready(
        gcn_forward(x, adj_norm, pool_mat, params, K_HOP))
    # Streamed path (tm=128 forces 2 adjacency row blocks per hop).
    out_streamed = jax.block_until_ready(
        gcn_forward(x, adj_norm, pool_mat, params, K_HOP, tm=128))

    for name, out in (("resident", out_resident), ("streamed", out_streamed)):
        assert out.shape == (NUM_GRAPHS, N_OUT)
        assert bool(jnp.allclose(out, ref, rtol=1e-1, atol=1e-1)), (
            f"{name} mismatch vs f32 reference: max abs diff = "
            f"{float(jnp.max(jnp.abs(out - ref)))}")

    print("KERNEL_OK")
</pallas_src>

<mosaic_0001>
module attributes {stable_mosaic.version = 11 : i64} {
  func.func @_gcn_kernel(%arg0: i32, %arg1: i32, %arg2: memref<256x32xbf16, #tpu.memory_space<vmem>>, %arg3: memref<256x256xbf16, #tpu.memory_space<vmem>>, %arg4: memref<8x256xbf16, #tpu.memory_space<vmem>>, %arg5: memref<1x32xf32, #tpu.memory_space<vmem>>, %arg6: memref<32x32xbf16, #tpu.memory_space<vmem>>, %arg7: memref<1x32xf32, #tpu.memory_space<vmem>>, %arg8: memref<8x32xf32, #tpu.memory_space<vmem>>, %arg9: memref<2x256x32xbf16, #tpu.memory_space<vmem>>) attributes {dimension_semantics = [#tpu.dimension_semantics<arbitrary>, #tpu.dimension_semantics<arbitrary>], iteration_bounds = array<i64: 3, 1>, scalar_prefetch = 0 : i64, scratch_operands = 1 : i64, tpu.core_type = #tpu.core_type<tc>, window_params = [{pipeline_mode = #tpu.pipeline_mode<synchronous>, transform_indices = @transform_0, window_bounds = array<i64: 256, 32>}, {pipeline_mode = #tpu.pipeline_mode<synchronous>, transform_indices = @transform_1, window_bounds = array<i64: 256, 256>}, {pipeline_mode = #tpu.pipeline_mode<synchronous>, transform_indices = @transform_2, window_bounds = array<i64: 8, 256>}, {pipeline_mode = #tpu.pipeline_mode<synchronous>, transform_indices = @transform_3, window_bounds = array<i64: 1, 32>}, {pipeline_mode = #tpu.pipeline_mode<synchronous>, transform_indices = @transform_4, window_bounds = array<i64: 32, 32>}, {pipeline_mode = #tpu.pipeline_mode<synchronous>, transform_indices = @transform_5, window_bounds = array<i64: 1, 32>}, {pipeline_mode = #tpu.pipeline_mode<synchronous>, transform_indices = @transform_6, window_bounds = array<i64: 8, 32>}]} {
    %c2_i32 = arith.constant 2 : i32
    %0 = arith.cmpi eq, %arg0, %c2_i32 : i32
    %c256_i32 = arith.constant 256 : i32
    %1 = arith.muli %arg1, %c256_i32 : i32
    %2 = tpu.assume_multiple %1, 256 : i32
    %c0 = arith.constant 0 : index
    %c0_0 = arith.constant 0 : index
    %3 = vector.load %arg3[%c0, %c0_0] : memref<256x256xbf16, #tpu.memory_space<vmem>>, vector<256x256xbf16>
    %c0_i32 = arith.constant 0 : i32
    %4 = arith.cmpi eq, %arg0, %c0_i32 : i32
    %5 = arith.extui %4 : i1 to i32
    %c0_i32_1 = arith.constant 0 : i32
    %6 = arith.cmpi ne, %5, %c0_i32_1 : i32
    %7 = scf.if %6 -> (vector<256x32xf32>) {
      %c0_11 = arith.constant 0 : index
      %c0_12 = arith.constant 0 : index
      %32 = vector.load %arg2[%c0_11, %c0_12] : memref<256x32xbf16, #tpu.memory_space<vmem>>, vector<256x32xbf16>
      %cst_13 = arith.constant dense<0.000000e+00> : vector<256x32xf32>
      %33 = tpu.matmul %3, %32, %cst_13 {dimension_numbers = #tpu.dot_dimension_numbers<[1], [0], [0], [1], [0, 0, 1, 1], [], []>} : vector<256x256xbf16>, vector<256x32xbf16>, vector<256x32xf32> -> vector<256x32xf32>
      %c0_14 = arith.constant 0 : index
      %c0_15 = arith.constant 0 : index
      %34 = vector.load %arg5[%c0_14, %c0_15] : memref<1x32xf32, #tpu.memory_space<vmem>>, vector<1x32xf32>
      %35 = vector.broadcast %34 : vector<1x32xf32> to vector<256x32xf32>
      %36 = arith.addf %33, %35 : vector<256x32xf32>
      scf.yield %36 : vector<256x32xf32>
    } else {
      %c1_i32_11 = arith.constant 1 : i32
      %32 = arith.addi %arg0, %c1_i32_11 : i32
      %c2_i32_12 = arith.constant 2 : i32
      %c0_i32_13 = arith.constant 0 : i32
      %33 = arith.cmpi eq, %c2_i32_12, %c0_i32_13 : i32
      %c1_i32_14 = arith.constant 1 : i32
      %34 = arith.select %33, %c1_i32_14, %c2_i32_12 : i32
      %35 = arith.remsi %32, %34 : i32
      %c0_i32_15 = arith.constant 0 : i32
      %36 = arith.cmpi ne, %35, %c0_i32_15 : i32
      %c0_i32_16 = arith.constant 0 : i32
      %37 = arith.cmpi slt, %35, %c0_i32_16 : i32
      %c0_i32_17 = arith.constant 0 : i32
      %38 = arith.cmpi slt, %34, %c0_i32_17 : i32
      %39 = arith.xori %37, %38 : i1
      %40 = arith.andi %39, %36 : i1
      %41 = arith.addi %35, %34 : i32
      %42 = arith.select %40, %41, %35 : i32
      %43 = arith.index_cast %42 : i32 to index
      %c0_18 = arith.constant 0 : index
      %c0_19 = arith.constant 0 : index
      %44 = vector.load %arg9[%43, %c0_18, %c0_19] : memref<2x256x32xbf16, #tpu.memory_space<vmem>>, vector<1x256x32xbf16>
      %45 = vector.shape_cast %44 : vector<1x256x32xbf16> to vector<256x32xbf16>
      %cst_20 = arith.constant dense<0.000000e+00> : vector<256x32xf32>
      %46 = tpu.matmul %3, %45, %cst_20 {dimension_numbers = #tpu.dot_dimension_numbers<[1], [0], [0], [1], [0, 0, 1, 1], [], []>} : vector<256x256xbf16>, vector<256x32xbf16>, vector<256x32xf32> -> vector<256x32xf32>
      %47 = arith.truncf %46 : vector<256x32xf32> to vector<256x32xbf16>
      %c0_21 = arith.constant 0 : index
      %c0_22 = arith.constant 0 : index
      %48 = vector.load %arg6[%c0_21, %c0_22] : memref<32x32xbf16, #tpu.memory_space<vmem>>, vector<32x32xbf16>
      %cst_23 = arith.constant dense<0.000000e+00> : vector<256x32xf32>
      %49 = tpu.matmul %47, %48, %cst_23 {dimension_numbers = #tpu.dot_dimension_numbers<[1], [0], [0], [1], [0, 0, 1, 1], [], []>} : vector<256x32xbf16>, vector<32x32xbf16>, vector<256x32xf32> -> vector<256x32xf32>
      %c0_24 = arith.constant 0 : index
      %c0_25 = arith.constant 0 : index
      %50 = vector.load %arg7[%c0_24, %c0_25] : memref<1x32xf32, #tpu.memory_space<vmem>>, vector<1x32xf32>
      %51 = vector.broadcast %50 : vector<1x32xf32> to vector<256x32xf32>
      %52 = arith.addf %49, %51 : vector<256x32xf32>
      scf.yield %52 : vector<256x32xf32>
    }
    %cst = arith.constant 0.000000e+00 : f32
    %8 = vector.broadcast %cst : f32 to vector<256x32xf32>
    %9 = arith.maximumf %7, %8 : vector<256x32xf32>
    %10 = arith.truncf %9 : vector<256x32xf32> to vector<256x32xbf16>
    %c2_i32_2 = arith.constant 2 : i32
    %c0_i32_3 = arith.constant 0 : i32
    %11 = arith.cmpi eq, %c2_i32_2, %c0_i32_3 : i32
    %c1_i32 = arith.constant 1 : i32
    %12 = arith.select %11, %c1_i32, %c2_i32_2 : i32
    %13 = arith.remsi %arg0, %12 : i32
    %c0_i32_4 = arith.constant 0 : i32
    %14 = arith.cmpi ne, %13, %c0_i32_4 : i32
    %c0_i32_5 = arith.constant 0 : i32
    %15 = arith.cmpi slt, %13, %c0_i32_5 : i32
    %c0_i32_6 = arith.constant 0 : i32
    %16 = arith.cmpi slt, %12, %c0_i32_6 : i32
    %17 = arith.xori %15, %16 : i1
    %18 = arith.andi %17, %14 : i1
    %19 = arith.addi %13, %12 : i32
    %20 = arith.select %18, %19, %13 : i32
    %21 = arith.index_cast %20 : i32 to index
    %22 = arith.index_cast %2 : i32 to index
    %c0_7 = arith.constant 0 : index
    %23 = vector.load %arg9[%21, %22, %c0_7] : memref<2x256x32xbf16, #tpu.memory_space<vmem>>, vector<1x256x32xbf16>
    %24 = vector.shape_cast %23 : vector<1x256x32xbf16> to vector<256x32xbf16>
    %25 = vector.shape_cast %10 : vector<256x32xbf16> to vector<1x256x32xbf16>
    tpu.vector_store %arg9[%21, %22, %c0_7], %25 {strides = array<i32>} : memref<2x256x32xbf16, #tpu.memory_space<vmem>>, vector<1x256x32xbf16>,
    %c0_i32_8 = arith.constant 0 : i32
    %26 = arith.cmpi eq, %arg1, %c0_i32_8 : i32
    %27 = arith.andi %0, %26 : i1
    %28 = arith.extui %27 : i1 to i32
    %c0_i32_9 = arith.constant 0 : i32
    %29 = arith.cmpi ne, %28, %c0_i32_9 : i32
    scf.if %29 {
      %cst_11 = arith.constant 0.000000e+00 : f32
      %32 = vector.broadcast %cst_11 : f32 to vector<8x32xf32>
      %c0_12 = arith.constant 0 : index
      %c0_13 = arith.constant 0 : index
      %33 = vector.load %arg8[%c0_12, %c0_13] : memref<8x32xf32, #tpu.memory_space<vmem>>, vector<8x32xf32>
      tpu.vector_store %arg8[%c0_12, %c0_13], %32 {strides = array<i32>} : memref<8x32xf32, #tpu.memory_space<vmem>>, vector<8x32xf32>,
    } else {
    }
    %30 = arith.extui %0 : i1 to i32
    %c0_i32_10 = arith.constant 0 : i32
    %31 = arith.cmpi ne, %30, %c0_i32_10 : i32
    scf.if %31 {
      %c0_11 = arith.constant 0 : index
      %c0_12 = arith.constant 0 : index
      %32 = vector.load %arg8[%c0_11, %c0_12] : memref<8x32xf32, #tpu.memory_space<vmem>>, vector<8x32xf32>
      %c0_13 = arith.constant 0 : index
      %c0_14 = arith.constant 0 : index
      %33 = vector.load %arg4[%c0_13, %c0_14] : memref<8x256xbf16, #tpu.memory_space<vmem>>, vector<8x256xbf16>
      %cst_15 = arith.constant dense<0.000000e+00> : vector<8x32xf32>
      %34 = tpu.matmul %33, %10, %cst_15 {dimension_numbers = #tpu.dot_dimension_numbers<[1], [0], [0], [1], [0, 0, 1, 1], [], []>} : vector<8x256xbf16>, vector<256x32xbf16>, vector<8x32xf32> -> vector<8x32xf32>
      %35 = arith.addf %32, %34 : vector<8x32xf32>
      %c0_16 = arith.constant 0 : index
      %c0_17 = arith.constant 0 : index
      %36 = vector.load %arg8[%c0_16, %c0_17] : memref<8x32xf32, #tpu.memory_space<vmem>>, vector<8x32xf32>
      tpu.vector_store %arg8[%c0_16, %c0_17], %35 {strides = array<i32>} : memref<8x32xf32, #tpu.memory_space<vmem>>, vector<8x32xf32>,
    } else {
    }
    return
  }
  func.func @transform_0(%arg0: i32, %arg1: i32) -> (i32, i32) {
    %c0_i32 = arith.constant 0 : i32
    %c0_i32_0 = arith.constant 0 : i32
    %c0_i32_1 = arith.constant 0 : i32
    return %c0_i32, %c0_i32_0 : i32, i32
  }
  func.func @transform_1(%arg0: i32, %arg1: i32) -> (i32, i32) {
    %c0_i32 = arith.constant 0 : i32
    %c0_i32_0 = arith.constant 0 : i32
    %c0_i32_1 = arith.constant 0 : i32
    return %c0_i32, %c0_i32_0 : i32, i32
  }
  func.func @transform_2(%arg0: i32, %arg1: i32) -> (i32, i32) {
    %c0_i32 = arith.constant 0 : i32
    %c0_i32_0 = arith.constant 0 : i32
    %c0_i32_1 = arith.constant 0 : i32
    return %c0_i32, %c0_i32_0 : i32, i32
  }
  func.func @transform_3(%arg0: i32, %arg1: i32) -> (i32, i32) {
    %c0_i32 = arith.constant 0 : i32
    %c0_i32_0 = arith.constant 0 : i32
    %c0_i32_1 = arith.constant 0 : i32
    return %c0_i32, %c0_i32_0 : i32, i32
  }
  func.func @transform_4(%arg0: i32, %arg1: i32) -> (i32, i32) {
    %c0_i32 = arith.constant 0 : i32
    %c0_i32_0 = arith.constant 0 : i32
    %c0_i32_1 = arith.constant 0 : i32
    return %c0_i32, %c0_i32_0 : i32, i32
  }
  func.func @transform_5(%arg0: i32, %arg1: i32) -> (i32, i32) {
    %c0_i32 = arith.constant 0 : i32
    %c0_i32_0 = arith.constant 0 : i32
    %c0_i32_1 = arith.constant 0 : i32
    return %c0_i32, %c0_i32_0 : i32, i32
  }
  func.func @transform_6(%arg0: i32, %arg1: i32) -> (i32, i32) {
    %c0_i32 = arith.constant 0 : i32
    %c0_i32_0 = arith.constant 0 : i32
    %c0_i32_1 = arith.constant 0 : i32
    return %c0_i32, %c0_i32_0 : i32, i32
  }
}

module attributes {stable_mosaic.version = 11 : i64} {
  func.func @_gcn_kernel(%arg0: i32, %arg1: i32, %arg2: memref<256x32xbf16, #tpu.memory_space<vmem>>, %arg3: memref<256x256xbf16, #tpu.memory_space<vmem>>, %arg4: memref<8x256xbf16, #tpu.memory_space<vmem>>, %arg5: memref<1x32xf32, #tpu.memory_space<vmem>>, %arg6: memref<32x32xbf16, #tpu.memory_space<vmem>>, %arg7: memref<1x32xf32, #tpu.memory_space<vmem>>, %arg8: memref<8x32xf32, #tpu.memory_space<vmem>>, %arg9: memref<2x256x32xbf16, #tpu.memory_space<vmem>>) attributes {dimension_semantics = [#tpu.dimension_semantics<arbitrary>, #tpu.dimension_semantics<arbitrary>], iteration_bounds = array<i64: 3, 1>, scalar_prefetch = 0 : i64, scratch_operands = 1 : i64, tpu.core_type = #tpu.core_type<tc>, window_params = [{pipeline_mode = #tpu.pipeline_mode<synchronous>, transform_indices = @transform_0, window_bounds = array<i64: 256, 32>}, {pipeline_mode = #tpu.pipeline_mode<synchronous>, transform_indices = @transform_1, window_bounds = array<i64: 256, 256>}, {pipeline_mode = #tpu.pipeline_mode<synchronous>, transform_indices = @transform_2, window_bounds = array<i64: 8, 256>}, {pipeline_mode = #tpu.pipeline_mode<synchronous>, transform_indices = @transform_3, window_bounds = array<i64: 1, 32>}, {pipeline_mode = #tpu.pipeline_mode<synchronous>, transform_indices = @transform_4, window_bounds = array<i64: 32, 32>}, {pipeline_mode = #tpu.pipeline_mode<synchronous>, transform_indices = @transform_5, window_bounds = array<i64: 1, 32>}, {pipeline_mode = #tpu.pipeline_mode<synchronous>, transform_indices = @transform_6, window_bounds = array<i64: 8, 32>}]} {
    %c2_i32 = arith.constant 2 : i32
    %0 = arith.cmpi eq, %arg0, %c2_i32 : i32
    %c256_i32 = arith.constant 256 : i32
    %1 = arith.muli %arg1, %c256_i32 : i32
    %2 = tpu.assume_multiple %1, 256 : i32
    %c0 = arith.constant 0 : index
    %c0_0 = arith.constant 0 : index
    %3 = vector.load %arg3[%c0, %c0_0] : memref<256x256xbf16, #tpu.memory_space<vmem>>, vector<256x256xbf16>
    %c0_i32 = arith.constant 0 : i32
    %4 = arith.cmpi eq, %arg0, %c0_i32 : i32
    %5 = arith.extui %4 : i1 to i32
    %c0_i32_1 = arith.constant 0 : i32
    %6 = arith.cmpi ne, %5, %c0_i32_1 : i32
    %7 = scf.if %6 -> (vector<256x32xf32>) {
      %c0_11 = arith.constant 0 : index
      %c0_12 = arith.constant 0 : index
      %32 = vector.load %arg2[%c0_11, %c0_12] : memref<256x32xbf16, #tpu.memory_space<vmem>>, vector<256x32xbf16>
      %cst_13 = arith.constant dense<0.000000e+00> : vector<256x32xf32>
      %33 = tpu.matmul %3, %32, %cst_13 {dimension_numbers = #tpu.dot_dimension_numbers<[1], [0], [0], [1], [0, 0, 1, 1], [], []>} : vector<256x256xbf16>, vector<256x32xbf16>, vector<256x32xf32> -> vector<256x32xf32>
      %c0_14 = arith.constant 0 : index
      %c0_15 = arith.constant 0 : index
      %34 = vector.load %arg5[%c0_14, %c0_15] : memref<1x32xf32, #tpu.memory_space<vmem>>, vector<1x32xf32>
      %35 = vector.broadcast %34 : vector<1x32xf32> to vector<256x32xf32>
      %36 = arith.addf %33, %35 : vector<256x32xf32>
      scf.yield %36 : vector<256x32xf32>
    } else {
      %c1_i32_11 = arith.constant 1 : i32
      %32 = arith.addi %arg0, %c1_i32_11 : i32
      %c2_i32_12 = arith.constant 2 : i32
      %c0_i32_13 = arith.constant 0 : i32
      %33 = arith.cmpi eq, %c2_i32_12, %c0_i32_13 : i32
      %c1_i32_14 = arith.constant 1 : i32
      %34 = arith.select %33, %c1_i32_14, %c2_i32_12 : i32
      %35 = arith.remsi %32, %34 : i32
      %c0_i32_15 = arith.constant 0 : i32
      %36 = arith.cmpi ne, %35, %c0_i32_15 : i32
      %c0_i32_16 = arith.constant 0 : i32
      %37 = arith.cmpi slt, %35, %c0_i32_16 : i32
      %c0_i32_17 = arith.constant 0 : i32
      %38 = arith.cmpi slt, %34, %c0_i32_17 : i32
      %39 = arith.xori %37, %38 : i1
      %40 = arith.andi %39, %36 : i1
      %41 = arith.addi %35, %34 : i32
      %42 = arith.select %40, %41, %35 : i32
      %43 = arith.index_cast %42 : i32 to index
      %c0_18 = arith.constant 0 : index
      %c0_19 = arith.constant 0 : index
      %44 = vector.load %arg9[%43, %c0_18, %c0_19] : memref<2x256x32xbf16, #tpu.memory_space<vmem>>, vector<1x256x32xbf16>
      %45 = vector.shape_cast %44 : vector<1x256x32xbf16> to vector<256x32xbf16>
      %cst_20 = arith.constant dense<0.000000e+00> : vector<256x32xf32>
      %46 = tpu.matmul %3, %45, %cst_20 {dimension_numbers = #tpu.dot_dimension_numbers<[1], [0], [0], [1], [0, 0, 1, 1], [], []>} : vector<256x256xbf16>, vector<256x32xbf16>, vector<256x32xf32> -> vector<256x32xf32>
      %47 = arith.truncf %46 : vector<256x32xf32> to vector<256x32xbf16>
      %c0_21 = arith.constant 0 : index
      %c0_22 = arith.constant 0 : index
      %48 = vector.load %arg6[%c0_21, %c0_22] : memref<32x32xbf16, #tpu.memory_space<vmem>>, vector<32x32xbf16>
      %cst_23 = arith.constant dense<0.000000e+00> : vector<256x32xf32>
      %49 = tpu.matmul %47, %48, %cst_23 {dimension_numbers = #tpu.dot_dimension_numbers<[1], [0], [0], [1], [0, 0, 1, 1], [], []>} : vector<256x32xbf16>, vector<32x32xbf16>, vector<256x32xf32> -> vector<256x32xf32>
      %c0_24 = arith.constant 0 : index
      %c0_25 = arith.constant 0 : index
      %50 = vector.load %arg7[%c0_24, %c0_25] : memref<1x32xf32, #tpu.memory_space<vmem>>, vector<1x32xf32>
      %51 = vector.broadcast %50 : vector<1x32xf32> to vector<256x32xf32>
      %52 = arith.addf %49, %51 : vector<256x32xf32>
      scf.yield %52 : vector<256x32xf32>
    }
    %cst = arith.constant 0.000000e+00 : f32
    %8 = vector.broadcast %cst : f32 to vector<256x32xf32>
    %9 = arith.maximumf %7, %8 : vector<256x32xf32>
    %10 = arith.truncf %9 : vector<256x32xf32> to vector<256x32xbf16>
    %c2_i32_2 = arith.constant 2 : i32
    %c0_i32_3 = arith.constant 0 : i32
    %11 = arith.cmpi eq, %c2_i32_2, %c0_i32_3 : i32
    %c1_i32 = arith.constant 1 : i32
    %12 = arith.select %11, %c1_i32, %c2_i32_2 : i32
    %13 = arith.remsi %arg0, %12 : i32
    %c0_i32_4 = arith.constant 0 : i32
    %14 = arith.cmpi ne, %13, %c0_i32_4 : i32
    %c0_i32_5 = arith.constant 0 : i32
    %15 = arith.cmpi slt, %13, %c0_i32_5 : i32
    %c0_i32_6 = arith.constant 0 : i32
    %16 = arith.cmpi slt, %12, %c0_i32_6 : i32
    %17 = arith.xori %15, %16 : i1
    %18 = arith.andi %17, %14 : i1
    %19 = arith.addi %13, %12 : i32
    %20 = arith.select %18, %19, %13 : i32
    %21 = arith.index_cast %20 : i32 to index
    %22 = arith.index_cast %2 : i32 to index
    %c0_7 = arith.constant 0 : index
    %23 = vector.load %arg9[%21, %22, %c0_7] : memref<2x256x32xbf16, #tpu.memory_space<vmem>>, vector<1x256x32xbf16>
    %24 = vector.shape_cast %23 : vector<1x256x32xbf16> to vector<256x32xbf16>
    %25 = vector.shape_cast %10 : vector<256x32xbf16> to vector<1x256x32xbf16>
    tpu.vector_store %arg9[%21, %22, %c0_7], %25 {strides = array<i32>} : memref<2x256x32xbf16, #tpu.memory_space<vmem>>, vector<1x256x32xbf16>,
    %c0_i32_8 = arith.constant 0 : i32
    %26 = arith.cmpi eq, %arg1, %c0_i32_8 : i32
    %27 = arith.andi %0, %26 : i1
    %28 = arith.extui %27 : i1 to i32
    %c0_i32_9 = arith.constant 0 : i32
    %29 = arith.cmpi ne, %28, %c0_i32_9 : i32
    scf.if %29 {
      %cst_11 = arith.constant 0.000000e+00 : f32
      %32 = vector.broadcast %cst_11 : f32 to vector<8x32xf32>
      %c0_12 = arith.constant 0 : index
      %c0_13 = arith.constant 0 : index
      %33 = vector.load %arg8[%c0_12, %c0_13] : memref<8x32xf32, #tpu.memory_space<vmem>>, vector<8x32xf32>
      tpu.vector_store %arg8[%c0_12, %c0_13], %32 {strides = array<i32>} : memref<8x32xf32, #tpu.memory_space<vmem>>, vector<8x32xf32>,
    } else {
    }
    %30 = arith.extui %0 : i1 to i32
    %c0_i32_10 = arith.constant 0 : i32
    %31 = arith.cmpi ne, %30, %c0_i32_10 : i32
    scf.if %31 {
      %c0_11 = arith.constant 0 : index
      %c0_12 = arith.constant 0 : index
      %32 = vector.load %arg8[%c0_11, %c0_12] : memref<8x32xf32, #tpu.memory_space<vmem>>, vector<8x32xf32>
      %c0_13 = arith.constant 0 : index
      %c0_14 = arith.constant 0 : index
      %33 = vector.load %arg4[%c0_13, %c0_14] : memref<8x256xbf16, #tpu.memory_space<vmem>>, vector<8x256xbf16>
      %cst_15 = arith.constant dense<0.000000e+00> : vector<8x32xf32>
      %34 = tpu.matmul %33, %10, %cst_15 {dimension_numbers = #tpu.dot_dimension_numbers<[1], [0], [0], [1], [0, 0, 1, 1], [], []>} : vector<8x256xbf16>, vector<256x32xbf16>, vector<8x32xf32> -> vector<8x32xf32>
      %35 = arith.addf %32, %34 : vector<8x32xf32>
      %c0_16 = arith.constant 0 : index
      %c0_17 = arith.constant 0 : index
      %36 = vector.load %arg8[%c0_16, %c0_17] : memref<8x32xf32, #tpu.memory_space<vmem>>, vector<8x32xf32>
      tpu.vector_store %arg8[%c0_16, %c0_17], %35 {strides = array<i32>} : memref<8x32xf32, #tpu.memory_space<vmem>>, vector<8x32xf32>,
    } else {
    }
    return
  }
  func.func @transform_0(%arg0: i32, %arg1: i32) -> (i32, i32) {
    %c0_i32 = arith.constant 0 : i32
    %c0_i32_0 = arith.constant 0 : i32
    %c0_i32_1 = arith.constant 0 : i32
    return %c0_i32, %c0_i32_0 : i32, i32
  }
  func.func @transform_1(%arg0: i32, %arg1: i32) -> (i32, i32) {
    %c0_i32 = arith.constant 0 : i32
    %c0_i32_0 = arith.constant 0 : i32
    %c0_i32_1 = arith.constant 0 : i32
    return %c0_i32, %c0_i32_0 : i32, i32
  }
  func.func @transform_2(%arg0: i32, %arg1: i32) -> (i32, i32) {
    %c0_i32 = arith.constant 0 : i32
    %c0_i32_0 = arith.constant 0 : i32
    %c0_i32_1 = arith.constant 0 : i32
    return %c0_i32, %c0_i32_0 : i32, i32
  }
  func.func @transform_3(%arg0: i32, %arg1: i32) -> (i32, i32) {
    %c0_i32 = arith.constant 0 : i32
    %c0_i32_0 = arith.constant 0 : i32
    %c0_i32_1 = arith.constant 0 : i32
    return %c0_i32, %c0_i32_0 : i32, i32
  }
  func.func @transform_4(%arg0: i32, %arg1: i32) -> (i32, i32) {
    %c0_i32 = arith.constant 0 : i32
    %c0_i32_0 = arith.constant 0 : i32
    %c0_i32_1 = arith.constant 0 : i32
    return %c0_i32, %c0_i32_0 : i32, i32
  }
  func.func @transform_5(%arg0: i32, %arg1: i32) -> (i32, i32) {
    %c0_i32 = arith.constant 0 : i32
    %c0_i32_0 = arith.constant 0 : i32
    %c0_i32_1 = arith.constant 0 : i32
    return %c0_i32, %c0_i32_0 : i32, i32
  }
  func.func @transform_6(%arg0: i32, %arg1: i32) -> (i32, i32) {
    %c0_i32 = arith.constant 0 : i32
    %c0_i32_0 = arith.constant 0 : i32
    %c0_i32_1 = arith.constant 0 : i32
    return %c0_i32, %c0_i32_0 : i32, i32
  }
}

</mosaic_0001>

<bundles_post_ra>
// kernel: tpu_custom_call.1
= control target key start
LH: loop header
LB: loop body
LE: loop exit
PB: predicated region body
PF: predicated region fallthrough
CT: control target
= control target key end

     0   :  { %11 = vsyncpa [#allocation4], 0  ;;  %s4287_s0 = inlined_call_operand.vmem [shape: bf16[256,32], index: 0, kind: input, shape index: {}]   ;;  %s4288_s1 = inlined_call_operand.hbm [shape: bf16[256,256], index: 1, kind: input, shape index: {}]   ;;  %s4289_s2 = inlined_call_operand.vmem [shape: bf16[8,256], index: 2, kind: input, shape index: {}]   ;;  %s4290_s3 = inlined_call_operand.vmem [shape: f32[1,32], index: 3, kind: input, shape index: {}]   ;;  %s4291_s4 = inlined_call_operand.vmem [shape: bf16[32,32], index: 4, kind: input, shape index: {}]   ;;  %s4292_s5 = inlined_call_operand.vmem [shape: f32[1,32], index: 5, kind: input, shape index: {}]   ;;  %s4293_s6 = inlined_call_operand.hbm [shape: f32[8,32], index: 6, kind: output, shape index: {}]  }
   0x1   :  { %12 = vsyncpa [#allocation5], 0  ;;  %s3287_s21 = smov 0   ;;  %s3289_s22 = smov 0  }
   0x2   :  { %s3291_s23 = smov 0  }
   0x3 LB: > { %s1613_s24 = sadd.s32 4294967295, %s2989_s23   ;;  %s30_s25 = sadd.s32 1, %s2985_s22  ;;  %s2989_s23 = sphi %s3291_s23, %s18_s23   ;;  %s2985_s22 = sphi %s3289_s22, %s4376_s22   ;;  %s2981_s21 = sphi %s3287_s21, %s4375_s21  }
   0x4   : > { %p32_p0 = scmp.ge.s32.totalorder %s30_s25, 3  ;;  %p1614_p1 = scmp.ge.s32.totalorder %s2989_s23, 1 }
   0x5   : > { %p182_p2 = scmp.lt.s32.totalorder %s2989_s23, 4  ;;  %p3314_p4 = scmp.eq.s32.totalorder %s1613_s24, 0 }
   0x6   : > { %s4378_s25 = smov (%p32_p0, %s30_s25), 0  ;;  %s3247_s28 = smov [#allocation3]  }
   0x7   : > { %p3308_p3 = pnand %p1614_p1, %p182_p2  ;;  %s197_s29 = sshll.u32 %s3247_s28, 4  ;;  %s198_s29 = int_to_ptr.vmem [resolvable:$true] %s197_s29 }
   0x8   : > { %s4326_s27 = scalar_select %p3314_p4, 1, 0 }
   0x9   : > { %s4325_s26 = scalar_select %p3308_p3, 1, 0 }
   0xa   : > { %p2080_p5 = pneg %p3308_p3  ;;  %s2649_s9 = scalar_lea.hbm %s4288_s1, 4096 }
   0xb   : > { %p2650_p7 = scmp.ne.s32.totalorder %s4288_s1, %s2649_s9  ;;  %p2656_p11 = scmp.lt.u32.totalorder %s2649_s9, %s4288_s1 }
   0xc   : > { %p3322_p6 = pnand %p3314_p4, %p2080_p5 }
   0xe   : > { %p2651_p8 = pneg %p3322_p6 }
  0x10   : > { %p2652_p9 = pnand %p2651_p8, %p2650_p7 }
  0x12   : > { %p2653_p10 = pneg %p2652_p9 }
  0x14   : > { %p2658_p12 = pnand %p2656_p11, %p2653_p10 }
  0x16   : > { %2661 = shalt.err (!%p2658_p12)
}
  0x17   : > { %s2662_s14 = scalar_lea.vmem %s198_s29, 4096  ;;  %p2670_p2 = scmp.lt.s32.totalorder %s198_s29, %s198_s29 }
  0x18   : > { %p2663_p13 = scmp.ne.s32.totalorder %s198_s29, %s2662_s14  ;;  %p2671_p5 = scmp.lt.s32.totalorder %s2662_s14, %s2662_s14 }
  0x1a   : > { %p2665_p0 = pnand %p2663_p13, %p2651_p8  ;;  %p2672_p4 = por %p2671_p5, %p2670_p2 }
  0x1c   : > { %p2666_p1 = pneg %p2665_p0 }
  0x1e   : > { %p2673_p3 = pnand %p2672_p4, %p2666_p1 }
  0x20   : > { %2676 = shalt.err (!%p2673_p3)
}
  0x21   : > { %s3248_s15 = smov 128   ;;  %s3249_s16 = smov 8  }
  0x22   : > { %2083 = dma.hbm_to_vmem [thread:$0]  (!%p3322_p6), %s4288_s1, 4096, %s198_s29, [#allocation4], %s3248_s15, %s3248_s15, %s3249_s16  }
  0x23   : > { %p4328_p7 = scmp.ne.s32.totalorder %s4325_s26, 0 }
  0x25   : > { %225 = sbr.rel (%p4328_p7) target bundleno = 1249 (0x4e1), region = 44 }
  0x2c   : > { %p4329_p9 = scmp.ne.s32.totalorder %s4326_s27, 0 }
  0x2e   : > { %2972 = dma.done.wait (%p4329_p9), [#allocation4], 4096  }
  0x2f   : > { %2974 = vsyncadd (%p4329_p9), [#allocation4], 4294963200  ;;  %p246_p3 = scmp.eq.s32.totalorder %s2981_s21, 2  ;;  %p280_p4 = scmp.eq.s32.totalorder %s2981_s21, 0  ;;  %v3350_v0 = vld [vmem:[#allocation3] sm:$0xff]  ;;  %v3352_v1 = vld [vmem:[#allocation3 + $0x8] sm:$0xff] }
  0x30   : > { %v3354_v2 = vld [vmem:[#allocation3 + $0x10] sm:$0xff]  ;;  %v3356_v3 = vld [vmem:[#allocation3 + $0x18] sm:$0xff]  ;;  %v3358_v4 = vld [vmem:[#allocation3 + $0x20] sm:$0xff]  ;;  %p1618_p6 = scmp.ne.s32.totalorder %s2981_s21, 0  ;;  %v3415_v32 = vmov 0   ;;  %v3417_v33 = vmov 0  }
  0x31   : > { %v3360_v5 = vld [vmem:[#allocation3 + $0x28] sm:$0xff]  ;;  %v3362_v6 = vld [vmem:[#allocation3 + $0x30] sm:$0xff]  ;;  %v3364_v7 = vld [vmem:[#allocation3 + $0x38] sm:$0xff]  ;;  %v3419_v34 = vmov 0   ;;  %v3421_v35 = vmov 0   ;;  %v3423_v36 = vmov 0  }
  0x32   : > { %v3366_v8 = vld [vmem:[#allocation3 + $0x40] sm:$0xff]  ;;  %v3368_v9 = vld [vmem:[#allocation3 + $0x48] sm:$0xff]  ;;  %v3370_v10 = vld [vmem:[#allocation3 + $0x50] sm:$0xff]  ;;  %v3425_v37 = vmov 0   ;;  %v3427_v38 = vmov 0   ;;  %v3429_v39 = vmov 0  }
  0x33   : > { %v3372_v11 = vld [vmem:[#allocation3 + $0x58] sm:$0xff]  ;;  %v3374_v12 = vld [vmem:[#allocation3 + $0x60] sm:$0xff]  ;;  %v3376_v13 = vld [vmem:[#allocation3 + $0x68] sm:$0xff]  ;;  %v3431_v40 = vmov 0   ;;  %v3433_v41 = vmov 0   ;;  %v3435_v42 = vmov 0  }
  0x34   : > { %4330 = vst [vmem:[#allocation9_spill] sm:$0xff] %v3374_v12  ;;  %v3378_v14 = vld [vmem:[#allocation3 + $0x70] sm:$0xff]  ;;  %v3380_v15 = vld [vmem:[#allocation3 + $0x78] sm:$0xff]  ;;  %v3382_v16 = vld [vmem:[#allocation3 + $0x80] sm:$0xff]  ;;  %v3437_v43 = vmov 0   ;;  %v3439_v44 = vmov 0   ;;  %v1620_v40 = vcombine.low (!%p1618_p6), %v3350_v0, %v3352_v1  ;;  %v1623_v42 = vcombine.high (!%p1618_p6), %v3354_v2, %v3356_v3 }
  0x35   : > { %4331 = vst [vmem:[#allocation10_spill] sm:$0xff] %v3378_v14  ;;  %4332 = vst [vmem:[#allocation11_spill] sm:$0xff] %v3380_v15  ;;  %v3384_v17 = vld [vmem:[#allocation3 + $0x88] sm:$0xff]  ;;  %v3386_v18 = vld [vmem:[#allocation3 + $0x90] sm:$0xff]  ;;  %v3441_v45 = vmov 0   ;;  %v3443_v46 = vmov 0   ;;  %v1621_v14 = vcombine.high (!%p1618_p6), %v3350_v0, %v3352_v1  ;;  %v1622_v44 = vcombine.low (!%p1618_p6), %v3354_v2, %v3356_v3 }
  0x36   : > { %4333 = vst [vmem:[#allocation12_spill] sm:$0xff] %v3382_v16  ;;  %4334 = vst [vmem:[#allocation13_spill] sm:$0xff] %v3384_v17  ;;  %v3388_v19 = vld [vmem:[#allocation3 + $0x98] sm:$0xff]  ;;  %v3390_v20 = vld [vmem:[#allocation3 + $0xa0] sm:$0xff]  ;;  %v3445_v47 = vmov 0   ;;  %v3447_v48 = vmov 0   ;;  %v1637_v15 = vcombine.high (!%p1618_p6), %v3382_v16, %v3384_v17  ;;  %v1636_v41 = vcombine.low (!%p1618_p6), %v3382_v16, %v3384_v17 }
  0x37   : > { %4335 = vst [vmem:[#allocation14_spill] sm:$0xff] %v3386_v18  ;;  %4336 = vst [vmem:[#allocation15_spill] sm:$0xff] %v3388_v19  ;;  %v3392_v21 = vld [vmem:[#allocation3 + $0xa8] sm:$0xff]  ;;  %v3394_v22 = vld [vmem:[#allocation3 + $0xb0] sm:$0xff]  ;;  %v3449_v49 = vmov 0   ;;  %v3451_v50 = vmov 0   ;;  %611 = vmatprep.mubr.bf16.mxu0 (!%p1618_p6), %v1621_v14  ;;  %v1639_v43 = vcombine.high (!%p1618_p6), %v3386_v18, %v3388_v19  ;;  %v1638_v45 = vcombine.low (!%p1618_p6), %v3386_v18, %v3388_v19 }
  0x38   : > { %4337 = vst [vmem:[#allocation16_spill] sm:$0xff] %v3390_v20  ;;  %4338 = vst [vmem:[#allocation17_spill] sm:$0xff] %v3392_v21  ;;  %v3396_v23 = vld [vmem:[#allocation3 + $0xb8] sm:$0xff]  ;;  %v3398_v24 = vld [vmem:[#allocation3 + $0xc0] sm:$0xff]  ;;  %v3453_v51 = vmov 0   ;;  %v3455_v52 = vmov 0   ;;  %675 = vmatprep.mubr.bf16.mxu1 (!%p1618_p6), %v1637_v15  ;;  %v1625_v46 = vcombine.high (!%p1618_p6), %v3358_v4, %v3360_v5  ;;  %v1641_v47 = vcombine.high (!%p1618_p6), %v3390_v20, %v3392_v21 }
  0x39   : > { %4339 = vst [vmem:[#allocation18_spill] sm:$0xff] %v3394_v22  ;;  %4340 = vst [vmem:[#allocation19_spill] sm:$0xff] %v3396_v23  ;;  %v3400_v25 = vld [vmem:[#allocation3 + $0xc8] sm:$0xff]  ;;  %v3402_v26 = vld [vmem:[#allocation3 + $0xd0] sm:$0xff]  ;;  %v3457_v53 = vmov 0   ;;  %v3459_v54 = vmov 0   ;;  %v1624_v48 = vcombine.low (!%p1618_p6), %v3358_v4, %v3360_v5  ;;  %v1640_v49 = vcombine.low (!%p1618_p6), %v3390_v20, %v3392_v21 }
  0x3a   : > { %v3404_v27 = vld [vmem:[#allocation3 + $0xd8] sm:$0xff]  ;;  %v3406_v28 = vld [vmem:[#allocation3 + $0xe0] sm:$0xff]  ;;  %v3408_v29 = vld [vmem:[#allocation3 + $0xe8] sm:$0xff]  ;;  %v3461_v55 = vmov 0   ;;  %v3463_v56 = vmov 0   ;;  %v3465_v57 = vmov 0   ;;  %v1627_v50 = vcombine.high (!%p1618_p6), %v3362_v6, %v3364_v7 }
  0x3b   : > { %4341 = vst [vmem:[#allocation20_spill] sm:$0xff] %v3406_v28  ;;  %v3410_v30 = vld [vmem:[#allocation3 + $0xf0] sm:$0xff]  ;;  %v3412_v31 = vld [vmem:[#allocation3 + $0xf8] sm:$0xff]  ;;  %v3467_v58 = vmov 0   ;;  %v3469_v59 = vmov 0   ;;  %v3471_v60 = vmov 0   ;;  %v1643_v51 = vcombine.high (!%p1618_p6), %v3394_v22, %v3396_v23 }
  0x3c   : > { %4342 = vst [vmem:[#allocation21_spill] sm:$0xff] %v3410_v30  ;;  %4343 = vst [vmem:[#allocation22_spill] sm:$0xff] %v3412_v31  ;;  %v3473_v61 = vmov 0   ;;  %v3475_v62 = vmov 0   ;;  %v3477_v63 = vmov 0   ;;  %283 = sbr.rel (%p1618_p6) target bundleno = 369 (0x171), region = 52  ;;  %v1626_v52 = vcombine.low (!%p1618_p6), %v3362_v6, %v3364_v7 }
  0x3d   : > { %v2629_v30 = vld [vmem:[%s4287_s0 + $0x40] sm:$0xff] (!%p1618_p6)   ;;  %v2631_v28 = vld [vmem:[%s4287_s0 + $0x48] sm:$0xff] (!%p1618_p6)   ;;  %v2633_v33 = vld [vmem:[%s4287_s0 + $0x50] sm:$0xff] (!%p1618_p6)   ;;  %v1642_v53 = vcombine.low (!%p1618_p6), %v3394_v22, %v3396_v23  ;;  %v1629_v54 = vcombine.high (!%p1618_p6), %v3366_v8, %v3368_v9  ;;  %v1645_v55 = vcombine.high (!%p1618_p6), %v3398_v24, %v3400_v25  ;;  %v1628_v56 = vcombine.low (!%p1618_p6), %v3366_v8, %v3368_v9 }
  0x3e   : > { %v2630_v31 = vld [vmem:[%s4287_s0] sm:$0xff] (!%p1618_p6)   ;;  %1740 = vmatprep.subr.bf16.mxu0 (!%p1618_p6), %v2629_v30  ;;  %2040 = vmatprep.subr.bf16.mxu1 (!%p1618_p6), %v2629_v30  ;;  %v2632_v32 = vld [vmem:[%s4287_s0 + $0x8] sm:$0xff] (!%p1618_p6)   ;;  %v2634_v30 = vld [vmem:[%s4287_s0 + $0x10] sm:$0xff] (!%p1618_p6)   ;;  %v1644_v57 = vcombine.low (!%p1618_p6), %v3398_v24, %v3400_v25  ;;  %v1631_v58 = vcombine.high (!%p1618_p6), %v3370_v10, %v3372_v11  ;;  %v1647_v59 = vcombine.high (!%p1618_p6), %v3402_v26, %v3404_v27 }
  0x3f   : > { %1741 = vmatpush3.bf16.msra.mxu0 (!%p1618_p6), %v2630_v31  ;;  %2048 = vmatpush3.bf16.msra.mxu1 (!%p1618_p6), %v2630_v31  ;;  %v2635_v31 = vld [vmem:[%s4287_s0 + $0x58] sm:$0xff] (!%p1618_p6)   ;;  %v2637_v14 = vld [vmem:[%s4287_s0 + $0x60] sm:$0xff] (!%p1618_p6)   ;;  %v2639_v34 = vld [vmem:[%s4287_s0 + $0x68] sm:$0xff] (!%p1618_p6)   ;;  %v1630_v60 = vcombine.low (!%p1618_p6), %v3370_v10, %v3372_v11  ;;  %v1646_v61 = vcombine.low (!%p1618_p6), %v3402_v26, %v3404_v27  ;;  %v1633_v62 = vcombine.high (!%p1618_p6), %v3374_v12, %v3376_v13 }
  0x40   : > { %1742 = vmatprep.subr.bf16.mxu0 (!%p1618_p6), %v2631_v28  ;;  %2041 = vmatprep.subr.bf16.mxu1 (!%p1618_p6), %v2631_v28  ;;  %v2636_v28 = vld [vmem:[%s4287_s0 + $0x18] sm:$0xff] (!%p1618_p6)   ;;  %v2638_v15 = vld [vmem:[%s4287_s0 + $0x20] sm:$0xff] (!%p1618_p6)   ;;  %v2640_v35 = vld [vmem:[%s4287_s0 + $0x28] sm:$0xff] (!%p1618_p6)  }
  0x41   : > { %v2641_v36 = vld [vmem:[%s4287_s0 + $0x70] sm:$0xff] (!%p1618_p6)   ;;  %v2643_v38 = vld [vmem:[%s4287_s0 + $0x78] sm:$0xff] (!%p1618_p6)  }
  0x42   : > { %v2642_v37 = vld [vmem:[%s4287_s0 + $0x30] sm:$0xff] (!%p1618_p6)   ;;  %v2644_v39 = vld [vmem:[%s4287_s0 + $0x38] sm:$0xff] (!%p1618_p6)   ;;  %v4344_v63 = vld [vmem:[#allocation20_spill] sm:$0xff] (!%p1618_p6) }
  0x43   : > { %1743 = vmatpush3.bf16.msra.mxu0 %v2632_v32  ;;  %2049 = vmatpush3.bf16.msra.mxu1 %v2632_v32  ;;  %v1649_v32 = vcombine.high %v4344_v63, %v3408_v29 }
  0x44   : > { %1744 = vmatprep.subr.bf16.mxu0 %v2633_v33  ;;  %2042 = vmatprep.subr.bf16.mxu1 %v2633_v33  ;;  %v1632_v33 = vcombine.low %v3374_v12, %v3376_v13 }
  0x47   : > { %1745 = vmatpush3.bf16.msra.mxu0 %v2634_v30  ;;  %2050 = vmatpush3.bf16.msra.mxu1 %v2634_v30  ;;  %v1648_v30 = vcombine.low %v4344_v63, %v3408_v29 }
  0x48   : > { %1746 = vmatprep.subr.bf16.mxu0 %v2635_v31  ;;  %2043 = vmatprep.subr.bf16.mxu1 %v2635_v31  ;;  %v4345_v31 = vld [vmem:[#allocation11_spill] sm:$0xff] }
  0x4b   : > { %1747 = vmatpush3.bf16.msra.mxu0 %v2636_v28  ;;  %2051 = vmatpush3.bf16.msra.mxu1 %v2636_v28  ;;  %v4346_v28 = vld [vmem:[#allocation10_spill] sm:$0xff] }
  0x4c   : > { %1748 = vmatprep.subr.bf16.mxu0 %v2637_v14  ;;  %2044 = vmatprep.subr.bf16.mxu1 %v2637_v14  ;;  %v1635_v14 = vcombine.high %v4346_v28, %v4345_v31 }
  0x4f   : > { %1749 = vmatpush3.bf16.msra.mxu0 %v2638_v15  ;;  %2052 = vmatpush3.bf16.msra.mxu1 %v2638_v15  ;;  %v4347_v15 = vld [vmem:[#allocation22_spill] sm:$0xff] }
  0x50   : > { %1750 = vmatprep.subr.bf16.mxu0 %v2639_v34  ;;  %2045 = vmatprep.subr.bf16.mxu1 %v2639_v34  ;;  %v4348_v34 = vld [vmem:[#allocation21_spill] sm:$0xff] }
  0x53   : > { %1751 = vmatpush3.bf16.msra.mxu0 %v2640_v35  ;;  %2053 = vmatpush3.bf16.msra.mxu1 %v2640_v35  ;;  %v1651_v35 = vcombine.high %v4348_v34, %v4347_v15 }
  0x54   : > { %1752 = vmatprep.subr.bf16.mxu0 %v2641_v36  ;;  %2046 = vmatprep.subr.bf16.mxu1 %v2641_v36  ;;  %v1634_v36 = vcombine.low %v4346_v28, %v4345_v31 }
  0x57   : > { %1753 = vmatpush3.bf16.msra.mxu0 %v2642_v37  ;;  %2054 = vmatpush3.bf16.msra.mxu1 %v2642_v37  ;;  %v1650_v37 = vcombine.low %v4348_v34, %v4347_v15 }
  0x58   : > { %1754 = vmatprep.subr.bf16.mxu0 %v2643_v38  ;;  %2047 = vmatprep.subr.bf16.mxu1 %v2643_v38 }
  0x5b   : > { %1755 = vmatpush3.bf16.msra.mxu0 %v2644_v39  ;;  %2055 = vmatpush3.bf16.msra.mxu1 %v2644_v39 }
  0x5e   : > { %612 = vmatmul.mubr.bf16.vlgmr.msra.gmra.mrb[0].mxu0 %v1620_v40  ;;  %676 = vmatmul.mubr.bf16.vlgmr.msra.gmra.mrb[0].mxu1 %v1636_v41  ;;  %v3596_v40 = vld [vmem:[%s4290_s3] ss:$0 sm:$0xff] }
  0x5f   : > { %619 = vmatprep.mubr.bf16.mxu0 %v1623_v42  ;;  %683 = vmatprep.mubr.bf16.mxu1 %v1639_v43 }
  0x66   : > { %620 = vmatmul.mubr.bf16.gmra.mrb[4].mxu0 %v1622_v44  ;;  %684 = vmatmul.mubr.bf16.gmra.mrb[4].mxu1 %v1638_v45 }
  0x67   : > { %627 = vmatprep.mubr.bf16.mxu0 %v1625_v46  ;;  %691 = vmatprep.mubr.bf16.mxu1 %v1641_v47 }
  0x6e   : > { %628 = vmatmul.mubr.bf16.gmra.mrb[8].mxu0 %v1624_v48  ;;  %692 = vmatmul.mubr.bf16.gmra.mrb[8].mxu1 %v1640_v49 }
  0x6f   : > { %635 = vmatprep.mubr.bf16.mxu0 %v1627_v50  ;;  %699 = vmatprep.mubr.bf16.mxu1 %v1643_v51 }
  0x76   : > { %636 = vmatmul.mubr.bf16.gmra.mrb[12].mxu0 %v1626_v52  ;;  %700 = vmatmul.mubr.bf16.gmra.mrb[12].mxu1 %v1642_v53 }
  0x77   : > { %643 = vmatprep.mubr.bf16.mxu0 %v1629_v54  ;;  %707 = vmatprep.mubr.bf16.mxu1 %v1645_v55 }
  0x7e   : > { %644 = vmatmul.mubr.bf16.gmra.mrb[16].mxu0 %v1628_v56  ;;  %708 = vmatmul.mubr.bf16.gmra.mrb[16].mxu1 %v1644_v57 }
  0x7f   : > { %651 = vmatprep.mubr.bf16.mxu0 %v1631_v58  ;;  %715 = vmatprep.mubr.bf16.mxu1 %v1647_v59 }
  0x86   : > { %652 = vmatmul.mubr.bf16.gmra.mrb[20].mxu0 %v1630_v60  ;;  %716 = vmatmul.mubr.bf16.gmra.mrb[20].mxu1 %v1646_v61 }
  0x87   : > { %659 = vmatprep.mubr.bf16.mxu0 %v1633_v62  ;;  %723 = vmatprep.mubr.bf16.mxu1 %v1649_v32 }
  0x8e   : > { %660 = vmatmul.mubr.bf16.gmra.mrb[24].mxu0 %v1632_v33  ;;  %724 = vmatmul.mubr.bf16.gmra.mrb[24].mxu1 %v1648_v30 }
  0x8f   : > { %667 = vmatprep.mubr.bf16.mxu0 %v1635_v14  ;;  %731 = vmatprep.mubr.bf16.mxu1 %v1651_v35 }
  0x96   : > { %668 = vmatmul.mubr.bf16.gmra.mrb[28].mxu0 %v1634_v36  ;;  %732 = vmatmul.mubr.bf16.gmra.mrb[28].mxu1 %v1650_v37 }
 0x131   : > { %v1756_v38 = vpop.f32.mrb[0].mxu0  ;;  %v1804_v39 = vpop.f32.mrb[0].mxu1 }
 0x132   : > { %v1757_v41 = vpop.f32.mrb[1].mxu0  ;;  %v1805_v42 = vpop.f32.mrb[1].mxu1 }
 0x133   : > { %v1758_v43 = vadd.f32 %v1757_v41, %v1756_v38  ;;  %v1806_v44 = vadd.f32 %v1805_v42, %v1804_v39  ;;  %v1759_v45 = vpop.f32.mrb[2].mxu0  ;;  %v1807_v46 = vpop.f32.mrb[2].mxu1 }
 0x134   : > { %v1760_v47 = vpop.f32.mrb[3].mxu0  ;;  %v1808_v48 = vpop.f32.mrb[3].mxu1 }
 0x135   : > { %v3599_v63 = vadd.f32 %v1758_v43, %v3596_v40   ;;  %v3602_v49 = vadd.f32 %v1806_v44, %v3596_v40   ;;  %v1761_v50 = vadd.f32 %v1760_v47, %v1759_v45  ;;  %v1809_v51 = vadd.f32 %v1808_v48, %v1807_v46 }
 0x137   : > { %v3605_v62 = vadd.f32 %v1761_v50, %v3596_v40   ;;  %v3608_v46 = vadd.f32 %v1809_v51, %v3596_v40  }
 0x139   : > { %v1762_v52 = vpop.f32.mrb[4].mxu0  ;;  %v1810_v53 = vpop.f32.mrb[4].mxu1 }
 0x13a   : > { %v1763_v54 = vpop.f32.mrb[5].mxu0  ;;  %v1811_v55 = vpop.f32.mrb[5].mxu1 }
 0x13b   : > { %v1764_v56 = vadd.f32 %v1763_v54, %v1762_v52  ;;  %v1812_v57 = vadd.f32 %v1811_v55, %v1810_v53  ;;  %v1765_v58 = vpop.f32.mrb[6].mxu0  ;;  %v1813_v59 = vpop.f32.mrb[6].mxu1 }
 0x13c   : > { %v1766_v60 = vpop.f32.mrb[7].mxu0  ;;  %v1814_v61 = vpop.f32.mrb[7].mxu1 }
 0x13d   : > { %v3611_v32 = vadd.f32 %v1764_v56, %v3596_v40   ;;  %v3614_v45 = vadd.f32 %v1812_v57, %v3596_v40   ;;  %v1767_v33 = vadd.f32 %v1766_v60, %v1765_v58  ;;  %v1815_v31 = vadd.f32 %v1814_v61, %v1813_v59 }
 0x13f   : > { %v4349_v30 = vmov %v3611_v32  ;;  %v3617_v60 = vadd.f32 %v1767_v33, %v3596_v40   ;;  %v3620_v44 = vadd.f32 %v1815_v31, %v3596_v40  }
 0x141   : > { %v1768_v28 = vpop.f32.mrb[8].mxu0  ;;  %v1816_v14 = vpop.f32.mrb[8].mxu1 }
 0x142   : > { %v1769_v15 = vpop.f32.mrb[9].mxu0  ;;  %v1817_v34 = vpop.f32.mrb[9].mxu1 }
 0x143   : > { %v1770_v35 = vadd.f32 %v1769_v15, %v1768_v28  ;;  %v1818_v36 = vadd.f32 %v1817_v34, %v1816_v14  ;;  %v1771_v37 = vpop.f32.mrb[10].mxu0  ;;  %v1819_v38 = vpop.f32.mrb[10].mxu1 }
 0x144   : > { %v1772_v39 = vpop.f32.mrb[11].mxu0  ;;  %v1820_v41 = vpop.f32.mrb[11].mxu1 }
 0x145   : > { %v3623_v59 = vadd.f32 %v1770_v35, %v3596_v40   ;;  %v3626_v43 = vadd.f32 %v1818_v36, %v3596_v40   ;;  %v1773_v42 = vadd.f32 %v1772_v39, %v1771_v37  ;;  %v1821_v47 = vadd.f32 %v1820_v41, %v1819_v38 }
 0x147   : > { %v3629_v58 = vadd.f32 %v1773_v42, %v3596_v40   ;;  %v3632_v42 = vadd.f32 %v1821_v47, %v3596_v40  }
 0x149   : > { %v1774_v48 = vpop.f32.mrb[12].mxu0  ;;  %v1822_v50 = vpop.f32.mrb[12].mxu1 }
 0x14a   : > { %v1775_v51 = vpop.f32.mrb[13].mxu0  ;;  %v1823_v52 = vpop.f32.mrb[13].mxu1 }
 0x14b   : > { %v1776_v53 = vadd.f32 %v1775_v51, %v1774_v48  ;;  %v1824_v54 = vadd.f32 %v1823_v52, %v1822_v50  ;;  %v1777_v55 = vpop.f32.mrb[14].mxu0  ;;  %v1825_v56 = vpop.f32.mrb[14].mxu1 }
 0x14c   : > { %v1778_v57 = vpop.f32.mrb[15].mxu0  ;;  %v1826_v61 = vpop.f32.mrb[15].mxu1 }
 0x14d   : > { %v3635_v32 = vadd.f32 %v1776_v53, %v3596_v40   ;;  %v3638_v41 = vadd.f32 %v1824_v54, %v3596_v40   ;;  %v1779_v33 = vadd.f32 %v1778_v57, %v1777_v55  ;;  %v1827_v28 = vadd.f32 %v1826_v61, %v1825_v56 }
 0x14f   : > { %v4350_v31 = vmov %v3635_v32  ;;  %v3641_v56 = vadd.f32 %v1779_v33, %v3596_v40   ;;  %v3644_v14 = vadd.f32 %v1827_v28, %v3596_v40  }
 0x151   : > { %v1780_v15 = vpop.f32.mrb[16].mxu0  ;;  %v1828_v34 = vpop.f32.mrb[16].mxu1 }
 0x152   : > { %v1781_v35 = vpop.f32.mrb[17].mxu0  ;;  %v1829_v36 = vpop.f32.mrb[17].mxu1 }
 0x153   : > { %v1782_v37 = vadd.f32 %v1781_v35, %v1780_v15  ;;  %v1830_v38 = vadd.f32 %v1829_v36, %v1828_v34  ;;  %v1783_v39 = vpop.f32.mrb[18].mxu0  ;;  %v1831_v47 = vpop.f32.mrb[18].mxu1 }
 0x154   : > { %v1784_v48 = vpop.f32.mrb[19].mxu0  ;;  %v1832_v50 = vpop.f32.mrb[19].mxu1 }
 0x155   : > { %v3647_v55 = vadd.f32 %v1782_v37, %v3596_v40   ;;  %v710_v51 = vadd.f32 %v1830_v38, %v3596_v40   ;;  %v1785_v52 = vadd.f32 %v1784_v48, %v1783_v39  ;;  %v1833_v53 = vadd.f32 %v1832_v50, %v1831_v47 }
 0x157   : > { %v3651_v54 = vadd.f32 %v1785_v52, %v3596_v40   ;;  %v713_v38 = vadd.f32 %v1833_v53, %v3596_v40  }
 0x159   : > { %v1786_v57 = vpop.f32.mrb[20].mxu0  ;;  %v1834_v61 = vpop.f32.mrb[20].mxu1 }
 0x15a   : > { %v1787_v32 = vpop.f32.mrb[21].mxu0  ;;  %v1835_v33 = vpop.f32.mrb[21].mxu1 }
 0x15b   : > { %v1788_v28 = vadd.f32 %v1787_v32, %v1786_v57  ;;  %v1836_v15 = vadd.f32 %v1835_v33, %v1834_v61  ;;  %v1789_v34 = vpop.f32.mrb[22].mxu0  ;;  %v1837_v35 = vpop.f32.mrb[22].mxu1 }
 0x15c   : > { %v1790_v36 = vpop.f32.mrb[23].mxu0  ;;  %v1838_v37 = vpop.f32.mrb[23].mxu1 }
 0x15d   : > { %v654_v53 = vadd.f32 %v1788_v28, %v3596_v40   ;;  %v718_v39 = vadd.f32 %v1836_v15, %v3596_v40   ;;  %v1791_v47 = vadd.f32 %v1790_v36, %v1789_v34  ;;  %v1839_v48 = vadd.f32 %v1838_v37, %v1837_v35 }
 0x15f   : > { %v657_v52 = vadd.f32 %v1791_v47, %v3596_v40   ;;  %v721_v36 = vadd.f32 %v1839_v48, %v3596_v40  }
 0x161   : > { %v1792_v50 = vpop.f32.mrb[24].mxu0  ;;  %v1840_v22 = vpop.f32.mrb[24].mxu1 }
 0x162   : > { %v1793_v23 = vpop.f32.mrb[25].mxu0  ;;  %v1841_v20 = vpop.f32.mrb[25].mxu1 }
 0x163   : > { %v1794_v57 = vadd.f32 %v1793_v23, %v1792_v50  ;;  %v1842_v61 = vadd.f32 %v1841_v20, %v1840_v22  ;;  %v1795_v32 = vpop.f32.mrb[26].mxu0  ;;  %v1843_v33 = vpop.f32.mrb[26].mxu1 }
 0x164   : > { %v1796_v21 = vpop.f32.mrb[27].mxu0  ;;  %v1844_v18 = vpop.f32.mrb[27].mxu1 }
 0x165   : > { %v662_v28 = vadd.f32 %v1794_v57, %v3596_v40   ;;  %v726_v35 = vadd.f32 %v1842_v61, %v3596_v40   ;;  %v1797_v15 = vadd.f32 %v1796_v21, %v1795_v32  ;;  %v1845_v34 = vadd.f32 %v1844_v18, %v1843_v33 }
 0x166   : > { %v4358_v61 = vmov %v4349_v30 }
 0x167   : > { %v665_v50 = vadd.f32 %v1797_v15, %v3596_v40   ;;  %v729_v34 = vadd.f32 %v1845_v34, %v3596_v40  }
 0x169   : > { %v1798_v37 = vpop.f32.mrb[28].mxu0  ;;  %v1846_v47 = vpop.f32.mrb[28].mxu1 }
 0x16a   : > { %v1799_v48 = vpop.f32.mrb[29].mxu0  ;;  %v1847_v19 = vpop.f32.mrb[29].mxu1 }
 0x16b   : > { %v1800_v23 = vadd.f32 %v1799_v48, %v1798_v37  ;;  %v1848_v20 = vadd.f32 %v1847_v19, %v1846_v47  ;;  %v1801_v22 = vpop.f32.mrb[30].mxu0  ;;  %v1849_v16 = vpop.f32.mrb[30].mxu1  ;;  %v4351_v37 = vmov %v718_v39  ;;  %v4352_v39 = vmov %v710_v51 }
 0x16c   : > { %v1802_v17 = vpop.f32.mrb[31].mxu0  ;;  %v1850_v12 = vpop.f32.mrb[31].mxu1  ;;  %v4354_v47 = vmov %v3602_v49  ;;  %v4356_v51 = vmov %v662_v28 }
 0x16d   : > { %v670_v57 = vadd.f32 %v1800_v23, %v3596_v40   ;;  %v734_v33 = vadd.f32 %v1848_v20, %v3596_v40   ;;  %v1803_v21 = vadd.f32 %v1802_v17, %v1801_v22  ;;  %v1851_v18 = vadd.f32 %v1850_v12, %v1849_v16 }
 0x16f   : > { %v673_v48 = vadd.f32 %v1803_v21, %v3596_v40   ;;  %v737_v32 = vadd.f32 %v1851_v18, %v3596_v40   ;;  %v4353_v40 = vmov %v3644_v14  ;;  %v4355_v49 = vmov %v670_v57 }
 0x170   : > { %v4357_v57 = vmov %v4350_v31 }
 0x171 PF: > { %774 = sbr.rel (%p280_p4) target bundleno = 954 (0x3ba), region = 56  ;;  %s775_s15 = sadd.s32 (!%p280_p4), 1, %s2981_s21  ;;  %v1674_v12 = vcombine.high (!%p280_p4), %v3350_v0, %v3352_v1  ;;  %v1698_v16 = vcombine.high (!%p280_p4), %v3398_v24, %v3400_v25  ;;  %v1673_v54 = vcombine.low (!%p280_p4), %v3350_v0, %v3352_v1  ;;  %v1697_v55 = vcombine.low (!%p280_p4), %v3398_v24, %v3400_v25  ;;  %v4359_v24 = vld [vmem:[#allocation20_spill] sm:$0xff] (!%p280_p4)  ;;  %v4363_v39 = vld [vmem:[#allocation11_spill] sm:$0xff] (!%p280_p4)  ;;  %v4364_v50 = vld [vmem:[#allocation10_spill] sm:$0xff] (!%p280_p4)  ;;  %v3117_v63 = vphi %v3477_v63, %v3599_v63   ;;  %v3113_v62 = vphi %v3475_v62, %v3605_v62   ;;  %v3109_v61 = vphi %v3473_v61, %v4358_v61   ;;  %v3105_v60 = vphi %v3471_v60, %v3617_v60   ;;  %v3101_v59 = vphi %v3469_v59, %v3623_v59   ;;  %v3097_v58 = vphi %v3467_v58, %v3629_v58   ;;  %v3093_v57 = vphi %v3465_v57, %v4357_v57   ;;  %v3089_v56 = vphi %v3463_v56, %v3641_v56   ;;  %v3085_v55 = vphi %v3461_v55, %v3647_v55   ;;  %v3081_v54 = vphi %v3459_v54, %v3651_v54   ;;  %v3077_v53 = vphi %v3457_v53, %v654_v53   ;;  %v3073_v52 = vphi %v3455_v52, %v657_v52   ;;  %v3069_v51 = vphi %v3453_v51, %v4356_v51   ;;  %v3065_v50 = vphi %v3451_v50, %v665_v50   ;;  %v3061_v49 = vphi %v3449_v49, %v4355_v49   ;;  %v3057_v48 = vphi %v3447_v48, %v673_v48   ;;  %v3053_v47 = vphi %v3445_v47, %v4354_v47   ;;  %v3049_v46 = vphi %v3443_v46, %v3608_v46   ;;  %v3045_v45 = vphi %v3441_v45, %v3614_v45   ;;  %v3041_v44 = vphi %v3439_v44, %v3620_v44   ;;  %v3037_v43 = vphi %v3437_v43, %v3626_v43   ;;  %v3033_v42 = vphi %v3435_v42, %v3632_v42   ;;  %v3029_v41 = vphi %v3433_v41, %v3638_v41   ;;  %v3025_v40 = vphi %v3431_v40, %v4353_v40   ;;  %v3021_v39 = vphi %v3429_v39, %v4352_v39   ;;  %v3017_v38 = vphi %v3427_v38, %v713_v38   ;;  %v3013_v37 = vphi %v3425_v37, %v4351_v37   ;;  %v3009_v36 = vphi %v3423_v36, %v721_v36   ;;  %v3005_v35 = vphi %v3421_v35, %v726_v35   ;;  %v3001_v34 = vphi %v3419_v34, %v729_v34   ;;  %v2997_v33 = vphi %v3417_v33, %v734_v33   ;;  %v2993_v32 = vphi %v3415_v32, %v737_v32  }
 0x172   : > { %p776_p8 = scmp.lt.s32.totalorder (!%p280_p4), %s775_s15, 0  ;;  %s777_s16 = ssub.s32 (!%p280_p4), 0, %s775_s15  ;;  %v1676_v56 = vcombine.high (!%p280_p4), %v3354_v2, %v3356_v3  ;;  %v1700_v31 = vcombine.high (!%p280_p4), %v3402_v26, %v3404_v27  ;;  %v1675_v14 = vcombine.low (!%p280_p4), %v3354_v2, %v3356_v3  ;;  %v1699_v0 = vcombine.low (!%p280_p4), %v3402_v26, %v3404_v27  ;;  %v4360_v3 = vld [vmem:[#allocation22_spill] sm:$0xff] (!%p280_p4)  ;;  %v4361_v26 = vld [vmem:[#allocation21_spill] sm:$0xff] (!%p280_p4)  ;;  %v4366_v32 = vld [vmem:[#allocation12_spill] sm:$0xff] (!%p280_p4) }
 0x173   : > { %s1668_s17 = smin.u32 (!%p280_p4), %s777_s16, %s775_s15  ;;  %999 = vmatprep.mubr.bf16.mxu0 (!%p280_p4), %v1674_v12  ;;  %1095 = vmatprep.mubr.bf16.mxu1 (!%p280_p4), %v1698_v16  ;;  %v1678_v1 = vcombine.high (!%p280_p4), %v3358_v4, %v3360_v5  ;;  %v1702_v25 = vcombine.high (!%p280_p4), %v4359_v24, %v3408_v29  ;;  %v1677_v38 = vcombine.low (!%p280_p4), %v3358_v4, %v3360_v5  ;;  %v4368_v28 = vld [vmem:[#allocation14_spill] sm:$0xff] (!%p280_p4)  ;;  %v4369_v34 = vld [vmem:[#allocation17_spill] sm:$0xff] (!%p280_p4)  ;;  %v4370_v37 = vld [vmem:[#allocation16_spill] sm:$0xff] (!%p280_p4)  ;;  %vm1167_vm0 = vcmask (!%p280_p4), 261120  }
 0x174   : > { %s779_s18 = sand.u32 (!%p280_p4), 1, %s1668_s17   ;;  %v1701_v51 = vcombine.low (!%p280_p4), %v4359_v24, %v3408_v29  ;;  %v1680_v2 = vcombine.high (!%p280_p4), %v3362_v6, %v3364_v7  ;;  %v1704_v27 = vcombine.high (!%p280_p4), %v4361_v26, %v4360_v3  ;;  %v1679_v52 = vcombine.low (!%p280_p4), %v3362_v6, %v3364_v7  ;;  %v4362_v7 = vld [vmem:[#allocation9_spill] sm:$0xff] (!%p280_p4)  ;;  %v4371_v23 = vld [vmem:[#allocation19_spill] sm:$0xff] (!%p280_p4)  ;;  %v4372_v20 = vld [vmem:[#allocation18_spill] sm:$0xff] (!%p280_p4) }
 0x175   : > { %s780_s19 = ssub.s32 (!%p280_p4), 0, %s779_s18  ;;  %v1703_v53 = vcombine.low (!%p280_p4), %v4361_v26, %v4360_v3  ;;  %v1682_v4 = vcombine.high (!%p280_p4), %v3366_v8, %v3368_v9  ;;  %v1681_v5 = vcombine.low (!%p280_p4), %v3366_v8, %v3368_v9  ;;  %v1684_v29 = vcombine.high (!%p280_p4), %v3370_v10, %v3372_v11  ;;  %v4365_v9 = vld [vmem:[#allocation13_spill] sm:$0xff] (!%p280_p4)  ;;  %v2645_v21 = vld [vmem:[%s4291_s4] sm:$0xff] (!%p280_p4)  }
 0x176   : > { %v1683_v6 = vcombine.low (!%p280_p4), %v3370_v10, %v3372_v11  ;;  %v1686_v35 = vcombine.high (!%p280_p4), %v4362_v7, %v3376_v13  ;;  %v1685_v36 = vcombine.low (!%p280_p4), %v4362_v7, %v3376_v13  ;;  %v1688_v61 = vcombine.high (!%p280_p4), %v4364_v50, %v4363_v39  ;;  %v4367_v11 = vld [vmem:[#allocation15_spill] sm:$0xff] (!%p280_p4)  ;;  %v2646_v18 = vld [vmem:[%s4291_s4 + $0x8] sm:$0xff] (!%p280_p4)  }
 0x177   : > { %v1687_v8 = vcombine.low (!%p280_p4), %v4364_v50, %v4363_v39  ;;  %v1690_v33 = vcombine.high (!%p280_p4), %v4366_v32, %v4365_v9  ;;  %v1689_v10 = vcombine.low (!%p280_p4), %v4366_v32, %v4365_v9  ;;  %v1692_v15 = vcombine.high (!%p280_p4), %v4368_v28, %v4367_v11 }
 0x178   : > { %s4380_s19 = smov (!%p776_p8, %s780_s19), %s779_s18  ;;  %v1691_v13 = vcombine.low %v4368_v28, %v4367_v11  ;;  %v1694_v47 = vcombine.high %v4370_v37, %v4369_v34  ;;  %v1693_v48 = vcombine.low %v4370_v37, %v4369_v34  ;;  %v1696_v22 = vcombine.high %v4372_v20, %v4371_v23 }
 0x179   : > { %p1670_p10 = scmp.lt.s32.totalorder %s4380_s19, 0  ;;  %s786_s20 = sadd.s32 2, %s4380_s19  ;;  %v1695_v57 = vcombine.low %v4372_v20, %v4371_v23 }
 0x17b   : > { %s4382_s20 = smov (!%p1670_p10, %s786_s20), %s4380_s19 }
 0x17c   : > { %s1737_s26 = sshll.u32 %s4382_s20, 7 }
 0x17d   : > { %s3851_s27 = scalar_lea.vmem [#allocation2], %s1737_s26 }
 0x17e   : > { %v799_v17 = vld [vmem:[%s3851_s27 + $0x40] sm:$0xff]  ;;  %v800_v62 = vld [vmem:[%s3851_s27 + $0x48] sm:$0xff]  ;;  %v801_v40 = vld [vmem:[%s3851_s27 + $0x50] sm:$0xff] }
 0x17f   : > { %v791_v19 = vld [vmem:[%s3851_s27] sm:$0xff]  ;;  %1852 = vmatprep.subr.bf16.mxu0 %v799_v17  ;;  %2056 = vmatprep.subr.bf16.mxu1 %v799_v17  ;;  %v792_v63 = vld [vmem:[%s3851_s27 + $0x8] sm:$0xff]  ;;  %v793_v43 = vld [vmem:[%s3851_s27 + $0x10] sm:$0xff] }
 0x180   : > { %1853 = vmatpush3.bf16.msra.mxu0 %v791_v19  ;;  %2064 = vmatpush3.bf16.msra.mxu1 %v791_v19  ;;  %v802_v44 = vld [vmem:[%s3851_s27 + $0x58] sm:$0xff]  ;;  %v803_v46 = vld [vmem:[%s3851_s27 + $0x60] sm:$0xff]  ;;  %v804_v58 = vld [vmem:[%s3851_s27 + $0x68] sm:$0xff] }
 0x181   : > { %1854 = vmatprep.subr.bf16.mxu0 %v800_v62  ;;  %2057 = vmatprep.subr.bf16.mxu1 %v800_v62  ;;  %v794_v45 = vld [vmem:[%s3851_s27 + $0x18] sm:$0xff]  ;;  %v795_v49 = vld [vmem:[%s3851_s27 + $0x20] sm:$0xff]  ;;  %v796_v59 = vld [vmem:[%s3851_s27 + $0x28] sm:$0xff] }
 0x182   : > { %v805_v60 = vld [vmem:[%s3851_s27 + $0x70] sm:$0xff]  ;;  %v806_v41 = vld [vmem:[%s3851_s27 + $0x78] sm:$0xff] }
 0x183   : > { %v797_v30 = vld [vmem:[%s3851_s27 + $0x30] sm:$0xff]  ;;  %v798_v42 = vld [vmem:[%s3851_s27 + $0x38] sm:$0xff] }
 0x184   : > { %1855 = vmatpush3.bf16.msra.mxu0 %v792_v63  ;;  %2065 = vmatpush3.bf16.msra.mxu1 %v792_v63 }
 0x185   : > { %1856 = vmatprep.subr.bf16.mxu0 %v801_v40  ;;  %2058 = vmatprep.subr.bf16.mxu1 %v801_v40 }
 0x188   : > { %1857 = vmatpush3.bf16.msra.mxu0 %v793_v43  ;;  %2066 = vmatpush3.bf16.msra.mxu1 %v793_v43 }
 0x189   : > { %1858 = vmatprep.subr.bf16.mxu0 %v802_v44  ;;  %2059 = vmatprep.subr.bf16.mxu1 %v802_v44 }
 0x18c   : > { %1859 = vmatpush3.bf16.msra.mxu0 %v794_v45  ;;  %2067 = vmatpush3.bf16.msra.mxu1 %v794_v45 }
 0x18d   : > { %1860 = vmatprep.subr.bf16.mxu0 %v803_v46  ;;  %2060 = vmatprep.subr.bf16.mxu1 %v803_v46 }
 0x190   : > { %1861 = vmatpush3.bf16.msra.mxu0 %v795_v49  ;;  %2068 = vmatpush3.bf16.msra.mxu1 %v795_v49 }
 0x191   : > { %1862 = vmatprep.subr.bf16.mxu0 %v804_v58  ;;  %2061 = vmatprep.subr.bf16.mxu1 %v804_v58 }
 0x194   : > { %1863 = vmatpush3.bf16.msra.mxu0 %v796_v59  ;;  %2069 = vmatpush3.bf16.msra.mxu1 %v796_v59 }
 0x195   : > { %1864 = vmatprep.subr.bf16.mxu0 %v805_v60  ;;  %2062 = vmatprep.subr.bf16.mxu1 %v805_v60 }
 0x198   : > { %1865 = vmatpush3.bf16.msra.mxu0 %v797_v30  ;;  %2070 = vmatpush3.bf16.msra.mxu1 %v797_v30 }
 0x199   : > { %1866 = vmatprep.subr.bf16.mxu0 %v806_v41  ;;  %2063 = vmatprep.subr.bf16.mxu1 %v806_v41 }
 0x19c   : > { %1867 = vmatpush3.bf16.msra.mxu0 %v798_v42  ;;  %2071 = vmatpush3.bf16.msra.mxu1 %v798_v42 }
 0x19d   : > { %2004 = vmatprep.subr.bf16.mxu1 %v2645_v21 }
 0x19f   : > { %1000 = vmatmul.mubr.bf16.vlgmr.msra.gmra.mrb[0].mxu0 %v1673_v54  ;;  %1096 = vmatmul.mubr.bf16.vlgmr.msra.gmra.mrb[0].mxu1 %v1697_v55 }
 0x1a0   : > { %1007 = vmatprep.mubr.bf16.mxu0 %v1676_v56  ;;  %1103 = vmatprep.mubr.bf16.mxu1 %v1700_v31 }
 0x1a1   : > { %2005 = vmatpush3.bf16.msra.mxu1 %v2645_v21 }
 0x1a2   : > { %2006 = vmatprep.subr.bf16.mxu1 %v2646_v18 }
 0x1a5   : > { %2007 = vmatpush3.bf16.msra.mxu1 %v2646_v18 }
 0x1a7   : > { %1008 = vmatmul.mubr.bf16.gmra.mrb[4].mxu0 %v1675_v14  ;;  %1104 = vmatmul.mubr.bf16.gmra.mrb[4].mxu1 %v1699_v0 }
 0x1a8   : > { %1015 = vmatprep.mubr.bf16.mxu0 %v1678_v1  ;;  %1111 = vmatprep.mubr.bf16.mxu1 %v1702_v25 }
 0x1af   : > { %1016 = vmatmul.mubr.bf16.gmra.mrb[8].mxu0 %v1677_v38  ;;  %1112 = vmatmul.mubr.bf16.gmra.mrb[8].mxu1 %v1701_v51 }
 0x1b0   : > { %1023 = vmatprep.mubr.bf16.mxu0 %v1680_v2  ;;  %1119 = vmatprep.mubr.bf16.mxu1 %v1704_v27 }
 0x1b7   : > { %1024 = vmatmul.mubr.bf16.gmra.mrb[12].mxu0 %v1679_v52  ;;  %1120 = vmatmul.mubr.bf16.gmra.mrb[12].mxu1 %v1703_v53 }
 0x1b8   : > { %1031 = vmatprep.mubr.bf16.mxu0 %v1682_v4 }
 0x1bf   : > { %1032 = vmatmul.mubr.bf16.gmra.mrb[16].mxu0 %v1681_v5 }
 0x1c0   : > { %1039 = vmatprep.mubr.bf16.mxu0 %v1684_v29 }
 0x1c7   : > { %1040 = vmatmul.mubr.bf16.gmra.mrb[20].mxu0 %v1683_v6 }
 0x1c8   : > { %1047 = vmatprep.mubr.bf16.mxu0 %v1686_v35 }
 0x1cf   : > { %1048 = vmatmul.mubr.bf16.gmra.mrb[24].mxu0 %v1685_v36 }
 0x1d0   : > { %1055 = vmatprep.mubr.bf16.mxu0 %v1688_v61 }
 0x1d7   : > { %1056 = vmatmul.mubr.bf16.gmra.mrb[28].mxu0 %v1687_v8 }
 0x1d8   : > { %1063 = vmatprep.mubr.bf16.mxu0 %v1690_v33 }
 0x1df   : > { %1064 = vmatmul.mubr.bf16.gmra.mrb[32].mxu0 %v1689_v10 }
 0x1e0   : > { %1071 = vmatprep.mubr.bf16.mxu0 %v1692_v15 }
 0x1e7   : > { %1072 = vmatmul.mubr.bf16.gmra.mrb[36].mxu0 %v1691_v13 }
 0x1e8   : > { %1079 = vmatprep.mubr.bf16.mxu0 %v1694_v47 }
 0x1ef   : > { %1080 = vmatmul.mubr.bf16.gmra.mrb[40].mxu0 %v1693_v48 }
 0x1f0   : > { %1087 = vmatprep.mubr.bf16.mxu0 %v1696_v22 }
 0x1f7   : > { %1088 = vmatmul.mubr.bf16.gmra.mrb[44].mxu0 %v1695_v57 }
 0x272   : > { %v1868_v12 = vpop.f32.mrb[0].mxu0  ;;  %v1940_v16 = vpop.f32.mrb[0].mxu1 }
 0x273   : > { %v1869_v17 = vpop.f32.mrb[1].mxu0  ;;  %v1941_v19 = vpop.f32.mrb[1].mxu1 }
 0x274   : > { %v1870_v62 = vadd.f32 %v1869_v17, %v1868_v12  ;;  %v1871_v63 = vpop.f32.mrb[2].mxu0  ;;  %v3935_v40 = vadd.f32 %v1941_v19, %v1940_v16  ;;  %v1943_v43 = vpop.f32.mrb[2].mxu1 }
 0x275   : > { %v1872_v44 = vpop.f32.mrb[3].mxu0  ;;  %v1944_v45 = vpop.f32.mrb[3].mxu1 }
 0x276   : > { %v1873_v46 = vadd.f32 %v1872_v44, %v1871_v63  ;;  %v3937_v49 = vadd.f32 %v1944_v45, %v1943_v43 }
 0x278   : > { %v1128_v58 = vpack.c.bf16 %v1873_v46, %v1870_v62  ;;  %v1140_v59 = vpack.c.bf16 %v3937_v49, %v3935_v40  ;;  %v3990_v40 = vld [vmem:[%s4292_s5] ss:$0 sm:$0xff] }
 0x27a   : > { %v1874_v60 = vpop.f32.mrb[4].mxu0  ;;  %2008 = vmatprep.mubr.msk.bf16.mxu1 %vm1167_vm0, %v1128_v58  ;;  %v1946_v30 = vpop.f32.mrb[4].mxu1 }
 0x27b   : > { %v1875_v41 = vpop.f32.mrb[5].mxu0  ;;  %v1947_v42 = vpop.f32.mrb[5].mxu1 }
 0x27c   : > { %v1876_v54 = vadd.f32 %v1875_v41, %v1874_v60  ;;  %v1877_v55 = vpop.f32.mrb[6].mxu0  ;;  %v3942_v56 = vadd.f32 %v1947_v42, %v1946_v30  ;;  %v1949_v31 = vpop.f32.mrb[6].mxu1 }
 0x27d   : > { %v1878_v14 = vpop.f32.mrb[7].mxu0  ;;  %v1950_v0 = vpop.f32.mrb[7].mxu1 }
 0x27e   : > { %v1879_v1 = vadd.f32 %v1878_v14, %v1877_v55  ;;  %v3944_v24 = vadd.f32 %v1950_v0, %v1949_v31 }
 0x280   : > { %v1129_v25 = vpack.c.bf16 %v1879_v1, %v1876_v54  ;;  %v1141_v38 = vpack.c.bf16 %v3944_v24, %v3942_v56 }
 0x282   : > { %v1880_v51 = vpop.f32.mrb[8].mxu0  ;;  %2009 = vmatmul.mubr.msk.bf16.vlgmr.msra.gmra.mrb[16].mxu1 %vm1167_vm0, %v1129_v25  ;;  %v1952_v2 = vpop.f32.mrb[8].mxu1 }
 0x283   : > { %v1881_v3 = vpop.f32.mrb[9].mxu0  ;;  %v1953_v26 = vpop.f32.mrb[9].mxu1 }
 0x284   : > { %v1882_v27 = vadd.f32 %v1881_v3, %v1880_v51  ;;  %v1883_v52 = vpop.f32.mrb[10].mxu0  ;;  %v3949_v53 = vadd.f32 %v1953_v26, %v1952_v2  ;;  %v1955_v4 = vpop.f32.mrb[10].mxu1 }
 0x285   : > { %v1884_v5 = vpop.f32.mrb[11].mxu0  ;;  %v1956_v29 = vpop.f32.mrb[11].mxu1 }
 0x286   : > { %v1885_v6 = vadd.f32 %v1884_v5, %v1883_v52  ;;  %v3951_v7 = vadd.f32 %v1956_v29, %v1955_v4 }
 0x288   : > { %v1130_v35 = vpack.c.bf16 %v1885_v6, %v1882_v27  ;;  %v1142_v36 = vpack.c.bf16 %v3951_v7, %v3949_v53 }
 0x28a   : > { %v1886_v39 = vpop.f32.mrb[12].mxu0  ;;  %2012 = vmatprep.mubr.msk.bf16.mxu1 %vm1167_vm0, %v1130_v35  ;;  %v1958_v50 = vpop.f32.mrb[12].mxu1 }
 0x28b   : > { %v1887_v61 = vpop.f32.mrb[13].mxu0  ;;  %v1959_v8 = vpop.f32.mrb[13].mxu1 }
 0x28c   : > { %v1888_v9 = vadd.f32 %v1887_v61, %v1886_v39  ;;  %v1889_v32 = vpop.f32.mrb[14].mxu0  ;;  %v3956_v33 = vadd.f32 %v1959_v8, %v1958_v50  ;;  %v1961_v10 = vpop.f32.mrb[14].mxu1 }
 0x28d   : > { %v1890_v11 = vpop.f32.mrb[15].mxu0  ;;  %v1962_v28 = vpop.f32.mrb[15].mxu1 }
 0x28e   : > { %v1891_v15 = vadd.f32 %v1890_v11, %v1889_v32  ;;  %v3958_v13 = vadd.f32 %v1962_v28, %v1961_v10 }
 0x290   : > { %v1131_v34 = vpack.c.bf16 %v1891_v15, %v1888_v9  ;;  %v1143_v37 = vpack.c.bf16 %v3958_v13, %v3956_v33 }
 0x292   : > { %v1892_v47 = vpop.f32.mrb[16].mxu0  ;;  %2013 = vmatmul.mubr.msk.bf16.gmra.mrb[20].mxu1 %vm1167_vm0, %v1131_v34 }
 0x293   : > { %v1893_v48 = vpop.f32.mrb[17].mxu0 }
 0x294   : > { %v1894_v23 = vadd.f32 %v1893_v48, %v1892_v47  ;;  %v1895_v20 = vpop.f32.mrb[18].mxu0 }
 0x295   : > { %v1896_v22 = vpop.f32.mrb[19].mxu0 }
 0x296   : > { %v1897_v57 = vadd.f32 %v1896_v22, %v1895_v20 }
 0x298   : > { %v1132_v21 = vpack.c.bf16 %v1897_v57, %v1894_v23 }
 0x29a   : > { %v1898_v18 = vpop.f32.mrb[20].mxu0  ;;  %2016 = vmatprep.mubr.msk.bf16.mxu1 %vm1167_vm0, %v1132_v21 }
 0x29b   : > { %v1899_v12 = vpop.f32.mrb[21].mxu0 }
 0x29c   : > { %v1900_v16 = vadd.f32 %v1899_v12, %v1898_v18  ;;  %v1901_v17 = vpop.f32.mrb[22].mxu0 }
 0x29d   : > { %v1902_v19 = vpop.f32.mrb[23].mxu0 }
 0x29e   : > { %v1903_v62 = vadd.f32 %v1902_v19, %v1901_v17 }
 0x2a0   : > { %v1133_v63 = vpack.c.bf16 %v1903_v62, %v1900_v16 }
 0x2a2   : > { %v1904_v43 = vpop.f32.mrb[24].mxu0  ;;  %2017 = vmatmul.mubr.msk.bf16.gmra.mrb[24].mxu1 %vm1167_vm0, %v1133_v63 }
 0x2a3   : > { %v1905_v44 = vpop.f32.mrb[25].mxu0 }
 0x2a4   : > { %v1906_v45 = vadd.f32 %v1905_v44, %v1904_v43  ;;  %v1907_v46 = vpop.f32.mrb[26].mxu0 }
 0x2a5   : > { %v1908_v58 = vpop.f32.mrb[27].mxu0 }
 0x2a6   : > { %v1909_v60 = vadd.f32 %v1908_v58, %v1907_v46 }
 0x2a8   : > { %v1134_v30 = vpack.c.bf16 %v1909_v60, %v1906_v45 }
 0x2aa   : > { %v1910_v41 = vpop.f32.mrb[28].mxu0  ;;  %2020 = vmatprep.mubr.msk.bf16.mxu1 %vm1167_vm0, %v1134_v30 }
 0x2ab   : > { %v1911_v42 = vpop.f32.mrb[29].mxu0 }
 0x2ac   : > { %v1912_v54 = vadd.f32 %v1911_v42, %v1910_v41  ;;  %v1913_v55 = vpop.f32.mrb[30].mxu0 }
 0x2ad   : > { %v1914_v31 = vpop.f32.mrb[31].mxu0 }
 0x2ae   : > { %v1915_v14 = vadd.f32 %v1914_v31, %v1913_v55 }
 0x2b0   : > { %v1135_v0 = vpack.c.bf16 %v1915_v14, %v1912_v54 }
 0x2b2   : > { %v1916_v1 = vpop.f32.mrb[32].mxu0  ;;  %2021 = vmatmul.mubr.msk.bf16.gmra.mrb[28].mxu1 %vm1167_vm0, %v1135_v0 }
 0x2b3   : > { %v1917_v25 = vpop.f32.mrb[33].mxu0 }
 0x2b4   : > { %v1918_v51 = vadd.f32 %v1917_v25, %v1916_v1  ;;  %v1919_v2 = vpop.f32.mrb[34].mxu0 }
 0x2b5   : > { %v1920_v3 = vpop.f32.mrb[35].mxu0 }
 0x2b6   : > { %v1921_v26 = vadd.f32 %v1920_v3, %v1919_v2 }
 0x2b8   : > { %v1136_v27 = vpack.c.bf16 %v1921_v26, %v1918_v51 }
 0x2ba   : > { %v1922_v52 = vpop.f32.mrb[36].mxu0  ;;  %2024 = vmatprep.mubr.msk.bf16.mxu1 %vm1167_vm0, %v1136_v27 }
 0x2bb   : > { %v1923_v4 = vpop.f32.mrb[37].mxu0 }
 0x2bc   : > { %v1924_v5 = vadd.f32 %v1923_v4, %v1922_v52  ;;  %v1925_v29 = vpop.f32.mrb[38].mxu0 }
 0x2bd   : > { %v1926_v6 = vpop.f32.mrb[39].mxu0 }
 0x2be   : > { %v1927_v35 = vadd.f32 %v1926_v6, %v1925_v29 }
 0x2c0   : > { %v1137_v39 = vpack.c.bf16 %v1927_v35, %v1924_v5 }
 0x2c2   : > { %v1928_v50 = vpop.f32.mrb[40].mxu0  ;;  %2025 = vmatmul.mubr.msk.bf16.gmra.mrb[32].mxu1 %vm1167_vm0, %v1137_v39 }
 0x2c3   : > { %v1929_v61 = vpop.f32.mrb[41].mxu0 }
 0x2c4   : > { %v1930_v8 = vadd.f32 %v1929_v61, %v1928_v50  ;;  %v1931_v9 = vpop.f32.mrb[42].mxu0 }
 0x2c5   : > { %v1932_v32 = vpop.f32.mrb[43].mxu0 }
 0x2c6   : > { %v1933_v10 = vadd.f32 %v1932_v32, %v1931_v9 }
 0x2c8   : > { %v1138_v11 = vpack.c.bf16 %v1933_v10, %v1930_v8 }
 0x2ca   : > { %v1934_v28 = vpop.f32.mrb[44].mxu0  ;;  %2028 = vmatprep.mubr.msk.bf16.mxu1 %vm1167_vm0, %v1138_v11 }
 0x2cb   : > { %v1935_v15 = vpop.f32.mrb[45].mxu0 }
 0x2cc   : > { %v1936_v34 = vadd.f32 %v1935_v15, %v1934_v28  ;;  %v1937_v47 = vpop.f32.mrb[46].mxu0 }
 0x2cd   : > { %v1938_v48 = vpop.f32.mrb[47].mxu0 }
 0x2ce   : > { %v1939_v23 = vadd.f32 %v1938_v48, %v1937_v47 }
 0x2d0   : > { %v1139_v20 = vpack.c.bf16 %v1939_v23, %v1936_v34 }
 0x2d2   : > { %2029 = vmatmul.mubr.msk.bf16.gmra.mrb[36].mxu1 %vm1167_vm0, %v1139_v20 }
 0x2d3   : > { %2032 = vmatprep.mubr.msk.bf16.mxu1 %vm1167_vm0, %v1140_v59 }
 0x2da   : > { %2033 = vmatmul.mubr.msk.bf16.gmra.mrb[40].mxu1 %vm1167_vm0, %v1141_v38 }
 0x2db   : > { %2036 = vmatprep.mubr.msk.bf16.mxu1 %vm1167_vm0, %v1142_v36 }
 0x2e2   : > { %2037 = vmatmul.mubr.msk.bf16.gmra.mrb[44].mxu1 %vm1167_vm0, %v1143_v37 }
 0x355   : > { %v2010_v49 = vpop.f32.mrb[16].mxu1 }
 0x356   : > { %v3993_v61 = vadd.f32 %v2010_v49, %v3990_v40   ;;  %v1250_v59 = vpop.f32.mrb[17].mxu1 }
 0x357   : > { %v3996_v63 = vadd.f32 %v3990_v40, %v1250_v59   ;;  %v2011_v56 = vpop.f32.mrb[18].mxu1 }
 0x358   : > { %v3999_v60 = vadd.f32 %v2011_v56, %v3990_v40   ;;  %v1253_v24 = vpop.f32.mrb[19].mxu1 }
 0x359   : > { %v4002_v62 = vadd.f32 %v3990_v40, %v1253_v24  }
 0x365   : > { %v2014_v38 = vpop.f32.mrb[20].mxu1 }
 0x366   : > { %v4005_v57 = vadd.f32 %v2014_v38, %v3990_v40   ;;  %v1266_v53 = vpop.f32.mrb[21].mxu1 }
 0x367   : > { %v4008_v59 = vadd.f32 %v3990_v40, %v1266_v53   ;;  %v2015_v7 = vpop.f32.mrb[22].mxu1 }
 0x368   : > { %v4011_v56 = vadd.f32 %v2015_v7, %v3990_v40   ;;  %v1269_v36 = vpop.f32.mrb[23].mxu1 }
 0x369   : > { %v4014_v58 = vadd.f32 %v3990_v40, %v1269_v36  }
 0x375   : > { %v2018_v33 = vpop.f32.mrb[24].mxu1 }
 0x376   : > { %v4017_v53 = vadd.f32 %v2018_v33, %v3990_v40   ;;  %v1282_v13 = vpop.f32.mrb[25].mxu1 }
 0x377   : > { %v4020_v55 = vadd.f32 %v3990_v40, %v1282_v13   ;;  %v2019_v37 = vpop.f32.mrb[26].mxu1 }
 0x378   : > { %v1294_v52 = vadd.f32 %v2019_v37, %v3990_v40   ;;  %v1285_v22 = vpop.f32.mrb[27].mxu1 }
 0x379   : > { %v1286_v54 = vadd.f32 %v3990_v40, %v1285_v22  }
 0x385   : > { %v2022_v21 = vpop.f32.mrb[28].mxu1 }
 0x386   : > { %v1307_v49 = vadd.f32 %v2022_v21, %v3990_v40   ;;  %v1298_v18 = vpop.f32.mrb[29].mxu1 }
 0x387   : > { %v1299_v51 = vadd.f32 %v3990_v40, %v1298_v18   ;;  %v2023_v12 = vpop.f32.mrb[30].mxu1 }
 0x388   : > { %v1310_v48 = vadd.f32 %v2023_v12, %v3990_v40   ;;  %v1301_v16 = vpop.f32.mrb[31].mxu1 }
 0x389   : > { %v1302_v50 = vadd.f32 %v3990_v40, %v1301_v16  }
 0x395   : > { %v2026_v17 = vpop.f32.mrb[32].mxu1 }
 0x396   : > { %v1323_v45 = vadd.f32 %v2026_v17, %v3990_v40   ;;  %v1314_v19 = vpop.f32.mrb[33].mxu1 }
 0x397   : > { %v1315_v47 = vadd.f32 %v3990_v40, %v1314_v19   ;;  %v2027_v43 = vpop.f32.mrb[34].mxu1 }
 0x398   : > { %v1326_v44 = vadd.f32 %v2027_v43, %v3990_v40   ;;  %v1317_v46 = vpop.f32.mrb[35].mxu1 }
 0x399   : > { %v1318_v46 = vadd.f32 %v3990_v40, %v1317_v46  }
 0x3a5   : > { %v2030_v30 = vpop.f32.mrb[36].mxu1 }
 0x3a6   : > { %v1339_v41 = vadd.f32 %v2030_v30, %v3990_v40   ;;  %v1330_v42 = vpop.f32.mrb[37].mxu1 }
 0x3a7   : > { %v1331_v43 = vadd.f32 %v3990_v40, %v1330_v42   ;;  %v2031_v31 = vpop.f32.mrb[38].mxu1 }
 0x3a8   : > { %v1342_v14 = vadd.f32 %v2031_v31, %v3990_v40   ;;  %v1333_v0 = vpop.f32.mrb[39].mxu1 }
 0x3a9   : > { %v1334_v42 = vadd.f32 %v3990_v40, %v1333_v0  }
 0x3ad   : > { %v2034_v1 = vpop.f32.mrb[40].mxu1 }
 0x3ae   : > { %v1355_v37 = vadd.f32 %v2034_v1, %v3990_v40   ;;  %v1346_v25 = vpop.f32.mrb[41].mxu1 }
 0x3af   : > { %v1347_v39 = vadd.f32 %v3990_v40, %v1346_v25   ;;  %v2035_v2 = vpop.f32.mrb[42].mxu1 }
 0x3b0   : > { %v1358_v36 = vadd.f32 %v2035_v2, %v3990_v40   ;;  %v1349_v3 = vpop.f32.mrb[43].mxu1 }
 0x3b1   : > { %v1350_v38 = vadd.f32 %v3990_v40, %v1349_v3  }
 0x3b5   : > { %v2038_v26 = vpop.f32.mrb[44].mxu1 }
 0x3b6   : > { %v1371_v33 = vadd.f32 %v2038_v26, %v3990_v40   ;;  %v1362_v27 = vpop.f32.mrb[45].mxu1 }
 0x3b7   : > { %v1363_v35 = vadd.f32 %v3990_v40, %v1362_v27   ;;  %v2039_v4 = vpop.f32.mrb[46].mxu1 }
 0x3b8   : > { %v1374_v32 = vadd.f32 %v2039_v4, %v3990_v40   ;;  %v1365_v5 = vpop.f32.mrb[47].mxu1 }
 0x3b9   : > { %v1366_v34 = vadd.f32 %v3990_v40, %v1365_v5   ;;  %v4373_v40 = vmov %v1342_v14 }
 0x3ba PF: > { %v1409_v29 = vmax.f32 %v3245_v63, 0.0  ;;  %v1410_v6 = vmax.f32 %v3241_v62, 0.0  ;;  %p1457_p11 = scmp.lt.s32.totalorder %s2981_s21, 0  ;;  %s1458_s10 = ssub.s32 0, %s2981_s21  ;;  %v1411_v8 = vmax.f32 %v3237_v61, 0.0  ;;  %vm1475_vm1 = vcmask 261120   ;;  %v3245_v63 = vphi %v3117_v63, %v3996_v63   ;;  %v3241_v62 = vphi %v3113_v62, %v4002_v62   ;;  %v3237_v61 = vphi %v3109_v61, %v3993_v61   ;;  %v3233_v60 = vphi %v3105_v60, %v3999_v60   ;;  %v3229_v59 = vphi %v3101_v59, %v4008_v59   ;;  %v3225_v58 = vphi %v3097_v58, %v4014_v58   ;;  %v3221_v57 = vphi %v3093_v57, %v4005_v57   ;;  %v3217_v56 = vphi %v3089_v56, %v4011_v56   ;;  %v3213_v55 = vphi %v3085_v55, %v4020_v55   ;;  %v3209_v54 = vphi %v3081_v54, %v1286_v54   ;;  %v3205_v53 = vphi %v3077_v53, %v4017_v53   ;;  %v3201_v52 = vphi %v3073_v52, %v1294_v52   ;;  %v3197_v51 = vphi %v3069_v51, %v1299_v51   ;;  %v3193_v50 = vphi %v3065_v50, %v1302_v50   ;;  %v3189_v49 = vphi %v3061_v49, %v1307_v49   ;;  %v3185_v48 = vphi %v3057_v48, %v1310_v48   ;;  %v3181_v47 = vphi %v3053_v47, %v1315_v47   ;;  %v3177_v46 = vphi %v3049_v46, %v1318_v46   ;;  %v3173_v45 = vphi %v3045_v45, %v1323_v45   ;;  %v3169_v44 = vphi %v3041_v44, %v1326_v44   ;;  %v3165_v43 = vphi %v3037_v43, %v1331_v43   ;;  %v3161_v42 = vphi %v3033_v42, %v1334_v42   ;;  %v3157_v41 = vphi %v3029_v41, %v1339_v41   ;;  %v3153_v40 = vphi %v3025_v40, %v4373_v40   ;;  %v3149_v39 = vphi %v3021_v39, %v1347_v39   ;;  %v3145_v38 = vphi %v3017_v38, %v1350_v38   ;;  %v3141_v37 = vphi %v3013_v37, %v1355_v37   ;;  %v3137_v36 = vphi %v3009_v36, %v1358_v36   ;;  %v3133_v35 = vphi %v3005_v35, %v1363_v35   ;;  %v3129_v34 = vphi %v3001_v34, %v1366_v34   ;;  %v3125_v33 = vphi %v2997_v33, %v1371_v33   ;;  %v3121_v32 = vphi %v2993_v32, %v1374_v32  }
 0x3bb   : > { %s1724_s11 = smin.u32 %s2981_s21, %s1458_s10  ;;  %v1412_v9 = vmax.f32 %v3233_v60, 0.0  ;;  %v1413_v10 = vmax.f32 %v3229_v59, 0.0  ;;  %v1414_v11 = vmax.f32 %v3225_v58, 0.0  ;;  %v1415_v28 = vmax.f32 %v3221_v57, 0.0 }
 0x3bc   : > { %v4179_v15 = vpack.c.bf16 %v1410_v6, %v1409_v29  ;;  %s1460_s12 = sand.u32 1, %s1724_s11   ;;  %v1416_v23 = vmax.f32 %v3217_v56, 0.0  ;;  %v1417_v20 = vmax.f32 %v3213_v55, 0.0  ;;  %v1418_v63 = vmax.f32 %v3209_v54, 0.0 }
 0x3bd   : > { %s1461_s13 = ssub.s32 0, %s1460_s12  ;;  %v4181_v24 = vpack.c.bf16 %v1412_v9, %v1411_v8  ;;  %v4183_v62 = vpack.c.bf16 %v1414_v11, %v1413_v10  ;;  %v1419_v7 = vmax.f32 %v3205_v53, 0.0  ;;  %v1420_v61 = vmax.f32 %v3201_v52, 0.0 }
 0x3be   : > { %s4384_s13 = smov (!%p1457_p11, %s1461_s13), %s1460_s12  ;;  %v4187_v13 = vpack.c.bf16 %v1416_v23, %v1415_v28  ;;  %v4189_v60 = vpack.c.bf16 %v1418_v63, %v1417_v20  ;;  %v1421_v57 = vmax.f32 %v3197_v51, 0.0  ;;  %v1422_v58 = vmax.f32 %v3193_v50, 0.0 }
 0x3bf   : > { %v4191_v59 = vpack.c.bf16 %v1420_v61, %v1419_v7  ;;  %v1423_v56 = vmax.f32 %v3189_v49, 0.0  ;;  %v1424_v55 = vmax.f32 %v3185_v48, 0.0  ;;  %v1425_v54 = vmax.f32 %v3181_v47, 0.0  ;;  %p1726_p12 = scmp.lt.s32.totalorder %s4384_s13, 0  ;;  %s1467_s14 = sadd.s32 2, %s4384_s13 }
 0x3c0   : > { %v4193_v22 = vpack.c.bf16 %v1422_v58, %v1421_v57  ;;  %v1426_v21 = vmax.f32 %v3177_v46, 0.0  ;;  %v1427_v53 = vmax.f32 %v3173_v45, 0.0  ;;  %v1428_v52 = vmax.f32 %v3169_v44, 0.0 }
 0x3c1   : > { %v4196_v18 = vpack.c.bf16 %v1424_v55, %v1423_v56  ;;  %v1429_v12 = vmax.f32 %v3165_v43, 0.0  ;;  %v1430_v51 = vmax.f32 %v3161_v42, 0.0  ;;  %v1431_v50 = vmax.f32 %v3157_v41, 0.0  ;;  %s4386_s14 = smov (!%p1726_p12, %s1467_s14), %s4384_s13 }
 0x3c2   : > { %v1449_v49 = vpack.c.bf16 %v1426_v21, %v1425_v54  ;;  %v1450_v48 = vpack.c.bf16 %v1428_v52, %v1427_v53  ;;  %v1432_v47 = vmax.f32 %v3153_v40, 0.0  ;;  %v1433_v16 = vmax.f32 %v3149_v39, 0.0  ;;  %s1738_s15 = sshll.u32 %s4386_s14, 7 }
 0x3c3   : > { %v1451_v17 = vpack.c.bf16 %v1430_v51, %v1429_v12  ;;  %v1434_v45 = vmax.f32 %v3145_v38, 0.0  ;;  %v1435_v44 = vmax.f32 %v3141_v37, 0.0  ;;  %v1436_v19 = vmax.f32 %v3137_v36, 0.0  ;;  %s1474_s16 = scalar_lea.vmem [#allocation2], %s1738_s15 }
 0x3c4   : > { %v1452_v43 = vpack.c.bf16 %v1432_v47, %v1431_v50  ;;  %v1437_v46 = vmax.f32 %v3133_v35, 0.0  ;;  %v1438_v41 = vmax.f32 %v3129_v34, 0.0  ;;  %v1439_v30 = vmax.f32 %v3125_v33, 0.0  ;;  %1476 = vst.msk [vmem:[%s1474_s16] sm:$0xff] %vm1475_vm1, %v4179_v15  ;;  %1477 = vst.msk [vmem:[%s1474_s16 + $0x8] sm:$0xff] %vm1475_vm1, %v4181_v24 }
 0x3c5   : > { %v1453_v42 = vpack.c.bf16 %v1434_v45, %v1433_v16  ;;  %v1454_v31 = vpack.c.bf16 %v1436_v19, %v1435_v44  ;;  %v1440_v40 = vmax.f32 %v3121_v32, 0.0  ;;  %1478 = vst.msk [vmem:[%s1474_s16 + $0x10] sm:$0xff] %vm1475_vm1, %v4183_v62  ;;  %1479 = vst.msk [vmem:[%s1474_s16 + $0x18] sm:$0xff] %vm1475_vm1, %v4187_v13  ;;  %1496 = sbr.rel (!%p246_p3) target bundleno = 973 (0x3cd), region = 60  ;;  %v3250_v32 = vmov (%p246_p3), 0.0  }
 0x3c6   : > { %1480 = vst.msk [vmem:[%s1474_s16 + $0x20] sm:$0xff] %vm1475_vm1, %v4189_v60  ;;  %1481 = vst.msk [vmem:[%s1474_s16 + $0x28] sm:$0xff] %vm1475_vm1, %v4191_v59  ;;  %v1455_v35 = vpack.c.bf16 %v1438_v41, %v1437_v46 }
 0x3c7   : > { %1482 = vst.msk [vmem:[%s1474_s16 + $0x30] sm:$0xff] %vm1475_vm1, %v4193_v22  ;;  %1483 = vst.msk [vmem:[%s1474_s16 + $0x38] sm:$0xff] %vm1475_vm1, %v4196_v18  ;;  %v1456_v39 = vpack.c.bf16 %v1440_v40, %v1439_v30 }
 0x3c8   : > { %1484 = vst.msk [vmem:[%s1474_s16 + $0x40] sm:$0xff] %vm1475_vm1, %v1449_v49  ;;  %1485 = vst.msk [vmem:[%s1474_s16 + $0x48] sm:$0xff] %vm1475_vm1, %v1450_v48 }
 0x3c9   : > { %1486 = vst.msk [vmem:[%s1474_s16 + $0x50] sm:$0xff] %vm1475_vm1, %v1451_v17  ;;  %1487 = vst.msk [vmem:[%s1474_s16 + $0x58] sm:$0xff] %vm1475_vm1, %v1452_v43 }
 0x3ca   : > { %1488 = vst.msk [vmem:[%s1474_s16 + $0x60] sm:$0xff] %vm1475_vm1, %v1453_v42  ;;  %1489 = vst.msk [vmem:[%s1474_s16 + $0x68] sm:$0xff] %vm1475_vm1, %v1454_v31 }
 0x3cb   : > { %1490 = vst.msk [vmem:[%s1474_s16 + $0x70] sm:$0xff] %vm1475_vm1, %v1455_v35  ;;  %1491 = vst.msk [vmem:[%s1474_s16 + $0x78] sm:$0xff] %vm1475_vm1, %v1456_v39 }
 0x3cc   : > { %1497 = vst.msk [vmem:[#allocation6] sm:$0xff] %vm1475_vm1, %v3250_v32 }
 0x3cd PF: > { %p1730_p13 = scmp.ne.s32.totalorder %s2981_s21, 2 }
 0x3ce   : > { %1982 = vmatprep.subr.bf16.mxu0 (!%p1730_p13), %v1449_v49  ;;  %v1502_v34 = vld [vmem:[%s4289_s2] sm:$0xff] (!%p1730_p13) }
 0x3cf   : > { %1500 = sbr.rel (%p1730_p13) target bundleno = 1224 (0x4c8), region = 64  ;;  %1983 = vmatpush3.bf16.msra.mxu0 (!%p1730_p13), %v4179_v15  ;;  %v1732_v38 = vcombine.high (!%p1730_p13), %v1502_v34, %v1502_v34  ;;  %v1731_v36 = vcombine.low (!%p1730_p13), %v1502_v34, %v1502_v34 }
 0x3d0   : > { %1984 = vmatprep.subr.bf16.mxu0 (!%p1730_p13), %v1450_v48 }
 0x3d1   : > { %1542 = vmatprep.mubr.bf16.mxu0 (!%p1730_p13), %v1732_v38 }
 0x3d3   : > { %1985 = vmatpush3.bf16.msra.mxu0 (!%p1730_p13), %v4181_v24  ;;  %v1501_v37 = vld [vmem:[#allocation6] sm:$0xff] (!%p1730_p13) }
 0x3d4   : > { %1986 = vmatprep.subr.bf16.mxu0 (!%p1730_p13), %v1451_v17 }
 0x3d7   : > { %1987 = vmatpush3.bf16.msra.mxu0 %v4183_v62 }
 0x3d8   : > { %1988 = vmatprep.subr.bf16.mxu0 %v1452_v43 }
 0x3db   : > { %1989 = vmatpush3.bf16.msra.mxu0 %v4187_v13 }
 0x3dc   : > { %1990 = vmatprep.subr.bf16.mxu0 %v1453_v42 }
 0x3df   : > { %1991 = vmatpush3.bf16.msra.mxu0 %v4189_v60 }
 0x3e0   : > { %1992 = vmatprep.subr.bf16.mxu0 %v1454_v31 }
 0x3e3   : > { %1993 = vmatpush3.bf16.msra.mxu0 %v4191_v59 }
 0x3e4   : > { %1994 = vmatprep.subr.bf16.mxu0 %v1455_v35 }
 0x3e7   : > { %1995 = vmatpush3.bf16.msra.mxu0 %v4193_v22 }
 0x3e8   : > { %1996 = vmatprep.subr.bf16.mxu0 %v1456_v39 }
 0x3eb   : > { %1997 = vmatpush3.bf16.msra.mxu0 %v4196_v18 }
 0x3ee   : > { %1543 = vmatmul.mubr.bf16.vlgmr.msra.gmra.mrb[0].mxu0 %v1731_v36 }
 0x4c1   : > { %v1998_v33 = vpop.f32.mrb[0].mxu0 }
 0x4c2   : > { %v1999_v14 = vpop.f32.mrb[1].mxu0 }
 0x4c3   : > { %v2000_v0 = vadd.f32 %v1999_v14, %v1998_v33  ;;  %v2001_v1 = vpop.f32.mrb[2].mxu0 }
 0x4c4   : > { %v2002_v25 = vpop.f32.mrb[3].mxu0 }
 0x4c5   : > { %v1550_v2 = vadd.f32 %v2000_v0, %v1501_v37 }
 0x4c7   : > { %1551 = vst.msk [vmem:[#allocation6] sm:$0xff] %vm1475_vm1, %v1550_v2 }
 0x4c8 PF: > { %p4252_p0 = scmp.eq.s32.totalorder %s1613_s24, 2  ;;  %s3251_s19 = smov [#allocation6]  }
 0x4c9   : > { %s1559_s20 = sshll.u32 %s3251_s19, 4  ;;  %s1560_s20 = int_to_ptr.vmem [resolvable:$true] %s1559_s20 }
 0x4ca   : > { %s2677_s26 = scalar_lea.vmem %s1560_s20, 128  ;;  %p2684_p7 = scmp.lt.s32.totalorder %s1560_s20, %s1560_s20 }
 0x4cb   : > { %p2678_p1 = scmp.ne.s32.totalorder %s1560_s20, %s2677_s26  ;;  %p2685_p9 = scmp.lt.s32.totalorder %s2677_s26, %s2677_s26 }
 0x4cd   : > { %p2679_p2 = pnand %p2678_p1, %p4252_p0  ;;  %p2686_p3 = por %p2685_p9, %p2684_p7 }
 0x4cf   : > { %p2680_p5 = pneg %p2679_p2 }
 0x4d1   : > { %p2687_p4 = pnand %p2686_p3, %p2680_p5 }
 0x4d3   : > { %2690 = shalt.err (!%p2687_p4)
}
 0x4d4   : > { %s2691_s24 = scalar_lea.hbm %s4293_s6, 128 }
 0x4d5   : > { %p2692_p6 = scmp.ne.s32.totalorder %s4293_s6, %s2691_s24  ;;  %p2697_p11 = scmp.lt.u32.totalorder %s2691_s24, %s4293_s6 }
 0x4d7   : > { %p2693_p8 = pnand %p2692_p6, %p4252_p0 }
 0x4d9   : > { %p2694_p10 = pneg %p2693_p8 }
 0x4db   : > { %p2699_p12 = pnand %p2697_p11, %p2694_p10 }
 0x4dd   : > { %2702 = shalt.err (!%p2699_p12)
}
 0x4de   : > { %2077 = dma.vmem_to_hbm [thread:$0]  (%p4252_p0), %s1560_s20, 128, %s4293_s6, [#allocation5]  }
 0x4df   : > { %2976 = dma.done.wait (%p4252_p0), [#allocation5], 128  }
 0x4e0   : > { %2978 = vsyncadd (%p4252_p0), [#allocation5], 4294967168 }
 0x4e1 PF: > { %s18_s23 = sadd.s32 1, %s2989_s23   ;;  %s4375_s21 = smov %s2985_s22 }
 0x4e2   : > { %p15_p13 = scmp.ge.s32.totalorder %s18_s23, 5   ;;  %s4376_s22 = smov %s4378_s25 }
 0x4e4   :  { %17 = sbr.rel (!%p15_p13) target bundleno = 3 (0x3), region = 91 }
 0x4eb   :  { %1572 = vsyncpa [#allocation4], 1 }
 0x4ec   :  { %1574 = vsyncpa [#allocation4 + $0x1], 1 }
 0x4ed   :  { %1575 = vsyncpa [#allocation5], 1 }
 0x4ee   :  { %1577 = vsyncpa [#allocation5 + $0x1], 1 }

// kernel: tpu_custom_call.1
= control target key start
LH: loop header
LB: loop body
LE: loop exit
PB: predicated region body
PF: predicated region fallthrough
CT: control target
= control target key end

     0   :  { %11 = vsyncpa [#allocation4], 0  ;;  %s4287_s0 = inlined_call_operand.vmem [shape: bf16[256,32], index: 0, kind: input, shape index: {}]   ;;  %s4288_s1 = inlined_call_operand.hbm [shape: bf16[256,256], index: 1, kind: input, shape index: {}]   ;;  %s4289_s2 = inlined_call_operand.vmem [shape: bf16[8,256], index: 2, kind: input, shape index: {}]   ;;  %s4290_s3 = inlined_call_operand.vmem [shape: f32[1,32], index: 3, kind: input, shape index: {}]   ;;  %s4291_s4 = inlined_call_operand.vmem [shape: bf16[32,32], index: 4, kind: input, shape index: {}]   ;;  %s4292_s5 = inlined_call_operand.vmem [shape: f32[1,32], index: 5, kind: input, shape index: {}]   ;;  %s4293_s6 = inlined_call_operand.hbm [shape: f32[8,32], index: 6, kind: output, shape index: {}]  }
   0x1   :  { %12 = vsyncpa [#allocation5], 0  ;;  %s3287_s21 = smov 0   ;;  %s3289_s22 = smov 0  }
   0x2   :  { %s3291_s23 = smov 0  }
   0x3 LB: > { %s1613_s24 = sadd.s32 4294967295, %s2989_s23   ;;  %s30_s25 = sadd.s32 1, %s2985_s22  ;;  %s2989_s23 = sphi %s3291_s23, %s18_s23   ;;  %s2985_s22 = sphi %s3289_s22, %s4376_s22   ;;  %s2981_s21 = sphi %s3287_s21, %s4375_s21  }
   0x4   : > { %p32_p0 = scmp.ge.s32.totalorder %s30_s25, 3  ;;  %p1614_p1 = scmp.ge.s32.totalorder %s2989_s23, 1 }
   0x5   : > { %p182_p2 = scmp.lt.s32.totalorder %s2989_s23, 4  ;;  %p3314_p4 = scmp.eq.s32.totalorder %s1613_s24, 0 }
   0x6   : > { %s4378_s25 = smov (%p32_p0, %s30_s25), 0  ;;  %s3247_s28 = smov [#allocation3]  }
   0x7   : > { %p3308_p3 = pnand %p1614_p1, %p182_p2  ;;  %s197_s29 = sshll.u32 %s3247_s28, 4  ;;  %s198_s29 = int_to_ptr.vmem [resolvable:$true] %s197_s29 }
   0x8   : > { %s4326_s27 = scalar_select %p3314_p4, 1, 0 }
   0x9   : > { %s4325_s26 = scalar_select %p3308_p3, 1, 0 }
   0xa   : > { %p2080_p5 = pneg %p3308_p3  ;;  %s2649_s9 = scalar_lea.hbm %s4288_s1, 4096 }
   0xb   : > { %p2650_p7 = scmp.ne.s32.totalorder %s4288_s1, %s2649_s9  ;;  %p2656_p11 = scmp.lt.u32.totalorder %s2649_s9, %s4288_s1 }
   0xc   : > { %p3322_p6 = pnand %p3314_p4, %p2080_p5 }
   0xe   : > { %p2651_p8 = pneg %p3322_p6 }
  0x10   : > { %p2652_p9 = pnand %p2651_p8, %p2650_p7 }
  0x12   : > { %p2653_p10 = pneg %p2652_p9 }
  0x14   : > { %p2658_p12 = pnand %p2656_p11, %p2653_p10 }
  0x16   : > { %2661 = shalt.err (!%p2658_p12)
}
  0x17   : > { %s2662_s14 = scalar_lea.vmem %s198_s29, 4096  ;;  %p2670_p2 = scmp.lt.s32.totalorder %s198_s29, %s198_s29 }
  0x18   : > { %p2663_p13 = scmp.ne.s32.totalorder %s198_s29, %s2662_s14  ;;  %p2671_p5 = scmp.lt.s32.totalorder %s2662_s14, %s2662_s14 }
  0x1a   : > { %p2665_p0 = pnand %p2663_p13, %p2651_p8  ;;  %p2672_p4 = por %p2671_p5, %p2670_p2 }
  0x1c   : > { %p2666_p1 = pneg %p2665_p0 }
  0x1e   : > { %p2673_p3 = pnand %p2672_p4, %p2666_p1 }
  0x20   : > { %2676 = shalt.err (!%p2673_p3)
}
  0x21   : > { %s3248_s15 = smov 128   ;;  %s3249_s16 = smov 8  }
  0x22   : > { %2083 = dma.hbm_to_vmem [thread:$0]  (!%p3322_p6), %s4288_s1, 4096, %s198_s29, [#allocation4], %s3248_s15, %s3248_s15, %s3249_s16  }
  0x23   : > { %p4328_p7 = scmp.ne.s32.totalorder %s4325_s26, 0 }
  0x25   : > { %225 = sbr.rel (%p4328_p7) target bundleno = 1249 (0x4e1), region = 44 }
  0x2c   : > { %p4329_p9 = scmp.ne.s32.totalorder %s4326_s27, 0 }
  0x2e   : > { %2972 = dma.done.wait (%p4329_p9), [#allocation4], 4096  }
  0x2f   : > { %2974 = vsyncadd (%p4329_p9), [#allocation4], 4294963200  ;;  %p246_p3 = scmp.eq.s32.totalorder %s2981_s21, 2  ;;  %p280_p4 = scmp.eq.s32.totalorder %s2981_s21, 0  ;;  %v3350_v0 = vld [vmem:[#allocation3] sm:$0xff]  ;;  %v3352_v1 = vld [vmem:[#allocation3 + $0x8] sm:$0xff] }
  0x30   : > { %v3354_v2 = vld [vmem:[#allocation3 + $0x10] sm:$0xff]  ;;  %v3356_v3 = vld [vmem:[#allocation3 + $0x18] sm:$0xff]  ;;  %v3358_v4 = vld [vmem:[#allocation3 + $0x20] sm:$0xff]  ;;  %p1618_p6 = scmp.ne.s32.totalorder %s2981_s21, 0  ;;  %v3415_v32 = vmov 0   ;;  %v3417_v33 = vmov 0  }
  0x31   : > { %v3360_v5 = vld [vmem:[#allocation3 + $0x28] sm:$0xff]  ;;  %v3362_v6 = vld [vmem:[#allocation3 + $0x30] sm:$0xff]  ;;  %v3364_v7 = vld [vmem:[#allocation3 + $0x38] sm:$0xff]  ;;  %v3419_v34 = vmov 0   ;;  %v3421_v35 = vmov 0   ;;  %v3423_v36 = vmov 0  }
  0x32   : > { %v3366_v8 = vld [vmem:[#allocation3 + $0x40] sm:$0xff]  ;;  %v3368_v9 = vld [vmem:[#allocation3 + $0x48] sm:$0xff]  ;;  %v3370_v10 = vld [vmem:[#allocation3 + $0x50] sm:$0xff]  ;;  %v3425_v37 = vmov 0   ;;  %v3427_v38 = vmov 0   ;;  %v3429_v39 = vmov 0  }
  0x33   : > { %v3372_v11 = vld [vmem:[#allocation3 + $0x58] sm:$0xff]  ;;  %v3374_v12 = vld [vmem:[#allocation3 + $0x60] sm:$0xff]  ;;  %v3376_v13 = vld [vmem:[#allocation3 + $0x68] sm:$0xff]  ;;  %v3431_v40 = vmov 0   ;;  %v3433_v41 = vmov 0   ;;  %v3435_v42 = vmov 0  }
  0x34   : > { %4330 = vst [vmem:[#allocation9_spill] sm:$0xff] %v3374_v12  ;;  %v3378_v14 = vld [vmem:[#allocation3 + $0x70] sm:$0xff]  ;;  %v3380_v15 = vld [vmem:[#allocation3 + $0x78] sm:$0xff]  ;;  %v3382_v16 = vld [vmem:[#allocation3 + $0x80] sm:$0xff]  ;;  %v3437_v43 = vmov 0   ;;  %v3439_v44 = vmov 0   ;;  %v1620_v40 = vcombine.low (!%p1618_p6), %v3350_v0, %v3352_v1  ;;  %v1623_v42 = vcombine.high (!%p1618_p6), %v3354_v2, %v3356_v3 }
  0x35   : > { %4331 = vst [vmem:[#allocation10_spill] sm:$0xff] %v3378_v14  ;;  %4332 = vst [vmem:[#allocation11_spill] sm:$0xff] %v3380_v15  ;;  %v3384_v17 = vld [vmem:[#allocation3 + $0x88] sm:$0xff]  ;;  %v3386_v18 = vld [vmem:[#allocation3 + $0x90] sm:$0xff]  ;;  %v3441_v45 = vmov 0   ;;  %v3443_v46 = vmov 0   ;;  %v1621_v14 = vcombine.high (!%p1618_p6), %v3350_v0, %v3352_v1  ;;  %v1622_v44 = vcombine.low (!%p1618_p6), %v3354_v2, %v3356_v3 }
  0x36   : > { %4333 = vst [vmem:[#allocation12_spill] sm:$0xff] %v3382_v16  ;;  %4334 = vst [vmem:[#allocation13_spill] sm:$0xff] %v3384_v17  ;;  %v3388_v19 = vld [vmem:[#allocation3 + $0x98] sm:$0xff]  ;;  %v3390_v20 = vld [vmem:[#allocation3 + $0xa0] sm:$0xff]  ;;  %v3445_v47 = vmov 0   ;;  %v3447_v48 = vmov 0   ;;  %v1637_v15 = vcombine.high (!%p1618_p6), %v3382_v16, %v3384_v17  ;;  %v1636_v41 = vcombine.low (!%p1618_p6), %v3382_v16, %v3384_v17 }
  0x37   : > { %4335 = vst [vmem:[#allocation14_spill] sm:$0xff] %v3386_v18  ;;  %4336 = vst [vmem:[#allocation15_spill] sm:$0xff] %v3388_v19  ;;  %v3392_v21 = vld [vmem:[#allocation3 + $0xa8] sm:$0xff]  ;;  %v3394_v22 = vld [vmem:[#allocation3 + $0xb0] sm:$0xff]  ;;  %v3449_v49 = vmov 0   ;;  %v3451_v50 = vmov 0   ;;  %611 = vmatprep.mubr.bf16.mxu0 (!%p1618_p6), %v1621_v14  ;;  %v1639_v43 = vcombine.high (!%p1618_p6), %v3386_v18, %v3388_v19  ;;  %v1638_v45 = vcombine.low (!%p1618_p6), %v3386_v18, %v3388_v19 }
  0x38   : > { %4337 = vst [vmem:[#allocation16_spill] sm:$0xff] %v3390_v20  ;;  %4338 = vst [vmem:[#allocation17_spill] sm:$0xff] %v3392_v21  ;;  %v3396_v23 = vld [vmem:[#allocation3 + $0xb8] sm:$0xff]  ;;  %v3398_v24 = vld [vmem:[#allocation3 + $0xc0] sm:$0xff]  ;;  %v3453_v51 = vmov 0   ;;  %v3455_v52 = vmov 0   ;;  %675 = vmatprep.mubr.bf16.mxu1 (!%p1618_p6), %v1637_v15  ;;  %v1625_v46 = vcombine.high (!%p1618_p6), %v3358_v4, %v3360_v5  ;;  %v1641_v47 = vcombine.high (!%p1618_p6), %v3390_v20, %v3392_v21 }
  0x39   : > { %4339 = vst [vmem:[#allocation18_spill] sm:$0xff] %v3394_v22  ;;  %4340 = vst [vmem:[#allocation19_spill] sm:$0xff] %v3396_v23  ;;  %v3400_v25 = vld [vmem:[#allocation3 + $0xc8] sm:$0xff]  ;;  %v3402_v26 = vld [vmem:[#allocation3 + $0xd0] sm:$0xff]  ;;  %v3457_v53 = vmov 0   ;;  %v3459_v54 = vmov 0   ;;  %v1624_v48 = vcombine.low (!%p1618_p6), %v3358_v4, %v3360_v5  ;;  %v1640_v49 = vcombine.low (!%p1618_p6), %v3390_v20, %v3392_v21 }
  0x3a   : > { %v3404_v27 = vld [vmem:[#allocation3 + $0xd8] sm:$0xff]  ;;  %v3406_v28 = vld [vmem:[#allocation3 + $0xe0] sm:$0xff]  ;;  %v3408_v29 = vld [vmem:[#allocation3 + $0xe8] sm:$0xff]  ;;  %v3461_v55 = vmov 0   ;;  %v3463_v56 = vmov 0   ;;  %v3465_v57 = vmov 0   ;;  %v1627_v50 = vcombine.high (!%p1618_p6), %v3362_v6, %v3364_v7 }
  0x3b   : > { %4341 = vst [vmem:[#allocation20_spill] sm:$0xff] %v3406_v28  ;;  %v3410_v30 = vld [vmem:[#allocation3 + $0xf0] sm:$0xff]  ;;  %v3412_v31 = vld [vmem:[#allocation3 + $0xf8] sm:$0xff]  ;;  %v3467_v58 = vmov 0   ;;  %v3469_v59 = vmov 0   ;;  %v3471_v60 = vmov 0   ;;  %v1643_v51 = vcombine.high (!%p1618_p6), %v3394_v22, %v3396_v23 }
  0x3c   : > { %4342 = vst [vmem:[#allocation21_spill] sm:$0xff] %v3410_v30  ;;  %4343 = vst [vmem:[#allocation22_spill] sm:$0xff] %v3412_v31  ;;  %v3473_v61 = vmov 0   ;;  %v3475_v62 = vmov 0   ;;  %v3477_v63 = vmov 0   ;;  %283 = sbr.rel (%p1618_p6) target bundleno = 369 (0x171), region = 52  ;;  %v1626_v52 = vcombine.low (!%p1618_p6), %v3362_v6, %v3364_v7 }
  0x3d   : > { %v2629_v30 = vld [vmem:[%s4287_s0 + $0x40] sm:$0xff] (!%p1618_p6)   ;;  %v2631_v28 = vld [vmem:[%s4287_s0 + $0x48] sm:$0xff] (!%p1618_p6)   ;;  %v2633_v33 = vld [vmem:[%s4287_s0 + $0x50] sm:$0xff] (!%p1618_p6)   ;;  %v1642_v53 = vcombine.low (!%p1618_p6), %v3394_v22, %v3396_v23  ;;  %v1629_v54 = vcombine.high (!%p1618_p6), %v3366_v8, %v3368_v9  ;;  %v1645_v55 = vcombine.high (!%p1618_p6), %v3398_v24, %v3400_v25  ;;  %v1628_v56 = vcombine.low (!%p1618_p6), %v3366_v8, %v3368_v9 }
  0x3e   : > { %v2630_v31 = vld [vmem:[%s4287_s0] sm:$0xff] (!%p1618_p6)   ;;  %1740 = vmatprep.subr.bf16.mxu0 (!%p1618_p6), %v2629_v30  ;;  %2040 = vmatprep.subr.bf16.mxu1 (!%p1618_p6), %v2629_v30  ;;  %v2632_v32 = vld [vmem:[%s4287_s0 + $0x8] sm:$0xff] (!%p1618_p6)   ;;  %v2634_v30 = vld [vmem:[%s4287_s0 + $0x10] sm:$0xff] (!%p1618_p6)   ;;  %v1644_v57 = vcombine.low (!%p1618_p6), %v3398_v24, %v3400_v25  ;;  %v1631_v58 = vcombine.high (!%p1618_p6), %v3370_v10, %v3372_v11  ;;  %v1647_v59 = vcombine.high (!%p1618_p6), %v3402_v26, %v3404_v27 }
  0x3f   : > { %1741 = vmatpush3.bf16.msra.mxu0 (!%p1618_p6), %v2630_v31  ;;  %2048 = vmatpush3.bf16.msra.mxu1 (!%p1618_p6), %v2630_v31  ;;  %v2635_v31 = vld [vmem:[%s4287_s0 + $0x58] sm:$0xff] (!%p1618_p6)   ;;  %v2637_v14 = vld [vmem:[%s4287_s0 + $0x60] sm:$0xff] (!%p1618_p6)   ;;  %v2639_v34 = vld [vmem:[%s4287_s0 + $0x68] sm:$0xff] (!%p1618_p6)   ;;  %v1630_v60 = vcombine.low (!%p1618_p6), %v3370_v10, %v3372_v11  ;;  %v1646_v61 = vcombine.low (!%p1618_p6), %v3402_v26, %v3404_v27  ;;  %v1633_v62 = vcombine.high (!%p1618_p6), %v3374_v12, %v3376_v13 }
  0x40   : > { %1742 = vmatprep.subr.bf16.mxu0 (!%p1618_p6), %v2631_v28  ;;  %2041 = vmatprep.subr.bf16.mxu1 (!%p1618_p6), %v2631_v28  ;;  %v2636_v28 = vld [vmem:[%s4287_s0 + $0x18] sm:$0xff] (!%p1618_p6)   ;;  %v2638_v15 = vld [vmem:[%s4287_s0 + $0x20] sm:$0xff] (!%p1618_p6)   ;;  %v2640_v35 = vld [vmem:[%s4287_s0 + $0x28] sm:$0xff] (!%p1618_p6)  }
  0x41   : > { %v2641_v36 = vld [vmem:[%s4287_s0 + $0x70] sm:$0xff] (!%p1618_p6)   ;;  %v2643_v38 = vld [vmem:[%s4287_s0 + $0x78] sm:$0xff] (!%p1618_p6)  }
  0x42   : > { %v2642_v37 = vld [vmem:[%s4287_s0 + $0x30] sm:$0xff] (!%p1618_p6)   ;;  %v2644_v39 = vld [vmem:[%s4287_s0 + $0x38] sm:$0xff] (!%p1618_p6)   ;;  %v4344_v63 = vld [vmem:[#allocation20_spill] sm:$0xff] (!%p1618_p6) }
  0x43   : > { %1743 = vmatpush3.bf16.msra.mxu0 %v2632_v32  ;;  %2049 = vmatpush3.bf16.msra.mxu1 %v2632_v32  ;;  %v1649_v32 = vcombine.high %v4344_v63, %v3408_v29 }
  0x44   : > { %1744 = vmatprep.subr.bf16.mxu0 %v2633_v33  ;;  %2042 = vmatprep.subr.bf16.mxu1 %v2633_v33  ;;  %v1632_v33 = vcombine.low %v3374_v12, %v3376_v13 }
  0x47   : > { %1745 = vmatpush3.bf16.msra.mxu0 %v2634_v30  ;;  %2050 = vmatpush3.bf16.msra.mxu1 %v2634_v30  ;;  %v1648_v30 = vcombine.low %v4344_v63, %v3408_v29 }
  0x48   : > { %1746 = vmatprep.subr.bf16.mxu0 %v2635_v31  ;;  %2043 = vmatprep.subr.bf16.mxu1 %v2635_v31  ;;  %v4345_v31 = vld [vmem:[#allocation11_spill] sm:$0xff] }
  0x4b   : > { %1747 = vmatpush3.bf16.msra.mxu0 %v2636_v28  ;;  %2051 = vmatpush3.bf16.msra.mxu1 %v2636_v28  ;;  %v4346_v28 = vld [vmem:[#allocation10_spill] sm:$0xff] }
  0x4c   : > { %1748 = vmatprep.subr.bf16.mxu0 %v2637_v14  ;;  %2044 = vmatprep.subr.bf16.mxu1 %v2637_v14  ;;  %v1635_v14 = vcombine.high %v4346_v28, %v4345_v31 }
  0x4f   : > { %1749 = vmatpush3.bf16.msra.mxu0 %v2638_v15  ;;  %2052 = vmatpush3.bf16.msra.mxu1 %v2638_v15  ;;  %v4347_v15 = vld [vmem:[#allocation22_spill] sm:$0xff] }
  0x50   : > { %1750 = vmatprep.subr.bf16.mxu0 %v2639_v34  ;;  %2045 = vmatprep.subr.bf16.mxu1 %v2639_v34  ;;  %v4348_v34 = vld [vmem:[#allocation21_spill] sm:$0xff] }
  0x53   : > { %1751 = vmatpush3.bf16.msra.mxu0 %v2640_v35  ;;  %2053 = vmatpush3.bf16.msra.mxu1 %v2640_v35  ;;  %v1651_v35 = vcombine.high %v4348_v34, %v4347_v15 }
  0x54   : > { %1752 = vmatprep.subr.bf16.mxu0 %v2641_v36  ;;  %2046 = vmatprep.subr.bf16.mxu1 %v2641_v36  ;;  %v1634_v36 = vcombine.low %v4346_v28, %v4345_v31 }
  0x57   : > { %1753 = vmatpush3.bf16.msra.mxu0 %v2642_v37  ;;  %2054 = vmatpush3.bf16.msra.mxu1 %v2642_v37  ;;  %v1650_v37 = vcombine.low %v4348_v34, %v4347_v15 }
  0x58   : > { %1754 = vmatprep.subr.bf16.mxu0 %v2643_v38  ;;  %2047 = vmatprep.subr.bf16.mxu1 %v2643_v38 }
  0x5b   : > { %1755 = vmatpush3.bf16.msra.mxu0 %v2644_v39  ;;  %2055 = vmatpush3.bf16.msra.mxu1 %v2644_v39 }
  0x5e   : > { %612 = vmatmul.mubr.bf16.vlgmr.msra.gmra.mrb[0].mxu0 %v1620_v40  ;;  %676 = vmatmul.mubr.bf16.vlgmr.msra.gmra.mrb[0].mxu1 %v1636_v41  ;;  %v3596_v40 = vld [vmem:[%s4290_s3] ss:$0 sm:$0xff] }
  0x5f   : > { %619 = vmatprep.mubr.bf16.mxu0 %v1623_v42  ;;  %683 = vmatprep.mubr.bf16.mxu1 %v1639_v43 }
  0x66   : > { %620 = vmatmul.mubr.bf16.gmra.mrb[4].mxu0 %v1622_v44  ;;  %684 = vmatmul.mubr.bf16.gmra.mrb[4].mxu1 %v1638_v45 }
  0x67   : > { %627 = vmatprep.mubr.bf16.mxu0 %v1625_v46  ;;  %691 = vmatprep.mubr.bf16.mxu1 %v1641_v47 }
  0x6e   : > { %628 = vmatmul.mubr.bf16.gmra.mrb[8].mxu0 %v1624_v48  ;;  %692 = vmatmul.mubr.bf16.gmra.mrb[8].mxu1 %v1640_v49 }
  0x6f   : > { %635 = vmatprep.mubr.bf16.mxu0 %v1627_v50  ;;  %699 = vmatprep.mubr.bf16.mxu1 %v1643_v51 }
  0x76   : > { %636 = vmatmul.mubr.bf16.gmra.mrb[12].mxu0 %v1626_v52  ;;  %700 = vmatmul.mubr.bf16.gmra.mrb[12].mxu1 %v1642_v53 }
  0x77   : > { %643 = vmatprep.mubr.bf16.mxu0 %v1629_v54  ;;  %707 = vmatprep.mubr.bf16.mxu1 %v1645_v55 }
  0x7e   : > { %644 = vmatmul.mubr.bf16.gmra.mrb[16].mxu0 %v1628_v56  ;;  %708 = vmatmul.mubr.bf16.gmra.mrb[16].mxu1 %v1644_v57 }
  0x7f   : > { %651 = vmatprep.mubr.bf16.mxu0 %v1631_v58  ;;  %715 = vmatprep.mubr.bf16.mxu1 %v1647_v59 }
  0x86   : > { %652 = vmatmul.mubr.bf16.gmra.mrb[20].mxu0 %v1630_v60  ;;  %716 = vmatmul.mubr.bf16.gmra.mrb[20].mxu1 %v1646_v61 }
  0x87   : > { %659 = vmatprep.mubr.bf16.mxu0 %v1633_v62  ;;  %723 = vmatprep.mubr.bf16.mxu1 %v1649_v32 }
  0x8e   : > { %660 = vmatmul.mubr.bf16.gmra.mrb[24].mxu0 %v1632_v33  ;;  %724 = vmatmul.mubr.bf16.gmra.mrb[24].mxu1 %v1648_v30 }
  0x8f   : > { %667 = vmatprep.mubr.bf16.mxu0 %v1635_v14  ;;  %731 = vmatprep.mubr.bf16.mxu1 %v1651_v35 }
  0x96   : > { %668 = vmatmul.mubr.bf16.gmra.mrb[28].mxu0 %v1634_v36  ;;  %732 = vmatmul.mubr.bf16.gmra.mrb[28].mxu1 %v1650_v37 }
 0x131   : > { %v1756_v38 = vpop.f32.mrb[0].mxu0  ;;  %v1804_v39 = vpop.f32.mrb[0].mxu1 }
 0x132   : > { %v1757_v41 = vpop.f32.mrb[1].mxu0  ;;  %v1805_v42 = vpop.f32.mrb[1].mxu1 }
 0x133   : > { %v1758_v43 = vadd.f32 %v1757_v41, %v1756_v38  ;;  %v1806_v44 = vadd.f32 %v1805_v42, %v1804_v39  ;;  %v1759_v45 = vpop.f32.mrb[2].mxu0  ;;  %v1807_v46 = vpop.f32.mrb[2].mxu1 }
 0x134   : > { %v1760_v47 = vpop.f32.mrb[3].mxu0  ;;  %v1808_v48 = vpop.f32.mrb[3].mxu1 }
 0x135   : > { %v3599_v63 = vadd.f32 %v1758_v43, %v3596_v40   ;;  %v3602_v49 = vadd.f32 %v1806_v44, %v3596_v40   ;;  %v1761_v50 = vadd.f32 %v1760_v47, %v1759_v45  ;;  %v1809_v51 = vadd.f32 %v1808_v48, %v1807_v46 }
 0x137   : > { %v3605_v62 = vadd.f32 %v1761_v50, %v3596_v40   ;;  %v3608_v46 = vadd.f32 %v1809_v51, %v3596_v40  }
 0x139   : > { %v1762_v52 = vpop.f32.mrb[4].mxu0  ;;  %v1810_v53 = vpop.f32.mrb[4].mxu1 }
 0x13a   : > { %v1763_v54 = vpop.f32.mrb[5].mxu0  ;;  %v1811_v55 = vpop.f32.mrb[5].mxu1 }
 0x13b   : > { %v1764_v56 = vadd.f32 %v1763_v54, %v1762_v52  ;;  %v1812_v57 = vadd.f32 %v1811_v55, %v1810_v53  ;;  %v1765_v58 = vpop.f32.mrb[6].mxu0  ;;  %v1813_v59 = vpop.f32.mrb[6].mxu1 }
 0x13c   : > { %v1766_v60 = vpop.f32.mrb[7].mxu0  ;;  %v1814_v61 = vpop.f32.mrb[7].mxu1 }
 0x13d   : > { %v3611_v32 = vadd.f32 %v1764_v56, %v3596_v40   ;;  %v3614_v45 = vadd.f32 %v1812_v57, %v3596_v40   ;;  %v1767_v33 = vadd.f32 %v1766_v60, %v1765_v58  ;;  %v1815_v31 = vadd.f32 %v1814_v61, %v1813_v59 }
 0x13f   : > { %v4349_v30 = vmov %v3611_v32  ;;  %v3617_v60 = vadd.f32 %v1767_v33, %v3596_v40   ;;  %v3620_v44 = vadd.f32 %v1815_v31, %v3596_v40  }
 0x141   : > { %v1768_v28 = vpop.f32.mrb[8].mxu0  ;;  %v1816_v14 = vpop.f32.mrb[8].mxu1 }
 0x142   : > { %v1769_v15 = vpop.f32.mrb[9].mxu0  ;;  %v1817_v34 = vpop.f32.mrb[9].mxu1 }
 0x143   : > { %v1770_v35 = vadd.f32 %v1769_v15, %v1768_v28  ;;  %v1818_v36 = vadd.f32 %v1817_v34, %v1816_v14  ;;  %v1771_v37 = vpop.f32.mrb[10].mxu0  ;;  %v1819_v38 = vpop.f32.mrb[10].mxu1 }
 0x144   : > { %v1772_v39 = vpop.f32.mrb[11].mxu0  ;;  %v1820_v41 = vpop.f32.mrb[11].mxu1 }
 0x145   : > { %v3623_v59 = vadd.f32 %v1770_v35, %v3596_v40   ;;  %v3626_v43 = vadd.f32 %v1818_v36, %v3596_v40   ;;  %v1773_v42 = vadd.f32 %v1772_v39, %v1771_v37  ;;  %v1821_v47 = vadd.f32 %v1820_v41, %v1819_v38 }
 0x147   : > { %v3629_v58 = vadd.f32 %v1773_v42, %v3596_v40   ;;  %v3632_v42 = vadd.f32 %v1821_v47, %v3596_v40  }
 0x149   : > { %v1774_v48 = vpop.f32.mrb[12].mxu0  ;;  %v1822_v50 = vpop.f32.mrb[12].mxu1 }
 0x14a   : > { %v1775_v51 = vpop.f32.mrb[13].mxu0  ;;  %v1823_v52 = vpop.f32.mrb[13].mxu1 }
 0x14b   : > { %v1776_v53 = vadd.f32 %v1775_v51, %v1774_v48  ;;  %v1824_v54 = vadd.f32 %v1823_v52, %v1822_v50  ;;  %v1777_v55 = vpop.f32.mrb[14].mxu0  ;;  %v1825_v56 = vpop.f32.mrb[14].mxu1 }
 0x14c   : > { %v1778_v57 = vpop.f32.mrb[15].mxu0  ;;  %v1826_v61 = vpop.f32.mrb[15].mxu1 }
 0x14d   : > { %v3635_v32 = vadd.f32 %v1776_v53, %v3596_v40   ;;  %v3638_v41 = vadd.f32 %v1824_v54, %v3596_v40   ;;  %v1779_v33 = vadd.f32 %v1778_v57, %v1777_v55  ;;  %v1827_v28 = vadd.f32 %v1826_v61, %v1825_v56 }
 0x14f   : > { %v4350_v31 = vmov %v3635_v32  ;;  %v3641_v56 = vadd.f32 %v1779_v33, %v3596_v40   ;;  %v3644_v14 = vadd.f32 %v1827_v28, %v3596_v40  }
 0x151   : > { %v1780_v15 = vpop.f32.mrb[16].mxu0  ;;  %v1828_v34 = vpop.f32.mrb[16].mxu1 }
 0x152   : > { %v1781_v35 = vpop.f32.mrb[17].mxu0  ;;  %v1829_v36 = vpop.f32.mrb[17].mxu1 }
 0x153   : > { %v1782_v37 = vadd.f32 %v1781_v35, %v1780_v15  ;;  %v1830_v38 = vadd.f32 %v1829_v36, %v1828_v34  ;;  %v1783_v39 = vpop.f32.mrb[18].mxu0  ;;  %v1831_v47 = vpop.f32.mrb[18].mxu1 }
 0x154   : > { %v1784_v48 = vpop.f32.mrb[19].mxu0  ;;  %v1832_v50 = vpop.f32.mrb[19].mxu1 }
 0x155   : > { %v3647_v55 = vadd.f32 %v1782_v37, %v3596_v40   ;;  %v710_v51 = vadd.f32 %v1830_v38, %v3596_v40   ;;  %v1785_v52 = vadd.f32 %v1784_v48, %v1783_v39  ;;  %v1833_v53 = vadd.f32 %v1832_v50, %v1831_v47 }
 0x157   : > { %v3651_v54 = vadd.f32 %v1785_v52, %v3596_v40   ;;  %v713_v38 = vadd.f32 %v1833_v53, %v3596_v40  }
 0x159   : > { %v1786_v57 = vpop.f32.mrb[20].mxu0  ;;  %v1834_v61 = vpop.f32.mrb[20].mxu1 }
 0x15a   : > { %v1787_v32 = vpop.f32.mrb[21].mxu0  ;;  %v1835_v33 = vpop.f32.mrb[21].mxu1 }
 0x15b   : > { %v1788_v28 = vadd.f32 %v1787_v32, %v1786_v57  ;;  %v1836_v15 = vadd.f32 %v1835_v33, %v1834_v61  ;;  %v1789_v34 = vpop.f32.mrb[22].mxu0  ;;  %v1837_v35 = vpop.f32.mrb[22].mxu1 }
 0x15c   : > { %v1790_v36 = vpop.f32.mrb[23].mxu0  ;;  %v1838_v37 = vpop.f32.mrb[23].mxu1 }
 0x15d   : > { %v654_v53 = vadd.f32 %v1788_v28, %v3596_v40   ;;  %v718_v39 = vadd.f32 %v1836_v15, %v3596_v40   ;;  %v1791_v47 = vadd.f32 %v1790_v36, %v1789_v34  ;;  %v1839_v48 = vadd.f32 %v1838_v37, %v1837_v35 }
 0x15f   : > { %v657_v52 = vadd.f32 %v1791_v47, %v3596_v40   ;;  %v721_v36 = vadd.f32 %v1839_v48, %v3596_v40  }
 0x161   : > { %v1792_v50 = vpop.f32.mrb[24].mxu0  ;;  %v1840_v22 = vpop.f32.mrb[24].mxu1 }
 0x162   : > { %v1793_v23 = vpop.f32.mrb[25].mxu0  ;;  %v1841_v20 = vpop.f32.mrb[25].mxu1 }
 0x163   : > { %v1794_v57 = vadd.f32 %v1793_v23, %v1792_v50  ;;  %v1842_v61 = vadd.f32 %v1841_v20, %v1840_v22  ;;  %v1795_v32 = vpop.f32.mrb[26].mxu0  ;;  %v1843_v33 = vpop.f32.mrb[26].mxu1 }
 0x164   : > { %v1796_v21 = vpop.f32.mrb[27].mxu0  ;;  %v1844_v18 = vpop.f32.mrb[27].mxu1 }
 0x165   : > { %v662_v28 = vadd.f32 %v1794_v57, %v3596_v40   ;;  %v726_v35 = vadd.f32 %v1842_v61, %v3596_v40   ;;  %v1797_v15 = vadd.f32 %v1796_v21, %v1795_v32  ;;  %v1845_v34 = vadd.f32 %v1844_v18, %v1843_v33 }
 0x166   : > { %v4358_v61 = vmov %v4349_v30 }
 0x167   : > { %v665_v50 = vadd.f32 %v1797_v15, %v3596_v40   ;;  %v729_v34 = vadd.f32 %v1845_v34, %v3596_v40  }
 0x169   : > { %v1798_v37 = vpop.f32.mrb[28].mxu0  ;;  %v1846_v47 = vpop.f32.mrb[28].mxu1 }
 0x16a   : > { %v1799_v48 = vpop.f32.mrb[29].mxu0  ;;  %v1847_v19 = vpop.f32.mrb[29].mxu1 }
 0x16b   : > { %v1800_v23 = vadd.f32 %v1799_v48, %v1798_v37  ;;  %v1848_v20 = vadd.f32 %v1847_v19, %v1846_v47  ;;  %v1801_v22 = vpop.f32.mrb[30].mxu0  ;;  %v1849_v16 = vpop.f32.mrb[30].mxu1  ;;  %v4351_v37 = vmov %v718_v39  ;;  %v4352_v39 = vmov %v710_v51 }
 0x16c   : > { %v1802_v17 = vpop.f32.mrb[31].mxu0  ;;  %v1850_v12 = vpop.f32.mrb[31].mxu1  ;;  %v4354_v47 = vmov %v3602_v49  ;;  %v4356_v51 = vmov %v662_v28 }
 0x16d   : > { %v670_v57 = vadd.f32 %v1800_v23, %v3596_v40   ;;  %v734_v33 = vadd.f32 %v1848_v20, %v3596_v40   ;;  %v1803_v21 = vadd.f32 %v1802_v17, %v1801_v22  ;;  %v1851_v18 = vadd.f32 %v1850_v12, %v1849_v16 }
 0x16f   : > { %v673_v48 = vadd.f32 %v1803_v21, %v3596_v40   ;;  %v737_v32 = vadd.f32 %v1851_v18, %v3596_v40   ;;  %v4353_v40 = vmov %v3644_v14  ;;  %v4355_v49 = vmov %v670_v57 }
 0x170   : > { %v4357_v57 = vmov %v4350_v31 }
 0x171 PF: > { %774 = sbr.rel (%p280_p4) target bundleno = 954 (0x3ba), region = 56  ;;  %s775_s15 = sadd.s32 (!%p280_p4), 1, %s2981_s21  ;;  %v1674_v12 = vcombine.high (!%p280_p4), %v3350_v0, %v3352_v1  ;;  %v1698_v16 = vcombine.high (!%p280_p4), %v3398_v24, %v3400_v25  ;;  %v1673_v54 = vcombine.low (!%p280_p4), %v3350_v0, %v3352_v1  ;;  %v1697_v55 = vcombine.low (!%p280_p4), %v3398_v24, %v3400_v25  ;;  %v4359_v24 = vld [vmem:[#allocation20_spill] sm:$0xff] (!%p280_p4)  ;;  %v4363_v39 = vld [vmem:[#allocation11_spill] sm:$0xff] (!%p280_p4)  ;;  %v4364_v50 = vld [vmem:[#allocation10_spill] sm:$0xff] (!%p280_p4)  ;;  %v3117_v63 = vphi %v3477_v63, %v3599_v63   ;;  %v3113_v62 = vphi %v3475_v62, %v3605_v62   ;;  %v3109_v61 = vphi %v3473_v61, %v4358_v61   ;;  %v3105_v60 = vphi %v3471_v60, %v3617_v60   ;;  %v3101_v59 = vphi %v3469_v59, %v3623_v59   ;;  %v3097_v58 = vphi %v3467_v58, %v3629_v58   ;;  %v3093_v57 = vphi %v3465_v57, %v4357_v57   ;;  %v3089_v56 = vphi %v3463_v56, %v3641_v56   ;;  %v3085_v55 = vphi %v3461_v55, %v3647_v55   ;;  %v3081_v54 = vphi %v3459_v54, %v3651_v54   ;;  %v3077_v53 = vphi %v3457_v53, %v654_v53   ;;  %v3073_v52 = vphi %v3455_v52, %v657_v52   ;;  %v3069_v51 = vphi %v3453_v51, %v4356_v51   ;;  %v3065_v50 = vphi %v3451_v50, %v665_v50   ;;  %v3061_v49 = vphi %v3449_v49, %v4355_v49   ;;  %v3057_v48 = vphi %v3447_v48, %v673_v48   ;;  %v3053_v47 = vphi %v3445_v47, %v4354_v47   ;;  %v3049_v46 = vphi %v3443_v46, %v3608_v46   ;;  %v3045_v45 = vphi %v3441_v45, %v3614_v45   ;;  %v3041_v44 = vphi %v3439_v44, %v3620_v44   ;;  %v3037_v43 = vphi %v3437_v43, %v3626_v43   ;;  %v3033_v42 = vphi %v3435_v42, %v3632_v42   ;;  %v3029_v41 = vphi %v3433_v41, %v3638_v41   ;;  %v3025_v40 = vphi %v3431_v40, %v4353_v40   ;;  %v3021_v39 = vphi %v3429_v39, %v4352_v39   ;;  %v3017_v38 = vphi %v3427_v38, %v713_v38   ;;  %v3013_v37 = vphi %v3425_v37, %v4351_v37   ;;  %v3009_v36 = vphi %v3423_v36, %v721_v36   ;;  %v3005_v35 = vphi %v3421_v35, %v726_v35   ;;  %v3001_v34 = vphi %v3419_v34, %v729_v34   ;;  %v2997_v33 = vphi %v3417_v33, %v734_v33   ;;  %v2993_v32 = vphi %v3415_v32, %v737_v32  }
 0x172   : > { %p776_p8 = scmp.lt.s32.totalorder (!%p280_p4), %s775_s15, 0  ;;  %s777_s16 = ssub.s32 (!%p280_p4), 0, %s775_s15  ;;  %v1676_v56 = vcombine.high (!%p280_p4), %v3354_v2, %v3356_v3  ;;  %v1700_v31 = vcombine.high (!%p280_p4), %v3402_v26, %v3404_v27  ;;  %v1675_v14 = vcombine.low (!%p280_p4), %v3354_v2, %v3356_v3  ;;  %v1699_v0 = vcombine.low (!%p280_p4), %v3402_v26, %v3404_v27  ;;  %v4360_v3 = vld [vmem:[#allocation22_spill] sm:$0xff] (!%p280_p4)  ;;  %v4361_v26 = vld [vmem:[#allocation21_spill] sm:$0xff] (!%p280_p4)  ;;  %v4366_v32 = vld [vmem:[#allocation12_spill] sm:$0xff] (!%p280_p4) }
 0x173   : > { %s1668_s17 = smin.u32 (!%p280_p4), %s777_s16, %s775_s15  ;;  %999 = vmatprep.mubr.bf16.mxu0 (!%p280_p4), %v1674_v12  ;;  %1095 = vmatprep.mubr.bf16.mxu1 (!%p280_p4), %v1698_v16  ;;  %v1678_v1 = vcombine.high (!%p280_p4), %v3358_v4, %v3360_v5  ;;  %v1702_v25 = vcombine.high (!%p280_p4), %v4359_v24, %v3408_v29  ;;  %v1677_v38 = vcombine.low (!%p280_p4), %v3358_v4, %v3360_v5  ;;  %v4368_v28 = vld [vmem:[#allocation14_spill] sm:$0xff] (!%p280_p4)  ;;  %v4369_v34 = vld [vmem:[#allocation17_spill] sm:$0xff] (!%p280_p4)  ;;  %v4370_v37 = vld [vmem:[#allocation16_spill] sm:$0xff] (!%p280_p4)  ;;  %vm1167_vm0 = vcmask (!%p280_p4), 261120  }
 0x174   : > { %s779_s18 = sand.u32 (!%p280_p4), 1, %s1668_s17   ;;  %v1701_v51 = vcombine.low (!%p280_p4), %v4359_v24, %v3408_v29  ;;  %v1680_v2 = vcombine.high (!%p280_p4), %v3362_v6, %v3364_v7  ;;  %v1704_v27 = vcombine.high (!%p280_p4), %v4361_v26, %v4360_v3  ;;  %v1679_v52 = vcombine.low (!%p280_p4), %v3362_v6, %v3364_v7  ;;  %v4362_v7 = vld [vmem:[#allocation9_spill] sm:$0xff] (!%p280_p4)  ;;  %v4371_v23 = vld [vmem:[#allocation19_spill] sm:$0xff] (!%p280_p4)  ;;  %v4372_v20 = vld [vmem:[#allocation18_spill] sm:$0xff] (!%p280_p4) }
 0x175   : > { %s780_s19 = ssub.s32 (!%p280_p4), 0, %s779_s18  ;;  %v1703_v53 = vcombine.low (!%p280_p4), %v4361_v26, %v4360_v3  ;;  %v1682_v4 = vcombine.high (!%p280_p4), %v3366_v8, %v3368_v9  ;;  %v1681_v5 = vcombine.low (!%p280_p4), %v3366_v8, %v3368_v9  ;;  %v1684_v29 = vcombine.high (!%p280_p4), %v3370_v10, %v3372_v11  ;;  %v4365_v9 = vld [vmem:[#allocation13_spill] sm:$0xff] (!%p280_p4)  ;;  %v2645_v21 = vld [vmem:[%s4291_s4] sm:$0xff] (!%p280_p4)  }
 0x176   : > { %v1683_v6 = vcombine.low (!%p280_p4), %v3370_v10, %v3372_v11  ;;  %v1686_v35 = vcombine.high (!%p280_p4), %v4362_v7, %v3376_v13  ;;  %v1685_v36 = vcombine.low (!%p280_p4), %v4362_v7, %v3376_v13  ;;  %v1688_v61 = vcombine.high (!%p280_p4), %v4364_v50, %v4363_v39  ;;  %v4367_v11 = vld [vmem:[#allocation15_spill] sm:$0xff] (!%p280_p4)  ;;  %v2646_v18 = vld [vmem:[%s4291_s4 + $0x8] sm:$0xff] (!%p280_p4)  }
 0x177   : > { %v1687_v8 = vcombine.low (!%p280_p4), %v4364_v50, %v4363_v39  ;;  %v1690_v33 = vcombine.high (!%p280_p4), %v4366_v32, %v4365_v9  ;;  %v1689_v10 = vcombine.low (!%p280_p4), %v4366_v32, %v4365_v9  ;;  %v1692_v15 = vcombine.high (!%p280_p4), %v4368_v28, %v4367_v11 }
 0x178   : > { %s4380_s19 = smov (!%p776_p8, %s780_s19), %s779_s18  ;;  %v1691_v13 = vcombine.low %v4368_v28, %v4367_v11  ;;  %v1694_v47 = vcombine.high %v4370_v37, %v4369_v34  ;;  %v1693_v48 = vcombine.low %v4370_v37, %v4369_v34  ;;  %v1696_v22 = vcombine.high %v4372_v20, %v4371_v23 }
 0x179   : > { %p1670_p10 = scmp.lt.s32.totalorder %s4380_s19, 0  ;;  %s786_s20 = sadd.s32 2, %s4380_s19  ;;  %v1695_v57 = vcombine.low %v4372_v20, %v4371_v23 }
 0x17b   : > { %s4382_s20 = smov (!%p1670_p10, %s786_s20), %s4380_s19 }
 0x17c   : > { %s1737_s26 = sshll.u32 %s4382_s20, 7 }
 0x17d   : > { %s3851_s27 = scalar_lea.vmem [#allocation2], %s1737_s26 }
 0x17e   : > { %v799_v17 = vld [vmem:[%s3851_s27 + $0x40] sm:$0xff]  ;;  %v800_v62 = vld [vmem:[%s3851_s27 + $0x48] sm:$0xff]  ;;  %v801_v40 = vld [vmem:[%s3851_s27 + $0x50] sm:$0xff] }
 0x17f   : > { %v791_v19 = vld [vmem:[%s3851_s27] sm:$0xff]  ;;  %1852 = vmatprep.subr.bf16.mxu0 %v799_v17  ;;  %2056 = vmatprep.subr.bf16.mxu1 %v799_v17  ;;  %v792_v63 = vld [vmem:[%s3851_s27 + $0x8] sm:$0xff]  ;;  %v793_v43 = vld [vmem:[%s3851_s27 + $0x10] sm:$0xff] }
 0x180   : > { %1853 = vmatpush3.bf16.msra.mxu0 %v791_v19  ;;  %2064 = vmatpush3.bf16.msra.mxu1 %v791_v19  ;;  %v802_v44 = vld [vmem:[%s3851_s27 + $0x58] sm:$0xff]  ;;  %v803_v46 = vld [vmem:[%s3851_s27 + $0x60] sm:$0xff]  ;;  %v804_v58 = vld [vmem:[%s3851_s27 + $0x68] sm:$0xff] }
 0x181   : > { %1854 = vmatprep.subr.bf16.mxu0 %v800_v62  ;;  %2057 = vmatprep.subr.bf16.mxu1 %v800_v62  ;;  %v794_v45 = vld [vmem:[%s3851_s27 + $0x18] sm:$0xff]  ;;  %v795_v49 = vld [vmem:[%s3851_s27 + $0x20] sm:$0xff]  ;;  %v796_v59 = vld [vmem:[%s3851_s27 + $0x28] sm:$0xff] }
 0x182   : > { %v805_v60 = vld [vmem:[%s3851_s27 + $0x70] sm:$0xff]  ;;  %v806_v41 = vld [vmem:[%s3851_s27 + $0x78] sm:$0xff] }
 0x183   : > { %v797_v30 = vld [vmem:[%s3851_s27 + $0x30] sm:$0xff]  ;;  %v798_v42 = vld [vmem:[%s3851_s27 + $0x38] sm:$0xff] }
 0x184   : > { %1855 = vmatpush3.bf16.msra.mxu0 %v792_v63  ;;  %2065 = vmatpush3.bf16.msra.mxu1 %v792_v63 }
 0x185   : > { %1856 = vmatprep.subr.bf16.mxu0 %v801_v40  ;;  %2058 = vmatprep.subr.bf16.mxu1 %v801_v40 }
 0x188   : > { %1857 = vmatpush3.bf16.msra.mxu0 %v793_v43  ;;  %2066 = vmatpush3.bf16.msra.mxu1 %v793_v43 }
 0x189   : > { %1858 = vmatprep.subr.bf16.mxu0 %v802_v44  ;;  %2059 = vmatprep.subr.bf16.mxu1 %v802_v44 }
 0x18c   : > { %1859 = vmatpush3.bf16.msra.mxu0 %v794_v45  ;;  %2067 = vmatpush3.bf16.msra.mxu1 %v794_v45 }
 0x18d   : > { %1860 = vmatprep.subr.bf16.mxu0 %v803_v46  ;;  %2060 = vmatprep.subr.bf16.mxu1 %v803_v46 }
 0x190   : > { %1861 = vmatpush3.bf16.msra.mxu0 %v795_v49  ;;  %2068 = vmatpush3.bf16.msra.mxu1 %v795_v49 }
 0x191   : > { %1862 = vmatprep.subr.bf16.mxu0 %v804_v58  ;;  %2061 = vmatprep.subr.bf16.mxu1 %v804_v58 }
 0x194   : > { %1863 = vmatpush3.bf16.msra.mxu0 %v796_v59  ;;  %2069 = vmatpush3.bf16.msra.mxu1 %v796_v59 }
 0x195   : > { %1864 = vmatprep.subr.bf16.mxu0 %v805_v60  ;;  %2062 = vmatprep.subr.bf16.mxu1 %v805_v60 }
 0x198   : > { %1865 = vmatpush3.bf16.msra.mxu0 %v797_v30  ;;  %2070 = vmatpush3.bf16.msra.mxu1 %v797_v30 }
 0x199   : > { %1866 = vmatprep.subr.bf16.mxu0 %v806_v41  ;;  %2063 = vmatprep.subr.bf16.mxu1 %v806_v41 }
 0x19c   : > { %1867 = vmatpush3.bf16.msra.mxu0 %v798_v42  ;;  %2071 = vmatpush3.bf16.msra.mxu1 %v798_v42 }
 0x19d   : > { %2004 = vmatprep.subr.bf16.mxu1 %v2645_v21 }
 0x19f   : > { %1000 = vmatmul.mubr.bf16.vlgmr.msra.gmra.mrb[0].mxu0 %v1673_v54  ;;  %1096 = vmatmul.mubr.bf16.vlgmr.msra.gmra.mrb[0].mxu1 %v1697_v55 }
 0x1a0   : > { %1007 = vmatprep.mubr.bf16.mxu0 %v1676_v56  ;;  %1103 = vmatprep.mubr.bf16.mxu1 %v1700_v31 }
 0x1a1   : > { %2005 = vmatpush3.bf16.msra.mxu1 %v2645_v21 }
 0x1a2   : > { %2006 = vmatprep.subr.bf16.mxu1 %v2646_v18 }
 0x1a5   : > { %2007 = vmatpush3.bf16.msra.mxu1 %v2646_v18 }
 0x1a7   : > { %1008 = vmatmul.mubr.bf16.gmra.mrb[4].mxu0 %v1675_v14  ;;  %1104 = vmatmul.mubr.bf16.gmra.mrb[4].mxu1 %v1699_v0 }
 0x1a8   : > { %1015 = vmatprep.mubr.bf16.mxu0 %v1678_v1  ;;  %1111 = vmatprep.mubr.bf16.mxu1 %v1702_v25 }
 0x1af   : > { %1016 = vmatmul.mubr.bf16.gmra.mrb[8].mxu0 %v1677_v38  ;;  %1112 = vmatmul.mubr.bf16.gmra.mrb[8].mxu1 %v1701_v51 }
 0x1b0   : > { %1023 = vmatprep.mubr.bf16.mxu0 %v1680_v2  ;;  %1119 = vmatprep.mubr.bf16.mxu1 %v1704_v27 }
 0x1b7   : > { %1024 = vmatmul.mubr.bf16.gmra.mrb[12].mxu0 %v1679_v52  ;;  %1120 = vmatmul.mubr.bf16.gmra.mrb[12].mxu1 %v1703_v53 }
 0x1b8   : > { %1031 = vmatprep.mubr.bf16.mxu0 %v1682_v4 }
 0x1bf   : > { %1032 = vmatmul.mubr.bf16.gmra.mrb[16].mxu0 %v1681_v5 }
 0x1c0   : > { %1039 = vmatprep.mubr.bf16.mxu0 %v1684_v29 }
 0x1c7   : > { %1040 = vmatmul.mubr.bf16.gmra.mrb[20].mxu0 %v1683_v6 }
 0x1c8   : > { %1047 = vmatprep.mubr.bf16.mxu0 %v1686_v35 }
 0x1cf   : > { %1048 = vmatmul.mubr.bf16.gmra.mrb[24].mxu0 %v1685_v36 }
 0x1d0   : > { %1055 = vmatprep.mubr.bf16.mxu0 %v1688_v61 }
 0x1d7   : > { %1056 = vmatmul.mubr.bf16.gmra.mrb[28].mxu0 %v1687_v8 }
 0x1d8   : > { %1063 = vmatprep.mubr.bf16.mxu0 %v1690_v33 }
 0x1df   : > { %1064 = vmatmul.mubr.bf16.gmra.mrb[32].mxu0 %v1689_v10 }
 0x1e0   : > { %1071 = vmatprep.mubr.bf16.mxu0 %v1692_v15 }
 0x1e7   : > { %1072 = vmatmul.mubr.bf16.gmra.mrb[36].mxu0 %v1691_v13 }
 0x1e8   : > { %1079 = vmatprep.mubr.bf16.mxu0 %v1694_v47 }
 0x1ef   : > { %1080 = vmatmul.mubr.bf16.gmra.mrb[40].mxu0 %v1693_v48 }
 0x1f0   : > { %1087 = vmatprep.mubr.bf16.mxu0 %v1696_v22 }
 0x1f7   : > { %1088 = vmatmul.mubr.bf16.gmra.mrb[44].mxu0 %v1695_v57 }
 0x272   : > { %v1868_v12 = vpop.f32.mrb[0].mxu0  ;;  %v1940_v16 = vpop.f32.mrb[0].mxu1 }
 0x273   : > { %v1869_v17 = vpop.f32.mrb[1].mxu0  ;;  %v1941_v19 = vpop.f32.mrb[1].mxu1 }
 0x274   : > { %v1870_v62 = vadd.f32 %v1869_v17, %v1868_v12  ;;  %v1871_v63 = vpop.f32.mrb[2].mxu0  ;;  %v3935_v40 = vadd.f32 %v1941_v19, %v1940_v16  ;;  %v1943_v43 = vpop.f32.mrb[2].mxu1 }
 0x275   : > { %v1872_v44 = vpop.f32.mrb[3].mxu0  ;;  %v1944_v45 = vpop.f32.mrb[3].mxu1 }
 0x276   : > { %v1873_v46 = vadd.f32 %v1872_v44, %v1871_v63  ;;  %v3937_v49 = vadd.f32 %v1944_v45, %v1943_v43 }
 0x278   : > { %v1128_v58 = vpack.c.bf16 %v1873_v46, %v1870_v62  ;;  %v1140_v59 = vpack.c.bf16 %v3937_v49, %v3935_v40  ;;  %v3990_v40 = vld [vmem:[%s4292_s5] ss:$0 sm:$0xff] }
 0x27a   : > { %v1874_v60 = vpop.f32.mrb[4].mxu0  ;;  %2008 = vmatprep.mubr.msk.bf16.mxu1 %vm1167_vm0, %v1128_v58  ;;  %v1946_v30 = vpop.f32.mrb[4].mxu1 }
 0x27b   : > { %v1875_v41 = vpop.f32.mrb[5].mxu0  ;;  %v1947_v42 = vpop.f32.mrb[5].mxu1 }
 0x27c   : > { %v1876_v54 = vadd.f32 %v1875_v41, %v1874_v60  ;;  %v1877_v55 = vpop.f32.mrb[6].mxu0  ;;  %v3942_v56 = vadd.f32 %v1947_v42, %v1946_v30  ;;  %v1949_v31 = vpop.f32.mrb[6].mxu1 }
 0x27d   : > { %v1878_v14 = vpop.f32.mrb[7].mxu0  ;;  %v1950_v0 = vpop.f32.mrb[7].mxu1 }
 0x27e   : > { %v1879_v1 = vadd.f32 %v1878_v14, %v1877_v55  ;;  %v3944_v24 = vadd.f32 %v1950_v0, %v1949_v31 }
 0x280   : > { %v1129_v25 = vpack.c.bf16 %v1879_v1, %v1876_v54  ;;  %v1141_v38 = vpack.c.bf16 %v3944_v24, %v3942_v56 }
 0x282   : > { %v1880_v51 = vpop.f32.mrb[8].mxu0  ;;  %2009 = vmatmul.mubr.msk.bf16.vlgmr.msra.gmra.mrb[16].mxu1 %vm1167_vm0, %v1129_v25  ;;  %v1952_v2 = vpop.f32.mrb[8].mxu1 }
 0x283   : > { %v1881_v3 = vpop.f32.mrb[9].mxu0  ;;  %v1953_v26 = vpop.f32.mrb[9].mxu1 }
 0x284   : > { %v1882_v27 = vadd.f32 %v1881_v3, %v1880_v51  ;;  %v1883_v52 = vpop.f32.mrb[10].mxu0  ;;  %v3949_v53 = vadd.f32 %v1953_v26, %v1952_v2  ;;  %v1955_v4 = vpop.f32.mrb[10].mxu1 }
 0x285   : > { %v1884_v5 = vpop.f32.mrb[11].mxu0  ;;  %v1956_v29 = vpop.f32.mrb[11].mxu1 }
 0x286   : > { %v1885_v6 = vadd.f32 %v1884_v5, %v1883_v52  ;;  %v3951_v7 = vadd.f32 %v1956_v29, %v1955_v4 }
 0x288   : > { %v1130_v35 = vpack.c.bf16 %v1885_v6, %v1882_v27  ;;  %v1142_v36 = vpack.c.bf16 %v3951_v7, %v3949_v53 }
 0x28a   : > { %v1886_v39 = vpop.f32.mrb[12].mxu0  ;;  %2012 = vmatprep.mubr.msk.bf16.mxu1 %vm1167_vm0, %v1130_v35  ;;  %v1958_v50 = vpop.f32.mrb[12].mxu1 }
 0x28b   : > { %v1887_v61 = vpop.f32.mrb[13].mxu0  ;;  %v1959_v8 = vpop.f32.mrb[13].mxu1 }
 0x28c   : > { %v1888_v9 = vadd.f32 %v1887_v61, %v1886_v39  ;;  %v1889_v32 = vpop.f32.mrb[14].mxu0  ;;  %v3956_v33 = vadd.f32 %v1959_v8, %v1958_v50  ;;  %v1961_v10 = vpop.f32.mrb[14].mxu1 }
 0x28d   : > { %v1890_v11 = vpop.f32.mrb[15].mxu0  ;;  %v1962_v28 = vpop.f32.mrb[15].mxu1 }
 0x28e   : > { %v1891_v15 = vadd.f32 %v1890_v11, %v1889_v32  ;;  %v3958_v13 = vadd.f32 %v1962_v28, %v1961_v10 }
 0x290   : > { %v1131_v34 = vpack.c.bf16 %v1891_v15, %v1888_v9  ;;  %v1143_v37 = vpack.c.bf16 %v3958_v13, %v3956_v33 }
 0x292   : > { %v1892_v47 = vpop.f32.mrb[16].mxu0  ;;  %2013 = vmatmul.mubr.msk.bf16.gmra.mrb[20].mxu1 %vm1167_vm0, %v1131_v34 }
 0x293   : > { %v1893_v48 = vpop.f32.mrb[17].mxu0 }
 0x294   : > { %v1894_v23 = vadd.f32 %v1893_v48, %v1892_v47  ;;  %v1895_v20 = vpop.f32.mrb[18].mxu0 }
 0x295   : > { %v1896_v22 = vpop.f32.mrb[19].mxu0 }
 0x296   : > { %v1897_v57 = vadd.f32 %v1896_v22, %v1895_v20 }
 0x298   : > { %v1132_v21 = vpack.c.bf16 %v1897_v57, %v1894_v23 }
 0x29a   : > { %v1898_v18 = vpop.f32.mrb[20].mxu0  ;;  %2016 = vmatprep.mubr.msk.bf16.mxu1 %vm1167_vm0, %v1132_v21 }
 0x29b   : > { %v1899_v12 = vpop.f32.mrb[21].mxu0 }
 0x29c   : > { %v1900_v16 = vadd.f32 %v1899_v12, %v1898_v18  ;;  %v1901_v17 = vpop.f32.mrb[22].mxu0 }
 0x29d   : > { %v1902_v19 = vpop.f32.mrb[23].mxu0 }
 0x29e   : > { %v1903_v62 = vadd.f32 %v1902_v19, %v1901_v17 }
 0x2a0   : > { %v1133_v63 = vpack.c.bf16 %v1903_v62, %v1900_v16 }
 0x2a2   : > { %v1904_v43 = vpop.f32.mrb[24].mxu0  ;;  %2017 = vmatmul.mubr.msk.bf16.gmra.mrb[24].mxu1 %vm1167_vm0, %v1133_v63 }
 0x2a3   : > { %v1905_v44 = vpop.f32.mrb[25].mxu0 }
 0x2a4   : > { %v1906_v45 = vadd.f32 %v1905_v44, %v1904_v43  ;;  %v1907_v46 = vpop.f32.mrb[26].mxu0 }
 0x2a5   : > { %v1908_v58 = vpop.f32.mrb[27].mxu0 }
 0x2a6   : > { %v1909_v60 = vadd.f32 %v1908_v58, %v1907_v46 }
 0x2a8   : > { %v1134_v30 = vpack.c.bf16 %v1909_v60, %v1906_v45 }
 0x2aa   : > { %v1910_v41 = vpop.f32.mrb[28].mxu0  ;;  %2020 = vmatprep.mubr.msk.bf16.mxu1 %vm1167_vm0, %v1134_v30 }
 0x2ab   : > { %v1911_v42 = vpop.f32.mrb[29].mxu0 }
 0x2ac   : > { %v1912_v54 = vadd.f32 %v1911_v42, %v1910_v41  ;;  %v1913_v55 = vpop.f32.mrb[30].mxu0 }
 0x2ad   : > { %v1914_v31 = vpop.f32.mrb[31].mxu0 }
 0x2ae   : > { %v1915_v14 = vadd.f32 %v1914_v31, %v1913_v55 }
 0x2b0   : > { %v1135_v0 = vpack.c.bf16 %v1915_v14, %v1912_v54 }
 0x2b2   : > { %v1916_v1 = vpop.f32.mrb[32].mxu0  ;;  %2021 = vmatmul.mubr.msk.bf16.gmra.mrb[28].mxu1 %vm1167_vm0, %v1135_v0 }
 0x2b3   : > { %v1917_v25 = vpop.f32.mrb[33].mxu0 }
 0x2b4   : > { %v1918_v51 = vadd.f32 %v1917_v25, %v1916_v1  ;;  %v1919_v2 = vpop.f32.mrb[34].mxu0 }
 0x2b5   : > { %v1920_v3 = vpop.f32.mrb[35].mxu0 }
 0x2b6   : > { %v1921_v26 = vadd.f32 %v1920_v3, %v1919_v2 }
 0x2b8   : > { %v1136_v27 = vpack.c.bf16 %v1921_v26, %v1918_v51 }
 0x2ba   : > { %v1922_v52 = vpop.f32.mrb[36].mxu0  ;;  %2024 = vmatprep.mubr.msk.bf16.mxu1 %vm1167_vm0, %v1136_v27 }
 0x2bb   : > { %v1923_v4 = vpop.f32.mrb[37].mxu0 }
 0x2bc   : > { %v1924_v5 = vadd.f32 %v1923_v4, %v1922_v52  ;;  %v1925_v29 = vpop.f32.mrb[38].mxu0 }
 0x2bd   : > { %v1926_v6 = vpop.f32.mrb[39].mxu0 }
 0x2be   : > { %v1927_v35 = vadd.f32 %v1926_v6, %v1925_v29 }
 0x2c0   : > { %v1137_v39 = vpack.c.bf16 %v1927_v35, %v1924_v5 }
 0x2c2   : > { %v1928_v50 = vpop.f32.mrb[40].mxu0  ;;  %2025 = vmatmul.mubr.msk.bf16.gmra.mrb[32].mxu1 %vm1167_vm0, %v1137_v39 }
 0x2c3   : > { %v1929_v61 = vpop.f32.mrb[41].mxu0 }
 0x2c4   : > { %v1930_v8 = vadd.f32 %v1929_v61, %v1928_v50  ;;  %v1931_v9 = vpop.f32.mrb[42].mxu0 }
 0x2c5   : > { %v1932_v32 = vpop.f32.mrb[43].mxu0 }
 0x2c6   : > { %v1933_v10 = vadd.f32 %v1932_v32, %v1931_v9 }
 0x2c8   : > { %v1138_v11 = vpack.c.bf16 %v1933_v10, %v1930_v8 }
 0x2ca   : > { %v1934_v28 = vpop.f32.mrb[44].mxu0  ;;  %2028 = vmatprep.mubr.msk.bf16.mxu1 %vm1167_vm0, %v1138_v11 }
 0x2cb   : > { %v1935_v15 = vpop.f32.mrb[45].mxu0 }
 0x2cc   : > { %v1936_v34 = vadd.f32 %v1935_v15, %v1934_v28  ;;  %v1937_v47 = vpop.f32.mrb[46].mxu0 }
 0x2cd   : > { %v1938_v48 = vpop.f32.mrb[47].mxu0 }
 0x2ce   : > { %v1939_v23 = vadd.f32 %v1938_v48, %v1937_v47 }
 0x2d0   : > { %v1139_v20 = vpack.c.bf16 %v1939_v23, %v1936_v34 }
 0x2d2   : > { %2029 = vmatmul.mubr.msk.bf16.gmra.mrb[36].mxu1 %vm1167_vm0, %v1139_v20 }
 0x2d3   : > { %2032 = vmatprep.mubr.msk.bf16.mxu1 %vm1167_vm0, %v1140_v59 }
 0x2da   : > { %2033 = vmatmul.mubr.msk.bf16.gmra.mrb[40].mxu1 %vm1167_vm0, %v1141_v38 }
 0x2db   : > { %2036 = vmatprep.mubr.msk.bf16.mxu1 %vm1167_vm0, %v1142_v36 }
 0x2e2   : > { %2037 = vmatmul.mubr.msk.bf16.gmra.mrb[44].mxu1 %vm1167_vm0, %v1143_v37 }
 0x355   : > { %v2010_v49 = vpop.f32.mrb[16].mxu1 }
 0x356   : > { %v3993_v61 = vadd.f32 %v2010_v49, %v3990_v40   ;;  %v1250_v59 = vpop.f32.mrb[17].mxu1 }
 0x357   : > { %v3996_v63 = vadd.f32 %v3990_v40, %v1250_v59   ;;  %v2011_v56 = vpop.f32.mrb[18].mxu1 }
 0x358   : > { %v3999_v60 = vadd.f32 %v2011_v56, %v3990_v40   ;;  %v1253_v24 = vpop.f32.mrb[19].mxu1 }
 0x359   : > { %v4002_v62 = vadd.f32 %v3990_v40, %v1253_v24  }
 0x365   : > { %v2014_v38 = vpop.f32.mrb[20].mxu1 }
 0x366   : > { %v4005_v57 = vadd.f32 %v2014_v38, %v3990_v40   ;;  %v1266_v53 = vpop.f32.mrb[21].mxu1 }
 0x367   : > { %v4008_v59 = vadd.f32 %v3990_v40, %v1266_v53   ;;  %v2015_v7 = vpop.f32.mrb[22].mxu1 }
 0x368   : > { %v4011_v56 = vadd.f32 %v2015_v7, %v3990_v40   ;;  %v1269_v36 = vpop.f32.mrb[23].mxu1 }
 0x369   : > { %v4014_v58 = vadd.f32 %v3990_v40, %v1269_v36  }
 0x375   : > { %v2018_v33 = vpop.f32.mrb[24].mxu1 }
 0x376   : > { %v4017_v53 = vadd.f32 %v2018_v33, %v3990_v40   ;;  %v1282_v13 = vpop.f32.mrb[25].mxu1 }
 0x377   : > { %v4020_v55 = vadd.f32 %v3990_v40, %v1282_v13   ;;  %v2019_v37 = vpop.f32.mrb[26].mxu1 }
 0x378   : > { %v1294_v52 = vadd.f32 %v2019_v37, %v3990_v40   ;;  %v1285_v22 = vpop.f32.mrb[27].mxu1 }
 0x379   : > { %v1286_v54 = vadd.f32 %v3990_v40, %v1285_v22  }
 0x385   : > { %v2022_v21 = vpop.f32.mrb[28].mxu1 }
 0x386   : > { %v1307_v49 = vadd.f32 %v2022_v21, %v3990_v40   ;;  %v1298_v18 = vpop.f32.mrb[29].mxu1 }
 0x387   : > { %v1299_v51 = vadd.f32 %v3990_v40, %v1298_v18   ;;  %v2023_v12 = vpop.f32.mrb[30].mxu1 }
 0x388   : > { %v1310_v48 = vadd.f32 %v2023_v12, %v3990_v40   ;;  %v1301_v16 = vpop.f32.mrb[31].mxu1 }
 0x389   : > { %v1302_v50 = vadd.f32 %v3990_v40, %v1301_v16  }
 0x395   : > { %v2026_v17 = vpop.f32.mrb[32].mxu1 }
 0x396   : > { %v1323_v45 = vadd.f32 %v2026_v17, %v3990_v40   ;;  %v1314_v19 = vpop.f32.mrb[33].mxu1 }
 0x397   : > { %v1315_v47 = vadd.f32 %v3990_v40, %v1314_v19   ;;  %v2027_v43 = vpop.f32.mrb[34].mxu1 }
 0x398   : > { %v1326_v44 = vadd.f32 %v2027_v43, %v3990_v40   ;;  %v1317_v46 = vpop.f32.mrb[35].mxu1 }
 0x399   : > { %v1318_v46 = vadd.f32 %v3990_v40, %v1317_v46  }
 0x3a5   : > { %v2030_v30 = vpop.f32.mrb[36].mxu1 }
 0x3a6   : > { %v1339_v41 = vadd.f32 %v2030_v30, %v3990_v40   ;;  %v1330_v42 = vpop.f32.mrb[37].mxu1 }
 0x3a7   : > { %v1331_v43 = vadd.f32 %v3990_v40, %v1330_v42   ;;  %v2031_v31 = vpop.f32.mrb[38].mxu1 }
 0x3a8   : > { %v1342_v14 = vadd.f32 %v2031_v31, %v3990_v40   ;;  %v1333_v0 = vpop.f32.mrb[39].mxu1 }
 0x3a9   : > { %v1334_v42 = vadd.f32 %v3990_v40, %v1333_v0  }
 0x3ad   : > { %v2034_v1 = vpop.f32.mrb[40].mxu1 }
 0x3ae   : > { %v1355_v37 = vadd.f32 %v2034_v1, %v3990_v40   ;;  %v1346_v25 = vpop.f32.mrb[41].mxu1 }
 0x3af   : > { %v1347_v39 = vadd.f32 %v3990_v40, %v1346_v25   ;;  %v2035_v2 = vpop.f32.mrb[42].mxu1 }
 0x3b0   : > { %v1358_v36 = vadd.f32 %v2035_v2, %v3990_v40   ;;  %v1349_v3 = vpop.f32.mrb[43].mxu1 }
 0x3b1   : > { %v1350_v38 = vadd.f32 %v3990_v40, %v1349_v3  }
 0x3b5   : > { %v2038_v26 = vpop.f32.mrb[44].mxu1 }
 0x3b6   : > { %v1371_v33 = vadd.f32 %v2038_v26, %v3990_v40   ;;  %v1362_v27 = vpop.f32.mrb[45].mxu1 }
 0x3b7   : > { %v1363_v35 = vadd.f32 %v3990_v40, %v1362_v27   ;;  %v2039_v4 = vpop.f32.mrb[46].mxu1 }
 0x3b8   : > { %v1374_v32 = vadd.f32 %v2039_v4, %v3990_v40   ;;  %v1365_v5 = vpop.f32.mrb[47].mxu1 }
 0x3b9   : > { %v1366_v34 = vadd.f32 %v3990_v40, %v1365_v5   ;;  %v4373_v40 = vmov %v1342_v14 }
 0x3ba PF: > { %v1409_v29 = vmax.f32 %v3245_v63, 0.0  ;;  %v1410_v6 = vmax.f32 %v3241_v62, 0.0  ;;  %p1457_p11 = scmp.lt.s32.totalorder %s2981_s21, 0  ;;  %s1458_s10 = ssub.s32 0, %s2981_s21  ;;  %v1411_v8 = vmax.f32 %v3237_v61, 0.0  ;;  %vm1475_vm1 = vcmask 261120   ;;  %v3245_v63 = vphi %v3117_v63, %v3996_v63   ;;  %v3241_v62 = vphi %v3113_v62, %v4002_v62   ;;  %v3237_v61 = vphi %v3109_v61, %v3993_v61   ;;  %v3233_v60 = vphi %v3105_v60, %v3999_v60   ;;  %v3229_v59 = vphi %v3101_v59, %v4008_v59   ;;  %v3225_v58 = vphi %v3097_v58, %v4014_v58   ;;  %v3221_v57 = vphi %v3093_v57, %v4005_v57   ;;  %v3217_v56 = vphi %v3089_v56, %v4011_v56   ;;  %v3213_v55 = vphi %v3085_v55, %v4020_v55   ;;  %v3209_v54 = vphi %v3081_v54, %v1286_v54   ;;  %v3205_v53 = vphi %v3077_v53, %v4017_v53   ;;  %v3201_v52 = vphi %v3073_v52, %v1294_v52   ;;  %v3197_v51 = vphi %v3069_v51, %v1299_v51   ;;  %v3193_v50 = vphi %v3065_v50, %v1302_v50   ;;  %v3189_v49 = vphi %v3061_v49, %v1307_v49   ;;  %v3185_v48 = vphi %v3057_v48, %v1310_v48   ;;  %v3181_v47 = vphi %v3053_v47, %v1315_v47   ;;  %v3177_v46 = vphi %v3049_v46, %v1318_v46   ;;  %v3173_v45 = vphi %v3045_v45, %v1323_v45   ;;  %v3169_v44 = vphi %v3041_v44, %v1326_v44   ;;  %v3165_v43 = vphi %v3037_v43, %v1331_v43   ;;  %v3161_v42 = vphi %v3033_v42, %v1334_v42   ;;  %v3157_v41 = vphi %v3029_v41, %v1339_v41   ;;  %v3153_v40 = vphi %v3025_v40, %v4373_v40   ;;  %v3149_v39 = vphi %v3021_v39, %v1347_v39   ;;  %v3145_v38 = vphi %v3017_v38, %v1350_v38   ;;  %v3141_v37 = vphi %v3013_v37, %v1355_v37   ;;  %v3137_v36 = vphi %v3009_v36, %v1358_v36   ;;  %v3133_v35 = vphi %v3005_v35, %v1363_v35   ;;  %v3129_v34 = vphi %v3001_v34, %v1366_v34   ;;  %v3125_v33 = vphi %v2997_v33, %v1371_v33   ;;  %v3121_v32 = vphi %v2993_v32, %v1374_v32  }
 0x3bb   : > { %s1724_s11 = smin.u32 %s2981_s21, %s1458_s10  ;;  %v1412_v9 = vmax.f32 %v3233_v60, 0.0  ;;  %v1413_v10 = vmax.f32 %v3229_v59, 0.0  ;;  %v1414_v11 = vmax.f32 %v3225_v58, 0.0  ;;  %v1415_v28 = vmax.f32 %v3221_v57, 0.0 }
 0x3bc   : > { %v4179_v15 = vpack.c.bf16 %v1410_v6, %v1409_v29  ;;  %s1460_s12 = sand.u32 1, %s1724_s11   ;;  %v1416_v23 = vmax.f32 %v3217_v56, 0.0  ;;  %v1417_v20 = vmax.f32 %v3213_v55, 0.0  ;;  %v1418_v63 = vmax.f32 %v3209_v54, 0.0 }
 0x3bd   : > { %s1461_s13 = ssub.s32 0, %s1460_s12  ;;  %v4181_v24 = vpack.c.bf16 %v1412_v9, %v1411_v8  ;;  %v4183_v62 = vpack.c.bf16 %v1414_v11, %v1413_v10  ;;  %v1419_v7 = vmax.f32 %v3205_v53, 0.0  ;;  %v1420_v61 = vmax.f32 %v3201_v52, 0.0 }
 0x3be   : > { %s4384_s13 = smov (!%p1457_p11, %s1461_s13), %s1460_s12  ;;  %v4187_v13 = vpack.c.bf16 %v1416_v23, %v1415_v28  ;;  %v4189_v60 = vpack.c.bf16 %v1418_v63, %v1417_v20  ;;  %v1421_v57 = vmax.f32 %v3197_v51, 0.0  ;;  %v1422_v58 = vmax.f32 %v3193_v50, 0.0 }
 0x3bf   : > { %v4191_v59 = vpack.c.bf16 %v1420_v61, %v1419_v7  ;;  %v1423_v56 = vmax.f32 %v3189_v49, 0.0  ;;  %v1424_v55 = vmax.f32 %v3185_v48, 0.0  ;;  %v1425_v54 = vmax.f32 %v3181_v47, 0.0  ;;  %p1726_p12 = scmp.lt.s32.totalorder %s4384_s13, 0  ;;  %s1467_s14 = sadd.s32 2, %s4384_s13 }
 0x3c0   : > { %v4193_v22 = vpack.c.bf16 %v1422_v58, %v1421_v57  ;;  %v1426_v21 = vmax.f32 %v3177_v46, 0.0  ;;  %v1427_v53 = vmax.f32 %v3173_v45, 0.0  ;;  %v1428_v52 = vmax.f32 %v3169_v44, 0.0 }
 0x3c1   : > { %v4196_v18 = vpack.c.bf16 %v1424_v55, %v1423_v56  ;;  %v1429_v12 = vmax.f32 %v3165_v43, 0.0  ;;  %v1430_v51 = vmax.f32 %v3161_v42, 0.0  ;;  %v1431_v50 = vmax.f32 %v3157_v41, 0.0  ;;  %s4386_s14 = smov (!%p1726_p12, %s1467_s14), %s4384_s13 }
 0x3c2   : > { %v1449_v49 = vpack.c.bf16 %v1426_v21, %v1425_v54  ;;  %v1450_v48 = vpack.c.bf16 %v1428_v52, %v1427_v53  ;;  %v1432_v47 = vmax.f32 %v3153_v40, 0.0  ;;  %v1433_v16 = vmax.f32 %v3149_v39, 0.0  ;;  %s1738_s15 = sshll.u32 %s4386_s14, 7 }
 0x3c3   : > { %v1451_v17 = vpack.c.bf16 %v1430_v51, %v1429_v12  ;;  %v1434_v45 = vmax.f32 %v3145_v38, 0.0  ;;  %v1435_v44 = vmax.f32 %v3141_v37, 0.0  ;;  %v1436_v19 = vmax.f32 %v3137_v36, 0.0  ;;  %s1474_s16 = scalar_lea.vmem [#allocation2], %s1738_s15 }
 0x3c4   : > { %v1452_v43 = vpack.c.bf16 %v1432_v47, %v1431_v50  ;;  %v1437_v46 = vmax.f32 %v3133_v35, 0.0  ;;  %v1438_v41 = vmax.f32 %v3129_v34, 0.0  ;;  %v1439_v30 = vmax.f32 %v3125_v33, 0.0  ;;  %1476 = vst.msk [vmem:[%s1474_s16] sm:$0xff] %vm1475_vm1, %v4179_v15  ;;  %1477 = vst.msk [vmem:[%s1474_s16 + $0x8] sm:$0xff] %vm1475_vm1, %v4181_v24 }
 0x3c5   : > { %v1453_v42 = vpack.c.bf16 %v1434_v45, %v1433_v16  ;;  %v1454_v31 = vpack.c.bf16 %v1436_v19, %v1435_v44  ;;  %v1440_v40 = vmax.f32 %v3121_v32, 0.0  ;;  %1478 = vst.msk [vmem:[%s1474_s16 + $0x10] sm:$0xff] %vm1475_vm1, %v4183_v62  ;;  %1479 = vst.msk [vmem:[%s1474_s16 + $0x18] sm:$0xff] %vm1475_vm1, %v4187_v13  ;;  %1496 = sbr.rel (!%p246_p3) target bundleno = 973 (0x3cd), region = 60  ;;  %v3250_v32 = vmov (%p246_p3), 0.0  }
 0x3c6   : > { %1480 = vst.msk [vmem:[%s1474_s16 + $0x20] sm:$0xff] %vm1475_vm1, %v4189_v60  ;;  %1481 = vst.msk [vmem:[%s1474_s16 + $0x28] sm:$0xff] %vm1475_vm1, %v4191_v59  ;;  %v1455_v35 = vpack.c.bf16 %v1438_v41, %v1437_v46 }
 0x3c7   : > { %1482 = vst.msk [vmem:[%s1474_s16 + $0x30] sm:$0xff] %vm1475_vm1, %v4193_v22  ;;  %1483 = vst.msk [vmem:[%s1474_s16 + $0x38] sm:$0xff] %vm1475_vm1, %v4196_v18  ;;  %v1456_v39 = vpack.c.bf16 %v1440_v40, %v1439_v30 }
 0x3c8   : > { %1484 = vst.msk [vmem:[%s1474_s16 + $0x40] sm:$0xff] %vm1475_vm1, %v1449_v49  ;;  %1485 = vst.msk [vmem:[%s1474_s16 + $0x48] sm:$0xff] %vm1475_vm1, %v1450_v48 }
 0x3c9   : > { %1486 = vst.msk [vmem:[%s1474_s16 + $0x50] sm:$0xff] %vm1475_vm1, %v1451_v17  ;;  %1487 = vst.msk [vmem:[%s1474_s16 + $0x58] sm:$0xff] %vm1475_vm1, %v1452_v43 }
 0x3ca   : > { %1488 = vst.msk [vmem:[%s1474_s16 + $0x60] sm:$0xff] %vm1475_vm1, %v1453_v42  ;;  %1489 = vst.msk [vmem:[%s1474_s16 + $0x68] sm:$0xff] %vm1475_vm1, %v1454_v31 }
 0x3cb   : > { %1490 = vst.msk [vmem:[%s1474_s16 + $0x70] sm:$0xff] %vm1475_vm1, %v1455_v35  ;;  %1491 = vst.msk [vmem:[%s1474_s16 + $0x78] sm:$0xff] %vm1475_vm1, %v1456_v39 }
 0x3cc   : > { %1497 = vst.msk [vmem:[#allocation6] sm:$0xff] %vm1475_vm1, %v3250_v32 }
 0x3cd PF: > { %p1730_p13 = scmp.ne.s32.totalorder %s2981_s21, 2 }
 0x3ce   : > { %1982 = vmatprep.subr.bf16.mxu0 (!%p1730_p13), %v1449_v49  ;;  %v1502_v34 = vld [vmem:[%s4289_s2] sm:$0xff] (!%p1730_p13) }
 0x3cf   : > { %1500 = sbr.rel (%p1730_p13) target bundleno = 1224 (0x4c8), region = 64  ;;  %1983 = vmatpush3.bf16.msra.mxu0 (!%p1730_p13), %v4179_v15  ;;  %v1732_v38 = vcombine.high (!%p1730_p13), %v1502_v34, %v1502_v34  ;;  %v1731_v36 = vcombine.low (!%p1730_p13), %v1502_v34, %v1502_v34 }
 0x3d0   : > { %1984 = vmatprep.subr.bf16.mxu0 (!%p1730_p13), %v1450_v48 }
 0x3d1   : > { %1542 = vmatprep.mubr.bf16.mxu0 (!%p1730_p13), %v1732_v38 }
 0x3d3   : > { %1985 = vmatpush3.bf16.msra.mxu0 (!%p1730_p13), %v4181_v24  ;;  %v1501_v37 = vld [vmem:[#allocation6] sm:$0xff] (!%p1730_p13) }
 0x3d4   : > { %1986 = vmatprep.subr.bf16.mxu0 (!%p1730_p13), %v1451_v17 }
 0x3d7   : > { %1987 = vmatpush3.bf16.msra.mxu0 %v4183_v62 }
 0x3d8   : > { %1988 = vmatprep.subr.bf16.mxu0 %v1452_v43 }
 0x3db   : > { %1989 = vmatpush3.bf16.msra.mxu0 %v4187_v13 }
 0x3dc   : > { %1990 = vmatprep.subr.bf16.mxu0 %v1453_v42 }
 0x3df   : > { %1991 = vmatpush3.bf16.msra.mxu0 %v4189_v60 }
 0x3e0   : > { %1992 = vmatprep.subr.bf16.mxu0 %v1454_v31 }
 0x3e3   : > { %1993 = vmatpush3.bf16.msra.mxu0 %v4191_v59 }
 0x3e4   : > { %1994 = vmatprep.subr.bf16.mxu0 %v1455_v35 }
 0x3e7   : > { %1995 = vmatpush3.bf16.msra.mxu0 %v4193_v22 }
 0x3e8   : > { %1996 = vmatprep.subr.bf16.mxu0 %v1456_v39 }
 0x3eb   : > { %1997 = vmatpush3.bf16.msra.mxu0 %v4196_v18 }
 0x3ee   : > { %1543 = vmatmul.mubr.bf16.vlgmr.msra.gmra.mrb[0].mxu0 %v1731_v36 }
 0x4c1   : > { %v1998_v33 = vpop.f32.mrb[0].mxu0 }
 0x4c2   : > { %v1999_v14 = vpop.f32.mrb[1].mxu0 }
 0x4c3   : > { %v2000_v0 = vadd.f32 %v1999_v14, %v1998_v33  ;;  %v2001_v1 = vpop.f32.mrb[2].mxu0 }
 0x4c4   : > { %v2002_v25 = vpop.f32.mrb[3].mxu0 }
 0x4c5   : > { %v1550_v2 = vadd.f32 %v2000_v0, %v1501_v37 }
 0x4c7   : > { %1551 = vst.msk [vmem:[#allocation6] sm:$0xff] %vm1475_vm1, %v1550_v2 }
 0x4c8 PF: > { %p4252_p0 = scmp.eq.s32.totalorder %s1613_s24, 2  ;;  %s3251_s19 = smov [#allocation6]  }
 0x4c9   : > { %s1559_s20 = sshll.u32 %s3251_s19, 4  ;;  %s1560_s20 = int_to_ptr.vmem [resolvable:$true] %s1559_s20 }
 0x4ca   : > { %s2677_s26 = scalar_lea.vmem %s1560_s20, 128  ;;  %p2684_p7 = scmp.lt.s32.totalorder %s1560_s20, %s1560_s20 }
 0x4cb   : > { %p2678_p1 = scmp.ne.s32.totalorder %s1560_s20, %s2677_s26  ;;  %p2685_p9 = scmp.lt.s32.totalorder %s2677_s26, %s2677_s26 }
 0x4cd   : > { %p2679_p2 = pnand %p2678_p1, %p4252_p0  ;;  %p2686_p3 = por %p2685_p9, %p2684_p7 }
 0x4cf   : > { %p2680_p5 = pneg %p2679_p2 }
 0x4d1   : > { %p2687_p4 = pnand %p2686_p3, %p2680_p5 }
 0x4d3   : > { %2690 = shalt.err (!%p2687_p4)
}
 0x4d4   : > { %s2691_s24 = scalar_lea.hbm %s4293_s6, 128 }
 0x4d5   : > { %p2692_p6 = scmp.ne.s32.totalorder %s4293_s6, %s2691_s24  ;;  %p2697_p11 = scmp.lt.u32.totalorder %s2691_s24, %s4293_s6 }
 0x4d7   : > { %p2693_p8 = pnand %p2692_p6, %p4252_p0 }
 0x4d9   : > { %p2694_p10 = pneg %p2693_p8 }
 0x4db   : > { %p2699_p12 = pnand %p2697_p11, %p2694_p10 }
 0x4dd   : > { %2702 = shalt.err (!%p2699_p12)
}
 0x4de   : > { %2077 = dma.vmem_to_hbm [thread:$0]  (%p4252_p0), %s1560_s20, 128, %s4293_s6, [#allocation5]  }
 0x4df   : > { %2976 = dma.done.wait (%p4252_p0), [#allocation5], 128  }
 0x4e0   : > { %2978 = vsyncadd (%p4252_p0), [#allocation5], 4294967168 }
 0x4e1 PF: > { %s18_s23 = sadd.s32 1, %s2989_s23   ;;  %s4375_s21 = smov %s2985_s22 }
 0x4e2   : > { %p15_p13 = scmp.ge.s32.totalorder %s18_s23, 5   ;;  %s4376_s22 = smov %s4378_s25 }
 0x4e4   :  { %17 = sbr.rel (!%p15_p13) target bundleno = 3 (0x3), region = 91 }
 0x4eb   :  { %1572 = vsyncpa [#allocation4], 1 }
 0x4ec   :  { %1574 = vsyncpa [#allocation4 + $0x1], 1 }
 0x4ed   :  { %1575 = vsyncpa [#allocation5], 1 }
 0x4ee   :  { %1577 = vsyncpa [#allocation5 + $0x1], 1 }

</bundles_post_ra>
